<compile_context>
chip_gen: v5e
topology: v5e:2x2
jax: 0.10.0
libtpu: 0.0.40
codegen_flags: <defaults>
</compile_context>

<pallas_src>
import functools

import jax
import jax.numpy as jnp
from jax import lax
from jax.experimental import pallas as pl
from jax.experimental.pallas import tpu as pltpu

LEAKY_SLOPE = 0.2        # F.leaky_relu(x, 0.2)
RESIDUAL_SCALE = 0.1     # ResnetBlock: out = x_s + 0.1 * dx

_BLOCK_NAMES = ('resnet_0_0', 'resnet_0_1', 'resnet_1_0', 'resnet_1_1',
                'resnet_2_0', 'resnet_2_1', 'resnet_3_0', 'resnet_3_1',
                'resnet_4_0', 'resnet_4_1')


def _leaky(x):
    return jnp.where(x > 0, x, LEAKY_SLOPE * x)


# ---------------------------------------------------------------------------
# In-kernel 3x3 conv helper (kx packed into the matmul K dimension)
# ---------------------------------------------------------------------------
def _conv3x3_packed(xa, stage_ref, w_ref, H, W):
    """'Same' 3x3 conv of a row-flattened image block on the MXU.

    xa:        (H*W, Cin) bf16 activation block (in-kernel value).
    stage_ref: (H*W + 2*W, 3*Cin) f32 VMEM scratch staging the height-padded,
               kx-packed operand (kx taps concatenated along channels).
    w_ref:     (3, 3*Cin, Cout) bf16 ky-packed weights; K index = kx*Cin + cin.
    Returns (H*W, Cout) f32 accumulator (no bias).

    Row j of column-block kx holds x[j - W - 1 + kx] (zero out of range), so the
    slice [ky*W : ky*W + HW] is exactly the tap row for ky, and one matmul per
    ky covers the three kx taps (3 MXU calls instead of 9, K = 3*Cin).
    Height edges fall into the zero pad rows; width edges are masked on the
    source columns (kx=0 never legally reads col W-1, kx=2 never reads col 0).
    """
    HW = H * W
    Cin = xa.shape[-1]
    Cout = w_ref.shape[-1]

    c = lax.broadcasted_iota(jnp.int32, (HW, 1), 0)          # source column
    if (W & (W - 1)) == 0:
        c = jnp.bitwise_and(c, W - 1)
    else:
        c = c % W
    zero = jnp.zeros_like(xa)

    stage_ref[...] = jnp.zeros(stage_ref.shape, stage_ref.dtype)
    stage_ref[W + 1:W + 1 + HW, 0:Cin] = (
        jnp.where(c < W - 1, xa, zero).astype(jnp.float32))          # kx = 0
    stage_ref[W:W + HW, Cin:2 * Cin] = xa.astype(jnp.float32)        # kx = 1
    stage_ref[W - 1:W - 1 + HW, 2 * Cin:3 * Cin] = (
        jnp.where(c > 0, xa, zero).astype(jnp.float32))              # kx = 2

    acc = jnp.zeros((HW, Cout), jnp.float32)
    for ky in range(3):                                      # unrolled: 3 matmuls
        lhs = stage_ref[ky * W:ky * W + HW, :].astype(jnp.bfloat16)
        acc = acc + jnp.dot(lhs, w_ref[ky], preferred_element_type=jnp.float32)
    return acc


# ---------------------------------------------------------------------------
# Fused [conv_img ->] ResnetBlock kernel
# ---------------------------------------------------------------------------
def _make_block_kernel(H, W, *, img_cin=None, proj=False):
    """Fused ResnetBlock forward for one image.

    img_cin: if not None, the kernel input is the raw image with img_cin
      channels and conv_img (no pre-activation) is applied first, entirely in
      VMEM; its output is then the block input / identity shortcut.
    proj: learned 1x1 conv_s shortcut (fin != fout) vs identity shortcut.
    """

    def kernel(*refs):
        it = iter(refs)
        x_ref = next(it)
        if img_cin is not None:
            wi_ref, bi_ref = next(it), next(it)
        w0_ref, b0_ref = next(it), next(it)
        w1_ref, b1_ref = next(it), next(it)
        ws_ref = next(it) if proj else None
        o_ref = next(it)
        if img_cin is not None:
            si_ref = next(it)
        s0_ref, s1_ref = next(it), next(it)

        x_in = x_ref[0]                                        # (HW, Cd) bf16
        if img_cin is not None:
            # conv_img (no pre-activation); output stays in VMEM (f32).
            x0 = _conv3x3_packed(x_in, si_ref, wi_ref, H, W) + bi_ref[...]
            h0 = _leaky(x0).astype(jnp.bfloat16)               # actvn in f32
            sc_bf = None
        else:
            x0 = None
            h0 = _leaky(x_in)                                  # bf16 actvn
            sc_bf = x_in

        dx = _conv3x3_packed(h0, s0_ref, w0_ref, H, W) + b0_ref[...]   # f32
        h1 = _leaky(dx).astype(jnp.bfloat16)                   # actvn in f32
        dy = _conv3x3_packed(h1, s1_ref, w1_ref, H, W) + b1_ref[...]   # f32

        if proj:                                               # fused 1x1 conv_s
            src = sc_bf if sc_bf is not None else x0.astype(jnp.bfloat16)
            xs = jnp.dot(src, ws_ref[...], preferred_element_type=jnp.float32)
        else:
            xs = x0 if x0 is not None else sc_bf.astype(jnp.float32)

        o_ref[0] = (xs + RESIDUAL_SCALE * dy).astype(o_ref.dtype)

    return kernel


def fused_resnet_block(x, bp, *, conv_img=None):
    """One fused ResnetBlock (optionally with conv_img folded in front).

    x: (N, H, W, Cd) bf16 NHWC.  bp: packed block params {w0,b0,w1,b1[,ws]}.
    conv_img: optional packed conv_img params (then Cd is the raw image depth).
    Returns (N, H, W, fout) bf16.
    """
    N, H, W_, Cd = x.shape
    HW = H * W_
    HB = HW + 2 * W_
    fin = bp['w0'].shape[1] // 3
    fh = bp['w0'].shape[2]
    fout = bp['w1'].shape[2]
    proj = 'ws' in bp

    def _full(a):
        nd = a.ndim
        return pl.BlockSpec(a.shape, lambda n, _nd=nd: (0,) * _nd)

    args = [x.reshape(N, HW, Cd)]
    in_specs = [pl.BlockSpec((1, HW, Cd), lambda n: (n, 0, 0))]
    scratch = []
    if conv_img is not None:
        args += [conv_img['w'], conv_img['b']]
        in_specs += [_full(conv_img['w']), _full(conv_img['b'])]
        scratch.append(pltpu.VMEM((HB, conv_img['w'].shape[1]), jnp.float32))
    args += [bp['w0'], bp['b0'], bp['w1'], bp['b1']]
    in_specs += [_full(bp['w0']), _full(bp['b0']),
                 _full(bp['w1']), _full(bp['b1'])]
    if proj:
        args.append(bp['ws'])
        in_specs.append(_full(bp['ws']))
    scratch += [pltpu.VMEM((HB, 3 * fin), jnp.float32),
                pltpu.VMEM((HB, 3 * fh), jnp.float32)]

    kernel = _make_block_kernel(
        H, W_, img_cin=(Cd if conv_img is not None else None), proj=proj)

    out = pl.pallas_call(
        kernel,
        out_shape=jax.ShapeDtypeStruct((N, HW, fout), jnp.bfloat16),
        grid=(N,),
        in_specs=in_specs,
        out_specs=pl.BlockSpec((1, HW, fout), lambda n: (n, 0, 0)),
        scratch_shapes=scratch,
        compiler_params=pltpu.CompilerParams(
            dimension_semantics=("parallel",),
            vmem_limit_bytes=32 * 1024 * 1024),
    )(*args)
    return out.reshape(N, H, W_, fout)


# ---------------------------------------------------------------------------
# Classifier: actvn -> 1x1 conv -> bias -> log_softmax (one kernel)
# ---------------------------------------------------------------------------
def _classifier_kernel(x_ref, w_ref, b_ref, o_ref):
    xa = _leaky(x_ref[0])                                     # (HW, C) bf16
    logits = jnp.dot(xa, w_ref[...], preferred_element_type=jnp.float32)
    logits = logits + b_ref[...]
    m = jnp.max(logits, axis=-1, keepdims=True)
    s = logits - m
    o_ref[0] = (s - jnp.log(jnp.sum(jnp.exp(s), axis=-1, keepdims=True))
                ).astype(o_ref.dtype)


def classifier_1x1_logsoftmax(x, wp, bp):
    """actvn -> local_FeatureMapping (assumed biased 1x1 conv) -> LogSoftmax."""
    # TODO(synk): blocks.local_FeatureMapping source not provided; assumed to be
    #             a 1x1 conv (16*nf -> local_nlabels) with bias.
    N, H, W_, C = x.shape
    L = wp.shape[1]
    HW = H * W_
    out = pl.pallas_call(
        _classifier_kernel,
        out_shape=jax.ShapeDtypeStruct((N, HW, L), jnp.float32),
        grid=(N,),
        in_specs=[pl.BlockSpec((1, HW, C), lambda n: (n, 0, 0)),
                  pl.BlockSpec((C, L), lambda n: (0, 0)),
                  pl.BlockSpec((1, L), lambda n: (0, 0))],
        out_specs=pl.BlockSpec((1, HW, L), lambda n: (n, 0, 0)),
        compiler_params=pltpu.CompilerParams(
            dimension_semantics=("parallel",),
            vmem_limit_bytes=32 * 1024 * 1024),
    )(x.reshape(N, HW, C), wp, bp)
    return out.reshape(N, H, W_, L)


# ---------------------------------------------------------------------------
# avg_pool2d(3, stride=2, padding=1), count_include_pad=True, NHWC, bf16
# ---------------------------------------------------------------------------
def avg_pool_3x3_s2(x):
    # TODO(synk): fully folding the pool into the next block's kernel would save
    #             one more HBM round trip; kept as one fused bf16 reduce_window.
    s = lax.reduce_window(x, jnp.zeros((), x.dtype), lax.add,
                          (1, 3, 3, 1), (1, 2, 2, 1),
                          ((0, 0), (1, 1), (1, 1), (0, 0)))
    return s * (1.0 / 9.0)


# ---------------------------------------------------------------------------
# One-time parameter packing (outside the jitted forward)
# ---------------------------------------------------------------------------
def _pack_conv3x3(w, b):
    """(Cout, Cin, 3, 3) torch layout -> (3, 3*Cin, Cout) bf16 ky-packed,
    with K ordered kx-major then cin (matches the in-kernel operand packing)."""
    cout, cin = w.shape[0], w.shape[1]
    wk = jnp.transpose(w, (2, 3, 1, 0)).reshape(3, 3 * cin, cout)
    return wk.astype(jnp.bfloat16), b.reshape(1, cout).astype(jnp.float32)


def pack_params(params):
    wi, bi = _pack_conv3x3(params['conv_img']['w'], params['conv_img']['b'])
    pk = {'conv_img': {'w': wi, 'b': bi}}
    for name in _BLOCK_NAMES:
        p = params[name]
        w0, b0 = _pack_conv3x3(p['conv_0']['w'], p['conv_0']['b'])
        w1, b1 = _pack_conv3x3(p['conv_1']['w'], p['conv_1']['b'])
        blk = {'w0': w0, 'b0': b0, 'w1': w1, 'b1': b1}
        if 'conv_s' in p:
            ws = p['conv_s']['w']                              # (fout, fin, 1, 1)
            blk['ws'] = ws[:, :, 0, 0].T.astype(jnp.bfloat16)  # (fin, fout)
        pk[name] = blk
    wf = params['fm']['w']                                     # (L, C, 1, 1)
    pk['fm'] = {'w': wf[:, :, 0, 0].T.astype(jnp.bfloat16),    # (C, L)
                'b': params['fm']['b'].reshape(1, -1).astype(jnp.float32)}
    return pk


# ---------------------------------------------------------------------------
# Encoder forward
# ---------------------------------------------------------------------------
def encoder_forward(pp, x_nchw, gumbel_key, *, img_size, label_size,
                    local_nlabels):
    x = jnp.transpose(x_nchw, (0, 2, 3, 1)).astype(jnp.bfloat16)   # NCHW -> NHWC

    out = fused_resnet_block(x, pp['resnet_0_0'], conv_img=pp['conv_img'])
    out = fused_resnet_block(out, pp['resnet_0_1'])
    out = avg_pool_3x3_s2(out)
    out = fused_resnet_block(out, pp['resnet_1_0'])
    out = fused_resnet_block(out, pp['resnet_1_1'])
    out = fused_resnet_block(out, pp['resnet_2_0'])
    out = fused_resnet_block(out, pp['resnet_2_1'])
    out = avg_pool_3x3_s2(out)
    out = fused_resnet_block(out, pp['resnet_3_0'])
    out = fused_resnet_block(out, pp['resnet_3_1'])
    if img_size // label_size == 8:
        out = avg_pool_3x3_s2(out)
    out = fused_resnet_block(out, pp['resnet_4_0'])
    out = fused_resnet_block(out, pp['resnet_4_1'])

    logits = classifier_1x1_logsoftmax(out, pp['fm']['w'], pp['fm']['b'])
    logits = jnp.transpose(logits, (0, 3, 1, 2))                  # NHWC -> NCHW

    # Gumbel-softmax sampling (plain JAX glue; torch RNG cannot be reproduced).
    eps = 1e-20
    U = jax.random.uniform(gumbel_key, logits.shape, minval=0.0, maxval=1.0)
    g = -jnp.log(-jnp.log(U + eps) + eps)
    y_unorm = logits + g                                          # temperature 1.0
    y = jax.nn.softmax(y_unorm, axis=1)
    idx = jnp.argmax(y, axis=1)
    y_hard = jax.nn.one_hot(idx, local_nlabels, axis=1, dtype=y.dtype)
    label_map = lax.stop_gradient(y_hard - y) + y                 # straight-through
    return y_unorm, label_map


# ---------------------------------------------------------------------------
# Deterministic parameter initialization (PyTorch-default-like uniform)
# ---------------------------------------------------------------------------
def _conv_init(key, cout, cin, kh, kw, bias=True):
    k1, k2 = jax.random.split(key)
    fan_in = cin * kh * kw
    bound = 1.0 / (fan_in ** 0.5)
    p = {'w': jax.random.uniform(k1, (cout, cin, kh, kw), jnp.float32, -bound, bound)}
    if bias:
        p['b'] = jax.random.uniform(k2, (cout,), jnp.float32, -bound, bound)
    return p


def _resblock_init(key, fin, fout):
    fhidden = min(fin, fout)
    k0, k1, k2 = jax.random.split(key, 3)
    p = {'conv_0': _conv_init(k0, fhidden, fin, 3, 3),
         'conv_1': _conv_init(k1, fout, fhidden, 3, 3)}
    if fin != fout:
        p['conv_s'] = _conv_init(k2, fout, fin, 1, 1, bias=False)
    return p


# ---------------------------------------------------------------------------
# Pure-JAX reference of the first fused kernel (conv_img + resnet_0_0)
# ---------------------------------------------------------------------------
def _ref_first_block(x_nhwc, params):
    def conv(x, p):
        y = lax.conv_general_dilated(
            x.astype(jnp.bfloat16),
            jnp.transpose(p['w'], (2, 3, 1, 0)).astype(jnp.bfloat16),
            window_strides=(1, 1), padding='SAME',
            dimension_numbers=('NHWC', 'HWIO', 'NHWC'),
            preferred_element_type=jnp.float32)
        return y + p['b'].astype(jnp.float32)
    x0 = conv(x_nhwc, params['conv_img'])
    dx = conv(_leaky(x0), params['resnet_0_0']['conv_0'])
    dy = conv(_leaky(dx), params['resnet_0_0']['conv_1'])
    return x0 + RESIDUAL_SCALE * dy


# ---------------------------------------------------------------------------
# Main
# ---------------------------------------------------------------------------
if __name__ == "__main__":
    key = jax.random.PRNGKey(0)
    nf = 16                 # nfilter (small for the demo)
    local_nlabels = 8
    img_size = 16
    label_size = 4          # img_size // label_size == 4 -> third pool skipped
    batch = 2

    keys = jax.random.split(key, 14)
    params = {
        'conv_img':   _conv_init(keys[0], nf, 3, 3, 3),
        'resnet_0_0': _resblock_init(keys[1], 1 * nf, 1 * nf),
        'resnet_0_1': _resblock_init(keys[2], 1 * nf, 2 * nf),
        'resnet_1_0': _resblock_init(keys[3], 2 * nf, 2 * nf),
        'resnet_1_1': _resblock_init(keys[4], 2 * nf, 4 * nf),
        'resnet_2_0': _resblock_init(keys[5], 4 * nf, 4 * nf),
        'resnet_2_1': _resblock_init(keys[6], 4 * nf, 8 * nf),
        'resnet_3_0': _resblock_init(keys[7], 8 * nf, 8 * nf),
        'resnet_3_1': _resblock_init(keys[8], 8 * nf, 16 * nf),
        'resnet_4_0': _resblock_init(keys[9], 16 * nf, 16 * nf),
        'resnet_4_1': _resblock_init(keys[10], 16 * nf, 16 * nf),
        'fm':         _conv_init(keys[11], local_nlabels, 16 * nf, 1, 1),
    }
    packed = pack_params(params)         # one-time weight packing, outside jit

    x = jax.random.normal(keys[12], (batch, 3, img_size, img_size), jnp.float32)
    gumbel_key = keys[13]

    # Self-check: fused (conv_img + resnet_0_0) kernel vs an XLA conv reference
    # with the same bf16 casting points (bf16-level tolerance).
    x_nhwc = jnp.transpose(x, (0, 2, 3, 1))
    got = fused_resnet_block(x_nhwc.astype(jnp.bfloat16), packed['resnet_0_0'],
                             conv_img=packed['conv_img'])
    ref = _ref_first_block(x_nhwc, params)
    assert float(jnp.max(jnp.abs(got.astype(jnp.float32) - ref))) < 1e-1

    fwd = jax.jit(functools.partial(encoder_forward, img_size=img_size,
                                    label_size=label_size,
                                    local_nlabels=local_nlabels))
    label_map_unorm, label_map = fwd(packed, x, gumbel_key)
    jax.block_until_ready((label_map_unorm, label_map))

    out_hw = img_size // 4            # two avg-pools: 16 -> 8 -> 4
    assert label_map_unorm.shape == (batch, local_nlabels, out_hw, out_hw)
    assert label_map.shape == (batch, local_nlabels, out_hw, out_hw)
    assert bool(jnp.all(jnp.isfinite(label_map_unorm)))
    chan_sum = jnp.sum(label_map, axis=1)
    assert bool(jnp.all(jnp.abs(chan_sum - 1.0) < 1e-3))
    print("KERNEL_OK")
</pallas_src>

<mosaic_0001>
module attributes {stable_mosaic.version = 11 : i64} {
  func.func @kernel(%arg0: i32, %arg1: memref<1x256x3xbf16, #tpu.memory_space<vmem>>, %arg2: memref<3x9x16xbf16, #tpu.memory_space<vmem>>, %arg3: memref<1x16xf32, #tpu.memory_space<vmem>>, %arg4: memref<3x48x16xbf16, #tpu.memory_space<vmem>>, %arg5: memref<1x16xf32, #tpu.memory_space<vmem>>, %arg6: memref<3x48x16xbf16, #tpu.memory_space<vmem>>, %arg7: memref<1x16xf32, #tpu.memory_space<vmem>>, %arg8: memref<1x256x16xbf16, #tpu.memory_space<vmem>>, %arg9: memref<288x9xf32, #tpu.memory_space<vmem>>, %arg10: memref<288x48xf32, #tpu.memory_space<vmem>>, %arg11: memref<288x48xf32, #tpu.memory_space<vmem>>) attributes {dimension_semantics = [#tpu.dimension_semantics<parallel>], iteration_bounds = array<i64: 2>, scalar_prefetch = 0 : i64, scratch_operands = 3 : i64, tpu.core_type = #tpu.core_type<tc>, window_params = [{transform_indices = @transform_0, window_bounds = array<i64: 1, 256, 3>}, {pipeline_mode = #tpu.pipeline_mode<synchronous>, transform_indices = @transform_1, window_bounds = array<i64: 3, 9, 16>}, {pipeline_mode = #tpu.pipeline_mode<synchronous>, transform_indices = @transform_2, window_bounds = array<i64: 1, 16>}, {pipeline_mode = #tpu.pipeline_mode<synchronous>, transform_indices = @transform_3, window_bounds = array<i64: 3, 48, 16>}, {pipeline_mode = #tpu.pipeline_mode<synchronous>, transform_indices = @transform_4, window_bounds = array<i64: 1, 16>}, {pipeline_mode = #tpu.pipeline_mode<synchronous>, transform_indices = @transform_5, window_bounds = array<i64: 3, 48, 16>}, {pipeline_mode = #tpu.pipeline_mode<synchronous>, transform_indices = @transform_6, window_bounds = array<i64: 1, 16>}, {transform_indices = @transform_7, window_bounds = array<i64: 1, 256, 16>}]} {
    %c0 = arith.constant 0 : index
    %c0_0 = arith.constant 0 : index
    %c0_1 = arith.constant 0 : index
    %0 = vector.load %arg1[%c0, %c0_0, %c0_1] : memref<1x256x3xbf16, #tpu.memory_space<vmem>>, vector<1x256x3xbf16>
    %1 = vector.shape_cast %0 : vector<1x256x3xbf16> to vector<256x3xbf16>
    %2 = tpu.iota {dimensions = array<i32: 0>} : vector<256x1xi32>
    %c15_i32 = arith.constant 15 : i32
    %3 = vector.broadcast %c15_i32 : i32 to vector<256x1xi32>
    %4 = arith.andi %2, %3 : vector<256x1xi32>
    %cst = arith.constant 0.000000e+00 : bf16
    %5 = vector.broadcast %cst : bf16 to vector<256x3xbf16>
    %cst_2 = arith.constant 0.000000e+00 : f32
    %6 = vector.broadcast %cst_2 : f32 to vector<288x9xf32>
    %c0_3 = arith.constant 0 : index
    %c0_4 = arith.constant 0 : index
    %7 = vector.load %arg9[%c0_3, %c0_4] : memref<288x9xf32, #tpu.memory_space<vmem>>, vector<288x9xf32>
    tpu.vector_store %arg9[%c0_3, %c0_4], %6 {strides = array<i32>} : memref<288x9xf32, #tpu.memory_space<vmem>>, vector<288x9xf32>,
    %c15_i32_5 = arith.constant 15 : i32
    %8 = vector.broadcast %c15_i32_5 : i32 to vector<256x1xi32>
    %9 = arith.cmpi slt, %4, %8 : vector<256x1xi32>
    %10 = vector.shape_cast %9 : vector<256x1xi1> to vector<256x1xi1>
    %11 = vector.broadcast %10 : vector<256x1xi1> to vector<256x3xi1>
    %12 = arith.select %11, %1, %5 : vector<256x3xi1>, vector<256x3xbf16>
    %13 = arith.extf %12 : vector<256x3xbf16> to vector<256x3xf32>
    %c17 = arith.constant 17 : index
    %c0_6 = arith.constant 0 : index
    %14 = vector.load %arg9[%c17, %c0_6] : memref<288x9xf32, #tpu.memory_space<vmem>>, vector<256x3xf32>
    tpu.vector_store %arg9[%c17, %c0_6], %13 {strides = array<i32>} : memref<288x9xf32, #tpu.memory_space<vmem>>, vector<256x3xf32>,
    %15 = arith.extf %1 : vector<256x3xbf16> to vector<256x3xf32>
    %c16 = arith.constant 16 : index
    %c3 = arith.constant 3 : index
    %16 = vector.load %arg9[%c16, %c3] : memref<288x9xf32, #tpu.memory_space<vmem>>, vector<256x3xf32>
    tpu.vector_store %arg9[%c16, %c3], %15 {strides = array<i32>} : memref<288x9xf32, #tpu.memory_space<vmem>>, vector<256x3xf32>,
    %c0_i32 = arith.constant 0 : i32
    %17 = vector.broadcast %c0_i32 : i32 to vector<256x1xi32>
    %18 = arith.cmpi sgt, %4, %17 : vector<256x1xi32>
    %19 = vector.shape_cast %18 : vector<256x1xi1> to vector<256x1xi1>
    %20 = vector.broadcast %19 : vector<256x1xi1> to vector<256x3xi1>
    %21 = arith.select %20, %1, %5 : vector<256x3xi1>, vector<256x3xbf16>
    %22 = arith.extf %21 : vector<256x3xbf16> to vector<256x3xf32>
    %c15 = arith.constant 15 : index
    %c6 = arith.constant 6 : index
    %23 = vector.load %arg9[%c15, %c6] : memref<288x9xf32, #tpu.memory_space<vmem>>, vector<256x3xf32>
    tpu.vector_store %arg9[%c15, %c6], %22 {strides = array<i32>} : memref<288x9xf32, #tpu.memory_space<vmem>>, vector<256x3xf32>,
    %cst_7 = arith.constant 0.000000e+00 : f32
    %24 = vector.broadcast %cst_7 : f32 to vector<256x16xf32>
    %c0_8 = arith.constant 0 : index
    %c0_9 = arith.constant 0 : index
    %25 = vector.load %arg9[%c0_8, %c0_9] : memref<288x9xf32, #tpu.memory_space<vmem>>, vector<256x9xf32>
    %26 = arith.truncf %25 : vector<256x9xf32> to vector<256x9xbf16>
    %c0_10 = arith.constant 0 : index
    %c0_11 = arith.constant 0 : index
    %c0_12 = arith.constant 0 : index
    %27 = vector.load %arg2[%c0_10, %c0_11, %c0_12] : memref<3x9x16xbf16, #tpu.memory_space<vmem>>, vector<1x9x16xbf16>
    %28 = vector.shape_cast %27 : vector<1x9x16xbf16> to vector<9x16xbf16>
    %cst_13 = arith.constant dense<0.000000e+00> : vector<256x16xf32>
    %29 = tpu.matmul %26, %28, %cst_13 {dimension_numbers = #tpu.dot_dimension_numbers<[1], [0], [0], [1], [0, 0, 1, 1], [], []>} : vector<256x9xbf16>, vector<9x16xbf16>, vector<256x16xf32> -> vector<256x16xf32>
    %30 = arith.addf %24, %29 : vector<256x16xf32>
    %c16_14 = arith.constant 16 : index
    %c0_15 = arith.constant 0 : index
    %31 = vector.load %arg9[%c16_14, %c0_15] : memref<288x9xf32, #tpu.memory_space<vmem>>, vector<256x9xf32>
    %32 = arith.truncf %31 : vector<256x9xf32> to vector<256x9xbf16>
    %c1 = arith.constant 1 : index
    %c0_16 = arith.constant 0 : index
    %c0_17 = arith.constant 0 : index
    %33 = vector.load %arg2[%c1, %c0_16, %c0_17] : memref<3x9x16xbf16, #tpu.memory_space<vmem>>, vector<1x9x16xbf16>
    %34 = vector.shape_cast %33 : vector<1x9x16xbf16> to vector<9x16xbf16>
    %cst_18 = arith.constant dense<0.000000e+00> : vector<256x16xf32>
    %35 = tpu.matmul %32, %34, %cst_18 {dimension_numbers = #tpu.dot_dimension_numbers<[1], [0], [0], [1], [0, 0, 1, 1], [], []>} : vector<256x9xbf16>, vector<9x16xbf16>, vector<256x16xf32> -> vector<256x16xf32>
    %36 = arith.addf %30, %35 : vector<256x16xf32>
    %c32 = arith.constant 32 : index
    %c0_19 = arith.constant 0 : index
    %37 = vector.load %arg9[%c32, %c0_19] : memref<288x9xf32, #tpu.memory_space<vmem>>, vector<256x9xf32>
    %38 = arith.truncf %37 : vector<256x9xf32> to vector<256x9xbf16>
    %c2 = arith.constant 2 : index
    %c0_20 = arith.constant 0 : index
    %c0_21 = arith.constant 0 : index
    %39 = vector.load %arg2[%c2, %c0_20, %c0_21] : memref<3x9x16xbf16, #tpu.memory_space<vmem>>, vector<1x9x16xbf16>
    %40 = vector.shape_cast %39 : vector<1x9x16xbf16> to vector<9x16xbf16>
    %cst_22 = arith.constant dense<0.000000e+00> : vector<256x16xf32>
    %41 = tpu.matmul %38, %40, %cst_22 {dimension_numbers = #tpu.dot_dimension_numbers<[1], [0], [0], [1], [0, 0, 1, 1], [], []>} : vector<256x9xbf16>, vector<9x16xbf16>, vector<256x16xf32> -> vector<256x16xf32>
    %42 = arith.addf %36, %41 : vector<256x16xf32>
    %c0_23 = arith.constant 0 : index
    %c0_24 = arith.constant 0 : index
    %43 = vector.load %arg3[%c0_23, %c0_24] : memref<1x16xf32, #tpu.memory_space<vmem>>, vector<1x16xf32>
    %44 = vector.broadcast %43 : vector<1x16xf32> to vector<256x16xf32>
    %45 = arith.addf %42, %44 : vector<256x16xf32>
    %cst_25 = arith.constant 0.000000e+00 : f32
    %46 = vector.broadcast %cst_25 : f32 to vector<256x16xf32>
    %47 = arith.cmpf ogt, %45, %46 : vector<256x16xf32>
    %cst_26 = arith.constant 2.000000e-01 : f32
    %48 = vector.broadcast %cst_26 : f32 to vector<256x16xf32>
    %49 = arith.mulf %48, %45 : vector<256x16xf32>
    %50 = arith.select %47, %45, %49 : vector<256x16xi1>, vector<256x16xf32>
    %51 = arith.truncf %50 : vector<256x16xf32> to vector<256x16xbf16>
    %52 = tpu.iota {dimensions = array<i32: 0>} : vector<256x1xi32>
    %c15_i32_27 = arith.constant 15 : i32
    %53 = vector.broadcast %c15_i32_27 : i32 to vector<256x1xi32>
    %54 = arith.andi %52, %53 : vector<256x1xi32>
    %cst_28 = arith.constant 0.000000e+00 : bf16
    %55 = vector.broadcast %cst_28 : bf16 to vector<256x16xbf16>
    %cst_29 = arith.constant 0.000000e+00 : f32
    %56 = vector.broadcast %cst_29 : f32 to vector<288x48xf32>
    %c0_30 = arith.constant 0 : index
    %c0_31 = arith.constant 0 : index
    %57 = vector.load %arg10[%c0_30, %c0_31] : memref<288x48xf32, #tpu.memory_space<vmem>>, vector<288x48xf32>
    tpu.vector_store %arg10[%c0_30, %c0_31], %56 {strides = array<i32>} : memref<288x48xf32, #tpu.memory_space<vmem>>, vector<288x48xf32>,
    %c15_i32_32 = arith.constant 15 : i32
    %58 = vector.broadcast %c15_i32_32 : i32 to vector<256x1xi32>
    %59 = arith.cmpi slt, %54, %58 : vector<256x1xi32>
    %60 = vector.shape_cast %59 : vector<256x1xi1> to vector<256x1xi1>
    %61 = vector.broadcast %60 : vector<256x1xi1> to vector<256x16xi1>
    %62 = arith.select %61, %51, %55 : vector<256x16xi1>, vector<256x16xbf16>
    %63 = arith.extf %62 : vector<256x16xbf16> to vector<256x16xf32>
    %c17_33 = arith.constant 17 : index
    %c0_34 = arith.constant 0 : index
    %64 = vector.load %arg10[%c17_33, %c0_34] : memref<288x48xf32, #tpu.memory_space<vmem>>, vector<256x16xf32>
    tpu.vector_store %arg10[%c17_33, %c0_34], %63 {strides = array<i32>} : memref<288x48xf32, #tpu.memory_space<vmem>>, vector<256x16xf32>,
    %65 = arith.extf %51 : vector<256x16xbf16> to vector<256x16xf32>
    %c16_35 = arith.constant 16 : index
    %c16_36 = arith.constant 16 : index
    %66 = vector.load %arg10[%c16_35, %c16_36] : memref<288x48xf32, #tpu.memory_space<vmem>>, vector<256x16xf32>
    tpu.vector_store %arg10[%c16_35, %c16_36], %65 {strides = array<i32>} : memref<288x48xf32, #tpu.memory_space<vmem>>, vector<256x16xf32>,
    %c0_i32_37 = arith.constant 0 : i32
    %67 = vector.broadcast %c0_i32_37 : i32 to vector<256x1xi32>
    %68 = arith.cmpi sgt, %54, %67 : vector<256x1xi32>
    %69 = vector.shape_cast %68 : vector<256x1xi1> to vector<256x1xi1>
    %70 = vector.broadcast %69 : vector<256x1xi1> to vector<256x16xi1>
    %71 = arith.select %70, %51, %55 : vector<256x16xi1>, vector<256x16xbf16>
    %72 = arith.extf %71 : vector<256x16xbf16> to vector<256x16xf32>
    %c15_38 = arith.constant 15 : index
    %c32_39 = arith.constant 32 : index
    %73 = vector.load %arg10[%c15_38, %c32_39] : memref<288x48xf32, #tpu.memory_space<vmem>>, vector<256x16xf32>
    tpu.vector_store %arg10[%c15_38, %c32_39], %72 {strides = array<i32>} : memref<288x48xf32, #tpu.memory_space<vmem>>, vector<256x16xf32>,
    %cst_40 = arith.constant 0.000000e+00 : f32
    %74 = vector.broadcast %cst_40 : f32 to vector<256x16xf32>
    %c0_41 = arith.constant 0 : index
    %c0_42 = arith.constant 0 : index
    %75 = vector.load %arg10[%c0_41, %c0_42] : memref<288x48xf32, #tpu.memory_space<vmem>>, vector<256x48xf32>
    %76 = arith.truncf %75 : vector<256x48xf32> to vector<256x48xbf16>
    %c0_43 = arith.constant 0 : index
    %c0_44 = arith.constant 0 : index
    %c0_45 = arith.constant 0 : index
    %77 = vector.load %arg4[%c0_43, %c0_44, %c0_45] : memref<3x48x16xbf16, #tpu.memory_space<vmem>>, vector<1x48x16xbf16>
    %78 = vector.shape_cast %77 : vector<1x48x16xbf16> to vector<48x16xbf16>
    %cst_46 = arith.constant dense<0.000000e+00> : vector<256x16xf32>
    %79 = tpu.matmul %76, %78, %cst_46 {dimension_numbers = #tpu.dot_dimension_numbers<[1], [0], [0], [1], [0, 0, 1, 1], [], []>} : vector<256x48xbf16>, vector<48x16xbf16>, vector<256x16xf32> -> vector<256x16xf32>
    %80 = arith.addf %74, %79 : vector<256x16xf32>
    %c16_47 = arith.constant 16 : index
    %c0_48 = arith.constant 0 : index
    %81 = vector.load %arg10[%c16_47, %c0_48] : memref<288x48xf32, #tpu.memory_space<vmem>>, vector<256x48xf32>
    %82 = arith.truncf %81 : vector<256x48xf32> to vector<256x48xbf16>
    %c1_49 = arith.constant 1 : index
    %c0_50 = arith.constant 0 : index
    %c0_51 = arith.constant 0 : index
    %83 = vector.load %arg4[%c1_49, %c0_50, %c0_51] : memref<3x48x16xbf16, #tpu.memory_space<vmem>>, vector<1x48x16xbf16>
    %84 = vector.shape_cast %83 : vector<1x48x16xbf16> to vector<48x16xbf16>
    %cst_52 = arith.constant dense<0.000000e+00> : vector<256x16xf32>
    %85 = tpu.matmul %82, %84, %cst_52 {dimension_numbers = #tpu.dot_dimension_numbers<[1], [0], [0], [1], [0, 0, 1, 1], [], []>} : vector<256x48xbf16>, vector<48x16xbf16>, vector<256x16xf32> -> vector<256x16xf32>
    %86 = arith.addf %80, %85 : vector<256x16xf32>
    %c32_53 = arith.constant 32 : index
    %c0_54 = arith.constant 0 : index
    %87 = vector.load %arg10[%c32_53, %c0_54] : memref<288x48xf32, #tpu.memory_space<vmem>>, vector<256x48xf32>
    %88 = arith.truncf %87 : vector<256x48xf32> to vector<256x48xbf16>
    %c2_55 = arith.constant 2 : index
    %c0_56 = arith.constant 0 : index
    %c0_57 = arith.constant 0 : index
    %89 = vector.load %arg4[%c2_55, %c0_56, %c0_57] : memref<3x48x16xbf16, #tpu.memory_space<vmem>>, vector<1x48x16xbf16>
    %90 = vector.shape_cast %89 : vector<1x48x16xbf16> to vector<48x16xbf16>
    %cst_58 = arith.constant dense<0.000000e+00> : vector<256x16xf32>
    %91 = tpu.matmul %88, %90, %cst_58 {dimension_numbers = #tpu.dot_dimension_numbers<[1], [0], [0], [1], [0, 0, 1, 1], [], []>} : vector<256x48xbf16>, vector<48x16xbf16>, vector<256x16xf32> -> vector<256x16xf32>
    %92 = arith.addf %86, %91 : vector<256x16xf32>
    %c0_59 = arith.constant 0 : index
    %c0_60 = arith.constant 0 : index
    %93 = vector.load %arg5[%c0_59, %c0_60] : memref<1x16xf32, #tpu.memory_space<vmem>>, vector<1x16xf32>
    %94 = vector.broadcast %93 : vector<1x16xf32> to vector<256x16xf32>
    %95 = arith.addf %92, %94 : vector<256x16xf32>
    %cst_61 = arith.constant 0.000000e+00 : f32
    %96 = vector.broadcast %cst_61 : f32 to vector<256x16xf32>
    %97 = arith.cmpf ogt, %95, %96 : vector<256x16xf32>
    %cst_62 = arith.constant 2.000000e-01 : f32
    %98 = vector.broadcast %cst_62 : f32 to vector<256x16xf32>
    %99 = arith.mulf %98, %95 : vector<256x16xf32>
    %100 = arith.select %97, %95, %99 : vector<256x16xi1>, vector<256x16xf32>
    %101 = arith.truncf %100 : vector<256x16xf32> to vector<256x16xbf16>
    %102 = tpu.iota {dimensions = array<i32: 0>} : vector<256x1xi32>
    %c15_i32_63 = arith.constant 15 : i32
    %103 = vector.broadcast %c15_i32_63 : i32 to vector<256x1xi32>
    %104 = arith.andi %102, %103 : vector<256x1xi32>
    %cst_64 = arith.constant 0.000000e+00 : bf16
    %105 = vector.broadcast %cst_64 : bf16 to vector<256x16xbf16>
    %cst_65 = arith.constant 0.000000e+00 : f32
    %106 = vector.broadcast %cst_65 : f32 to vector<288x48xf32>
    %c0_66 = arith.constant 0 : index
    %c0_67 = arith.constant 0 : index
    %107 = vector.load %arg11[%c0_66, %c0_67] : memref<288x48xf32, #tpu.memory_space<vmem>>, vector<288x48xf32>
    tpu.vector_store %arg11[%c0_66, %c0_67], %106 {strides = array<i32>} : memref<288x48xf32, #tpu.memory_space<vmem>>, vector<288x48xf32>,
    %c15_i32_68 = arith.constant 15 : i32
    %108 = vector.broadcast %c15_i32_68 : i32 to vector<256x1xi32>
    %109 = arith.cmpi slt, %104, %108 : vector<256x1xi32>
    %110 = vector.shape_cast %109 : vector<256x1xi1> to vector<256x1xi1>
    %111 = vector.broadcast %110 : vector<256x1xi1> to vector<256x16xi1>
    %112 = arith.select %111, %101, %105 : vector<256x16xi1>, vector<256x16xbf16>
    %113 = arith.extf %112 : vector<256x16xbf16> to vector<256x16xf32>
    %c17_69 = arith.constant 17 : index
    %c0_70 = arith.constant 0 : index
    %114 = vector.load %arg11[%c17_69, %c0_70] : memref<288x48xf32, #tpu.memory_space<vmem>>, vector<256x16xf32>
    tpu.vector_store %arg11[%c17_69, %c0_70], %113 {strides = array<i32>} : memref<288x48xf32, #tpu.memory_space<vmem>>, vector<256x16xf32>,
    %115 = arith.extf %101 : vector<256x16xbf16> to vector<256x16xf32>
    %c16_71 = arith.constant 16 : index
    %c16_72 = arith.constant 16 : index
    %116 = vector.load %arg11[%c16_71, %c16_72] : memref<288x48xf32, #tpu.memory_space<vmem>>, vector<256x16xf32>
    tpu.vector_store %arg11[%c16_71, %c16_72], %115 {strides = array<i32>} : memref<288x48xf32, #tpu.memory_space<vmem>>, vector<256x16xf32>,
    %c0_i32_73 = arith.constant 0 : i32
    %117 = vector.broadcast %c0_i32_73 : i32 to vector<256x1xi32>
    %118 = arith.cmpi sgt, %104, %117 : vector<256x1xi32>
    %119 = vector.shape_cast %118 : vector<256x1xi1> to vector<256x1xi1>
    %120 = vector.broadcast %119 : vector<256x1xi1> to vector<256x16xi1>
    %121 = arith.select %120, %101, %105 : vector<256x16xi1>, vector<256x16xbf16>
    %122 = arith.extf %121 : vector<256x16xbf16> to vector<256x16xf32>
    %c15_74 = arith.constant 15 : index
    %c32_75 = arith.constant 32 : index
    %123 = vector.load %arg11[%c15_74, %c32_75] : memref<288x48xf32, #tpu.memory_space<vmem>>, vector<256x16xf32>
    tpu.vector_store %arg11[%c15_74, %c32_75], %122 {strides = array<i32>} : memref<288x48xf32, #tpu.memory_space<vmem>>, vector<256x16xf32>,
    %cst_76 = arith.constant 0.000000e+00 : f32
    %124 = vector.broadcast %cst_76 : f32 to vector<256x16xf32>
    %c0_77 = arith.constant 0 : index
    %c0_78 = arith.constant 0 : index
    %125 = vector.load %arg11[%c0_77, %c0_78] : memref<288x48xf32, #tpu.memory_space<vmem>>, vector<256x48xf32>
    %126 = arith.truncf %125 : vector<256x48xf32> to vector<256x48xbf16>
    %c0_79 = arith.constant 0 : index
    %c0_80 = arith.constant 0 : index
    %c0_81 = arith.constant 0 : index
    %127 = vector.load %arg6[%c0_79, %c0_80, %c0_81] : memref<3x48x16xbf16, #tpu.memory_space<vmem>>, vector<1x48x16xbf16>
    %128 = vector.shape_cast %127 : vector<1x48x16xbf16> to vector<48x16xbf16>
    %cst_82 = arith.constant dense<0.000000e+00> : vector<256x16xf32>
    %129 = tpu.matmul %126, %128, %cst_82 {dimension_numbers = #tpu.dot_dimension_numbers<[1], [0], [0], [1], [0, 0, 1, 1], [], []>} : vector<256x48xbf16>, vector<48x16xbf16>, vector<256x16xf32> -> vector<256x16xf32>
    %130 = arith.addf %124, %129 : vector<256x16xf32>
    %c16_83 = arith.constant 16 : index
    %c0_84 = arith.constant 0 : index
    %131 = vector.load %arg11[%c16_83, %c0_84] : memref<288x48xf32, #tpu.memory_space<vmem>>, vector<256x48xf32>
    %132 = arith.truncf %131 : vector<256x48xf32> to vector<256x48xbf16>
    %c1_85 = arith.constant 1 : index
    %c0_86 = arith.constant 0 : index
    %c0_87 = arith.constant 0 : index
    %133 = vector.load %arg6[%c1_85, %c0_86, %c0_87] : memref<3x48x16xbf16, #tpu.memory_space<vmem>>, vector<1x48x16xbf16>
    %134 = vector.shape_cast %133 : vector<1x48x16xbf16> to vector<48x16xbf16>
    %cst_88 = arith.constant dense<0.000000e+00> : vector<256x16xf32>
    %135 = tpu.matmul %132, %134, %cst_88 {dimension_numbers = #tpu.dot_dimension_numbers<[1], [0], [0], [1], [0, 0, 1, 1], [], []>} : vector<256x48xbf16>, vector<48x16xbf16>, vector<256x16xf32> -> vector<256x16xf32>
    %136 = arith.addf %130, %135 : vector<256x16xf32>
    %c32_89 = arith.constant 32 : index
    %c0_90 = arith.constant 0 : index
    %137 = vector.load %arg11[%c32_89, %c0_90] : memref<288x48xf32, #tpu.memory_space<vmem>>, vector<256x48xf32>
    %138 = arith.truncf %137 : vector<256x48xf32> to vector<256x48xbf16>
    %c2_91 = arith.constant 2 : index
    %c0_92 = arith.constant 0 : index
    %c0_93 = arith.constant 0 : index
    %139 = vector.load %arg6[%c2_91, %c0_92, %c0_93] : memref<3x48x16xbf16, #tpu.memory_space<vmem>>, vector<1x48x16xbf16>
    %140 = vector.shape_cast %139 : vector<1x48x16xbf16> to vector<48x16xbf16>
    %cst_94 = arith.constant dense<0.000000e+00> : vector<256x16xf32>
    %141 = tpu.matmul %138, %140, %cst_94 {dimension_numbers = #tpu.dot_dimension_numbers<[1], [0], [0], [1], [0, 0, 1, 1], [], []>} : vector<256x48xbf16>, vector<48x16xbf16>, vector<256x16xf32> -> vector<256x16xf32>
    %142 = arith.addf %136, %141 : vector<256x16xf32>
    %c0_95 = arith.constant 0 : index
    %c0_96 = arith.constant 0 : index
    %143 = vector.load %arg7[%c0_95, %c0_96] : memref<1x16xf32, #tpu.memory_space<vmem>>, vector<1x16xf32>
    %144 = vector.broadcast %143 : vector<1x16xf32> to vector<256x16xf32>
    %145 = arith.addf %142, %144 : vector<256x16xf32>
    %cst_97 = arith.constant 1.000000e-01 : f32
    %146 = vector.broadcast %cst_97 : f32 to vector<256x16xf32>
    %147 = arith.mulf %146, %145 : vector<256x16xf32>
    %148 = arith.addf %45, %147 : vector<256x16xf32>
    %149 = arith.truncf %148 : vector<256x16xf32> to vector<256x16xbf16>
    %c0_98 = arith.constant 0 : index
    %c0_99 = arith.constant 0 : index
    %c0_100 = arith.constant 0 : index
    %150 = vector.load %arg8[%c0_98, %c0_99, %c0_100] : memref<1x256x16xbf16, #tpu.memory_space<vmem>>, vector<1x256x16xbf16>
    %151 = vector.shape_cast %150 : vector<1x256x16xbf16> to vector<256x16xbf16>
    %152 = vector.shape_cast %149 : vector<256x16xbf16> to vector<1x256x16xbf16>
    tpu.vector_store %arg8[%c0_98, %c0_99, %c0_100], %152 {strides = array<i32>} : memref<1x256x16xbf16, #tpu.memory_space<vmem>>, vector<1x256x16xbf16>,
    return
  }
  func.func @transform_0(%arg0: i32) -> (i32, i32, i32) {
    %c0_i32 = arith.constant 0 : i32
    %c0_i32_0 = arith.constant 0 : i32
    %c0_i32_1 = arith.constant 0 : i32
    return %arg0, %c0_i32, %c0_i32_0 : i32, i32, i32
  }
  func.func @transform_1(%arg0: i32) -> (i32, i32, i32) {
    %c0_i32 = arith.constant 0 : i32
    %c0_i32_0 = arith.constant 0 : i32
    %c0_i32_1 = arith.constant 0 : i32
    %c0_i32_2 = arith.constant 0 : i32
    return %c0_i32, %c0_i32_0, %c0_i32_1 : i32, i32, i32
  }
  func.func @transform_2(%arg0: i32) -> (i32, i32) {
    %c0_i32 = arith.constant 0 : i32
    %c0_i32_0 = arith.constant 0 : i32
    %c0_i32_1 = arith.constant 0 : i32
    return %c0_i32, %c0_i32_0 : i32, i32
  }
  func.func @transform_3(%arg0: i32) -> (i32, i32, i32) {
    %c0_i32 = arith.constant 0 : i32
    %c0_i32_0 = arith.constant 0 : i32
    %c0_i32_1 = arith.constant 0 : i32
    %c0_i32_2 = arith.constant 0 : i32
    return %c0_i32, %c0_i32_0, %c0_i32_1 : i32, i32, i32
  }
  func.func @transform_4(%arg0: i32) -> (i32, i32) {
    %c0_i32 = arith.constant 0 : i32
    %c0_i32_0 = arith.constant 0 : i32
    %c0_i32_1 = arith.constant 0 : i32
    return %c0_i32, %c0_i32_0 : i32, i32
  }
  func.func @transform_5(%arg0: i32) -> (i32, i32, i32) {
    %c0_i32 = arith.constant 0 : i32
    %c0_i32_0 = arith.constant 0 : i32
    %c0_i32_1 = arith.constant 0 : i32
    %c0_i32_2 = arith.constant 0 : i32
    return %c0_i32, %c0_i32_0, %c0_i32_1 : i32, i32, i32
  }
  func.func @transform_6(%arg0: i32) -> (i32, i32) {
    %c0_i32 = arith.constant 0 : i32
    %c0_i32_0 = arith.constant 0 : i32
    %c0_i32_1 = arith.constant 0 : i32
    return %c0_i32, %c0_i32_0 : i32, i32
  }
  func.func @transform_7(%arg0: i32) -> (i32, i32, i32) {
    %c0_i32 = arith.constant 0 : i32
    %c0_i32_0 = arith.constant 0 : i32
    %c0_i32_1 = arith.constant 0 : i32
    return %arg0, %c0_i32, %c0_i32_0 : i32, i32, i32
  }
}

</mosaic_0001>

<bundles_post_ra>
// kernel: tpu_custom_call.1
= control target key start
LH: loop header
LB: loop body
LE: loop exit
PB: predicated region body
PF: predicated region fallthrough
CT: control target
= control target key end

     0   :  { %s5326_s24 = smov 0   ;;  %s7447_s0 = inlined_call_operand.vmem [shape: bf16[2,256,3], index: 0, kind: input, shape index: {}]   ;;  %s7448_s1 = inlined_call_operand.vmem [shape: bf16[3,9,16], index: 1, kind: input, shape index: {}]   ;;  %s7449_s2 = inlined_call_operand.vmem [shape: f32[1,16], index: 2, kind: input, shape index: {}]   ;;  %s7450_s3 = inlined_call_operand.vmem [shape: bf16[3,48,16], index: 3, kind: input, shape index: {}]   ;;  %s7451_s4 = inlined_call_operand.vmem [shape: f32[1,16], index: 4, kind: input, shape index: {}]   ;;  %s7452_s5 = inlined_call_operand.vmem [shape: bf16[3,48,16], index: 5, kind: input, shape index: {}]   ;;  %s7453_s6 = inlined_call_operand.vmem [shape: f32[1,16], index: 6, kind: input, shape index: {}]   ;;  %s7454_s7 = inlined_call_operand.vmem [shape: bf16[2,256,16], index: 7, kind: output, shape index: {}]  }
   0x1 LB: > { %s4508_s25 = sadd.s32 4294967295, %s5277_s24   ;;  %p4512_p0 = scmp.ge.s32.totalorder %s5277_s24, 1  ;;  %s5277_s24 = sphi %s5326_s24, %s17_s24  }
   0x2   : > { %p237_p1 = scmp.lt.s32.totalorder %s5277_s24, 3 }
   0x4   : > { %p238_p2 = pnand %p4512_p0, %p237_p1 }
   0x6   : > { %241 = sbr.rel (%p238_p2) target bundleno = 1263 (0x4ef), region = 48 }
   0xb   : > { %p269_p3 = scmp.lt.s32.totalorder %s4508_s25, 1  ;;  %v312_v0 = vlaneseq  ;;  %vm5279_vm0 = vmmov 1   ;;  %s5280_s30 = smov 3   ;;  %v7560_v17 = vmov 0  ;;  %v7562_v26 = vmov 0 }
   0xc   : > { %vm5347_vm1 = vmpackc.low %vm5279_vm0, %vm5279_vm0  ;;  %v7564_v30 = vmov 0  ;;  %s5281_s8 = smov 6   ;;  %v7566_v37 = vmov 0  ;;  %v7568_v59 = vmov 0 }
   0xd   : > { %s8122_s25 = smov (!%p269_p3, %s4508_s25), 1  ;;  %v5336_v1 = vshrl.u32 %v312_v0, 7 }
   0xe   : > { %s4775_s26 = sshll.u32 %s8122_s25, 7 }
   0xf   : > { %v321_v2 = vadd.s32 64, %v5336_v1  ;;  %s5345_s29 = scalar_lea.vmem %s7447_s0, %s4775_s26  ;;  %v323_v10 = vadd.s32 80, %v5336_v1  ;;  %v329_v11 = vadd.s32 128, %v5336_v1  ;;  %v331_v16 = vadd.s32 144, %v5336_v1  ;;  %s7280_s14 = scalar_lea.vmem %s7454_s7, %s4775_s26 }
  0x10   : > { %v5352_v4 = vld [vmem:[%s5345_s29 + $0x1c] sm:$0xf]  ;;  %v5355_v5 = vld [vmem:[%s5345_s29 + $0x20] sm:$0xf]  ;;  %v5360_v9 = vld [vmem:[%s5345_s29 + $0x24] sm:$0xf] }
  0x11   : > { %v353_v6 = vand.u32 15, %v321_v2  ;;  %v646_v7 = vunpack.c.l.bf16 %v5352_v4  ;;  %v647_v8 = vunpack.c.l.bf16 %v5355_v5  ;;  %v969_v12 = vsel %vm5347_vm1, %v5360_v9, 0  ;;  %v5368_v13 = vld [vmem:[%s5345_s29 + $0x28] sm:$0xf]  ;;  %v5382_v24 = vld [vmem:[%s5345_s29 + $0x40] sm:$0xf] }
  0x12   : > { %v1001_v15 = vunpack.c.l.bf16 %v969_v12  ;;  %v648_v18 = vunpack.c.l.bf16 %v5360_v9  ;;  %v649_v19 = vunpack.c.l.bf16 %v5368_v13  ;;  %v355_v20 = vand.u32 15, %v323_v10  ;;  %v5385_v25 = vld [vmem:[%s5345_s29 + $0x44] sm:$0xf]  ;;  %v5402_v33 = vld [vmem:[%s5345_s29 + $0x48] sm:$0xf] }
  0x13   : > { %vm840_vm2 = vcmp.gt.s32.totalorder %v353_v6, 0  ;;  %v4816_v14 = vpack.i.bf16 %v647_v8, %v646_v7  ;;  %v361_v21 = vand.u32 15, %v329_v11  ;;  %v363_v27 = vand.u32 15, %v331_v16  ;;  %v5417_v41 = vld [vmem:[%s5345_s29 + $0x3c] sm:$0xf] }
  0x14   : > { %vm5372_vm3 = vmpackc.low %vm840_vm2, %vm840_vm2  ;;  %vm842_vm4 = vcmp.gt.s32.totalorder %v355_v20, 0  ;;  %v4821_v29 = vpack.i.bf16 %v649_v19, %v648_v18  ;;  %v977_v34 = vsel %vm5347_vm1, %v5385_v25, 0  ;;  %v5420_v43 = vld [vmem:[%s5345_s29 + $0x2c] sm:$0xf]  ;;  %v5423_v44 = vld [vmem:[%s5345_s29 + $0x30] sm:$0xf]  ;;  %v654_v46 = vunpack.c.l.bf16 %v5417_v41 }
  0x15   : > { %4817 = vrot.lane.b32.xlu0 %v4816_v14, %s5280_s30  ;;  %v7561_v17 = vsel %vm5372_vm3, 4294967295, %v7560_v17  ;;  %v968_v22 = vsel %vm5372_vm3, %v5355_v5, 0  ;;  %vm848_vm5 = vcmp.gt.s32.totalorder %v361_v21, 0  ;;  %vm5387_vm6 = vmpackc.low %vm842_vm4, %vm842_vm4  ;;  %vm850_vm8 = vcmp.gt.s32.totalorder %v363_v27, 0  ;;  %v5429_v49 = vld [vmem:[%s5345_s29 + $0x4c] sm:$0xf] }
  0x16   : > { %v1000_v23 = vunpack.c.l.bf16 %v968_v22  ;;  %v7563_v26 = vsel %vm5387_vm6, 4294967295, %v7562_v26  ;;  %vm5391_vm7 = vmpackc.low %vm848_vm5, %vm848_vm5  ;;  %v970_v31 = vsel %vm5387_vm6, %v5368_v13, 0  ;;  %v1009_v39 = vunpack.c.l.bf16 %v977_v34  ;;  %v5432_v50 = vld [vmem:[%s5345_s29 + $0x50] sm:$0xf]  ;;  %v5448_v62 = vld [vmem:[%s5345_s29 + $0x34] sm:$0xf] }
  0x17   : > { %v7565_v30 = vsel %vm5391_vm7, 4294967295, %v7564_v30  ;;  %v976_v32 = vsel %vm5391_vm7, %v5382_v24, 0  ;;  %v1002_v35 = vunpack.c.l.bf16 %v970_v31  ;;  %vm5408_vm9 = vmpackc.low %vm850_vm8, %vm850_vm8  ;;  %v655_v47 = vunpack.c.l.bf16 %v5382_v24  ;;  %v5451_v63 = vld [vmem:[%s5345_s29 + $0x38] sm:$0xf]  ;;  %v5481_v27 = vld [vmem:[%s5345_s29 + $0x54] sm:$0xf] }
  0x18   : > { %v4826_v28 = vpack.i.bf16 %v1001_v15, %v1000_v23  ;;  %v1008_v36 = vunpack.c.l.bf16 %v976_v32  ;;  %v7567_v37 = vsel %vm5408_vm9, 4294967295, %v7566_v37  ;;  %v978_v38 = vsel %vm5408_vm9, %v5402_v33, 0  ;;  %v5478_v23 = vld [vmem:[%s5345_s29 + $0x5c] sm:$0xf] }
  0x19   : > { %v1010_v40 = vunpack.c.l.bf16 %v978_v38  ;;  %v333_v48 = vadd.s32 160, %v5336_v1  ;;  %v650_v51 = vunpack.c.l.bf16 %v5420_v43  ;;  %v651_v52 = vunpack.c.l.bf16 %v5423_v44 }
  0x1a   : > { %4827 = vrot.lane.b32.xlu1 %v4826_v28, %s5281_s8  ;;  %v4831_v42 = vpack.i.bf16 %v1008_v36, %v1002_v35  ;;  %v4836_v53 = vpack.i.bf16 %v655_v47, %v654_v46  ;;  %v327_v55 = vadd.s32 112, %v5336_v1  ;;  %v658_v56 = vunpack.c.l.bf16 %v5429_v49  ;;  %v5484_v28 = vld [vmem:[%s5345_s29 + $0x58] sm:$0xf] }
  0x1b   : > { %v4846_v45 = vpack.i.bf16 %v1010_v40, %v1009_v39  ;;  %v365_v54 = vand.u32 15, %v333_v48  ;;  %v659_v57 = vunpack.c.l.bf16 %v5432_v50  ;;  %v656_v58 = vunpack.c.l.bf16 %v5385_v25 }
  0x1c   : > { %4837 = vrot.lane.b32.xlu2 %v4836_v53, %s5280_s30  ;;  %v359_v60 = vand.u32 15, %v327_v55  ;;  %v4851_v61 = vpack.i.bf16 %v651_v52, %v650_v51  ;;  %v657_v0 = vunpack.c.l.bf16 %v5402_v33  ;;  %v979_v2 = vsel %vm5347_vm1, %v5429_v49, 0  ;;  %v5508_v53 = vld [vmem:[%s5345_s29 + $0x60] sm:$0xf] }
  0x1d   : > { %4822 = vrot.lane.b32.xlu0 %v4821_v29, %s5280_s30  ;;  %vm852_vm10 = vcmp.gt.s32.totalorder %v365_v54, 0  ;;  %v4861_v7 = vpack.i.bf16 %v659_v57, %v658_v56  ;;  %v7570_v8 = vmov 0  ;;  %v973_v11 = vsel %vm5347_vm1, %v5448_v62, 0 }
  0x1e   : > { %vm5443_vm11 = vmpackc.low %vm852_vm10, %vm852_vm10  ;;  %vm846_vm12 = vcmp.gt.s32.totalorder %v359_v60, 0  ;;  %v4841_v10 = vpack.i.bf16 %v657_v0, %v656_v58  ;;  %v1011_v14 = vunpack.c.l.bf16 %v979_v2  ;;  %v325_v16 = vadd.s32 96, %v5336_v1  ;;  %v5513_v58 = vld [vmem:[%s5345_s29] sm:$0xf]  ;;  %v5516_v60 = vld [vmem:[%s5345_s29 + $0x4] sm:$0xf] }
  0x1f   : > { %v7569_v59 = vsel %vm5443_vm11, 4294967295, %v7568_v59  ;;  %v980_v6 = vsel %vm5443_vm11, %v5432_v50, 0  ;;  %vm5460_vm13 = vmpackc.low %vm846_vm12, %vm846_vm12  ;;  %v1005_v18 = vunpack.c.l.bf16 %v973_v11  ;;  %v971_v21 = vsel %vm5347_vm1, %v5420_v43, 0 }
  0x20   : > { %v7571_v8 = vsel %vm5460_vm13, 4294967295, %v7570_v8  ;;  %v974_v12 = vsel %vm5460_vm13, %v5451_v63, 0  ;;  %v1012_v15 = vunpack.c.l.bf16 %v980_v6  ;;  %v357_v20 = vand.u32 15, %v325_v16 }
  0x21   : > { %v1006_v19 = vunpack.c.l.bf16 %v974_v12  ;;  %v7572_v31 = vmov 0  ;;  %v1003_v32 = vunpack.c.l.bf16 %v971_v21  ;;  %v975_v34 = vsel %vm5347_vm1, %v5417_v41, 0 }
  0x22   : > { %4832 = vrot.lane.b32.xlu1 %v4831_v42, %s5281_s8  ;;  %v4866_v22 = vpack.i.bf16 %v1012_v15, %v1011_v14  ;;  %vm844_vm14 = vcmp.gt.s32.totalorder %v357_v20, 0  ;;  %v983_v35 = vsel %vm5347_vm1, %v5478_v23, 0  ;;  %v660_v38 = vunpack.c.l.bf16 %v5481_v27 }
  0x23   : > { %v4876_v29 = vpack.i.bf16 %v1006_v19, %v1005_v18  ;;  %vm5486_vm15 = vmpackc.low %vm844_vm14, %vm844_vm14  ;;  %v661_v39 = vunpack.c.l.bf16 %v5484_v28  ;;  %v1007_v42 = vunpack.c.l.bf16 %v975_v34  ;;  %v315_v47 = vadd.s32 16, %v5336_v1  ;;  %v5543_v34 = vld [vmem:[%s5345_s29 + $0x8] sm:$0xf] }
  0x24   : > { %4842 = vrot.lane.b32.xlu2 %v4841_v10, %s5280_s30  ;;  %v7573_v31 = vsel %vm5486_vm15, 4294967295, %v7572_v31  ;;  %v972_v36 = vsel %vm5486_vm15, %v5423_v44, 0  ;;  %v652_v51 = vunpack.c.l.bf16 %v5448_v62  ;;  %v653_v52 = vunpack.c.l.bf16 %v5451_v63 }
  0x25   : > { %4847 = vrot.lane.b32.xlu0 %v4846_v45, %s5281_s8  ;;  %v1004_v40 = vunpack.c.l.bf16 %v972_v36  ;;  %v1015_v45 = vunpack.c.l.bf16 %v983_v35  ;;  %v4881_v48 = vpack.i.bf16 %v661_v39, %v660_v38  ;;  %v347_v54 = vand.u32 15, %v315_v47  ;;  %v5546_v35 = vld [vmem:[%s5345_s29 + $0xc] sm:$0xf] }
  0x26   : > { %v335_v55 = vadd.s32 176, %v5336_v1  ;;  %v320_v56 = vadd.s32 56, %v5336_v1  ;;  %v662_v0 = vunpack.c.l.bf16 %v5478_v23  ;;  %v663_v2 = vunpack.c.l.bf16 %v5508_v53 }
  0x27   : > { %v4856_v46 = vpack.i.bf16 %v1004_v40, %v1003_v32  ;;  %v4891_v57 = vpack.i.bf16 %v1015_v45, %v1007_v42  ;;  %v4871_v6 = vpack.i.bf16 %v653_v52, %v652_v51  ;;  %vm834_vm0 = vcmp.gt.s32.totalorder %v347_v54, 0 }
  0x28   : > { %v352_v10 = vand.u32 15, %v320_v56  ;;  %v639_v11 = vunpack.c.l.bf16 %v5513_v58  ;;  %v640_v12 = vunpack.c.l.bf16 %v5516_v60  ;;  %v7574_v14 = vmov 0  ;;  %vm5538_vm5 = vmpackc.low %vm834_vm0, %vm834_vm0 }
  0x29   : > { %v337_v15 = vadd.s32 192, %v5336_v1  ;;  %v317_v18 = vadd.s32 32, %v5336_v1  ;;  %v345_v19 = vand.u32 15, %v5336_v1  ;;  %v4896_v20 = vpack.i.bf16 %v663_v2, %v662_v0  ;;  %v286_v0 = vld [vmem:[%s5345_s29 + $0x18] sm:$0xf] }
  0x2a   : > { %4852 = vrot.lane.b32.xlu1 %v4851_v61, %s5280_s30  ;;  %v367_v61 = vand.u32 15, %v335_v55  ;;  %vm421_vm10 = vcmp.lt.s32.totalorder %v352_v10, 15  ;;  %v4906_v36 = vpack.i.bf16 %v640_v12, %v639_v11  ;;  %v7579_v38 = vmov 0 }
  0x2b   : > { %v369_v32 = vand.u32 15, %v337_v15  ;;  %vm832_vm8 = vcmp.gt.s32.totalorder %v345_v19, 0  ;;  %v962_v39 = vsel %vm5538_vm5, %v5543_v34, 0  ;;  %v963_v40 = vsel %vm5347_vm1, %v5546_v35, 0 }
  0x2c   : > { %4857 = vrot.lane.b32.xlu2 %v4856_v46, %s5281_s8  ;;  %vm854_vm2 = vcmp.gt.s32.totalorder %v367_v61, 0  ;;  %vm5548_vm14 = vmpackc.low %vm832_vm8, %vm832_vm8  ;;  %v349_v42 = vand.u32 15, %v317_v18  ;;  %v7582_v45 = vmov 0  ;;  %v319_v46 = vadd.s32 48, %v5336_v1 }
  0x2d   : > { %4862 = vrot.lane.b32.xlu0 %v4861_v7, %s5280_s30  ;;  %v981_v7 = vsel %vm5347_vm1, %v5481_v27, 0  ;;  %vm5527_vm4 = vmpackc.low %vm854_vm2, %vm854_vm2  ;;  %vm856_vm12 = vcmp.gt.s32.totalorder %v369_v32, 0  ;;  %v7580_v38 = vsel %vm5548_vm14, 4294967295, %v7579_v38  ;;  %v641_v47 = vunpack.c.l.bf16 %v5543_v34 }
  0x2e   : > { %v7575_v14 = vsel %vm5527_vm4, 4294967295, %v7574_v14  ;;  %v982_v16 = vsel %vm5527_vm4, %v5484_v28, 0  ;;  %7581 = vst [vmem:[#allocation6_spill] sm:$0xff] %v7580_v38  ;;  %vm5558_vm0 = vmpackc.low %vm856_vm12, %vm856_vm12  ;;  %v960_v52 = vsel %vm5548_vm14, %v5513_v58, 0  ;;  %v7585_v55 = vmov 0 }
  0x2f   : > { %7576 = vst [vmem:[#allocation5_spill] sm:$0xff] %v7575_v14  ;;  %v7583_v45 = vsel %vm5558_vm0, 4294967295, %v7582_v45  ;;  %v984_v54 = vsel %vm5558_vm0, %v5508_v53, 0  ;;  %vm5572_vm2 = vmpackc.low %vm421_vm10, %vm421_vm10  ;;  %v994_v56 = vunpack.c.l.bf16 %v962_v39  ;;  %v550_v61 = vsel %vm5347_vm1, %v5355_v5, 0  ;;  %v5588_v5 = vld [vmem:[%s5345_s29 + $0x10] sm:$0xf] }
  0x30   : > { %7584 = vst [vmem:[#allocation7_spill] sm:$0xff] %v7583_v45  ;;  %v7586_v55 = vsel %vm5572_vm2, 4294967295, %v7585_v55  ;;  %vm836_vm8 = vcmp.gt.s32.totalorder %v349_v42, 0  ;;  %v351_v2 = vand.u32 15, %v319_v46  ;;  %v992_v10 = vunpack.c.l.bf16 %v960_v52 }
  0x31   : > { %v1016_v11 = vunpack.c.l.bf16 %v984_v54  ;;  %v549_v12 = vsel %vm5572_vm2, %v5352_v4, 0  ;;  %vm7478_vm10 = vcmask 72704   ;;  %v582_v15 = vunpack.c.l.bf16 %v550_v61  ;;  %vm5590_vm12 = vmpackc.low %vm836_vm8, %vm836_vm8 }
  0x32   : > { %4867 = vrot.lane.b32.xlu1 %v4866_v22, %s5281_s8  ;;  %v1013_v22 = vunpack.c.l.bf16 %v981_v7  ;;  %v548_v7 = vsel %vm5347_vm1, %v286_v0, 0  ;;  %v7587_v18 = vmov 0  ;;  %v7527_v19 = vmov 0.0  }
  0x33   : > { %v7588_v18 = vsel %vm5590_vm12, 4294967295, %v7587_v18  ;;  %386 = vst.msk [vmem:[#allocation2 + $0x40] sm:$0xff] %vm7478_vm10, %v7527_v19  ;;  %vm838_vm0 = vcmp.gt.s32.totalorder %v351_v2, 0  ;;  %vm7459_vm4 = vcmask 23552   ;;  %v581_v32 = vunpack.c.l.bf16 %v549_v12 }
  0x34   : > { %4872 = vrot.lane.b32.xlu2 %v4871_v6, %s5280_s30  ;;  %387 = vst.msk [vmem:[#allocation2 + $0x48] sm:$0xff] %vm7478_vm10, %v7527_v19  ;;  %v964_v39 = vsel %vm5590_vm12, %v5588_v5, 0  ;;  %v645_v42 = vunpack.c.l.bf16 %v286_v0  ;;  %vm5612_vm8 = vmpackc.low %vm838_vm0, %vm838_vm0  ;;  %v7589_v46 = vmov 0 }
  0x35   : > { %4877 = vrot.lane.b32.xlu0 %v4876_v29, %s5281_s8  ;;  %v1014_v29 = vunpack.c.l.bf16 %v982_v16  ;;  %388 = vst.msk [vmem:[#allocation2 + $0x50] sm:$0xff] %vm7478_vm10, %v7527_v19  ;;  %v7590_v46 = vsel %vm5612_vm8, 4294967295, %v7589_v46  ;;  %v966_v52 = vsel %vm5612_vm8, %v286_v0, 0  ;;  %v643_v0 = vunpack.c.l.bf16 %v5588_v5 }
  0x36   : > { %389 = vst.msk [vmem:[#allocation2 + $0x58] sm:$0xff] %vm7478_vm10, %v7527_v19  ;;  %v998_v2 = vunpack.c.l.bf16 %v966_v52  ;;  %v322_v52 = vadd.s32 72, %v5336_v1 }
  0x37   : > { %v4886_v51 = vpack.i.bf16 %v1014_v29, %v1013_v22  ;;  %v580_v22 = vunpack.c.l.bf16 %v548_v7  ;;  %v339_v29 = vadd.s32 208, %v5336_v1  ;;  %7591 = vst [vmem:[#allocation8_spill] sm:$0xff] %v7590_v46 }
  0x38   : > { %615 = vst.msk [vmem:[#allocation2 + $0x51] sm:$0xff] %vm7459_vm4, %v582_v15 }
  0x39   : > { %613 = vst.msk [vmem:[#allocation2 + $0x41] sm:$0xff] %vm7459_vm4, %v580_v22 }
  0x3a   : > { %4882 = vrot.lane.b32.xlu1 %v4881_v48, %s5280_s30  ;;  %v642_v48 = vunpack.c.l.bf16 %v5546_v35  ;;  %614 = vst.msk [vmem:[#allocation2 + $0x49] sm:$0xff] %vm7459_vm4, %v581_v32 }
  0x3b   : > { %378 = vst.msk [vmem:[#allocation2] sm:$0xff] %vm7478_vm10, %v7527_v19 }
  0x3c   : > { %v4911_v6 = vpack.i.bf16 %v642_v48, %v641_v47  ;;  %4887 = vrot.lane.b32.xlu2 %v4886_v51, %s5281_s8  ;;  %v371_v47 = vand.u32 15, %v339_v29  ;;  %v996_v48 = vunpack.c.l.bf16 %v964_v39  ;;  %379 = vst.msk [vmem:[#allocation2 + $0x8] sm:$0xff] %vm7478_vm10, %v7527_v19  ;;  %v328_v39 = vadd.s32 120, %v5336_v1 }
  0x3d   : > { %4892 = vrot.lane.b32.xlu0 %v4891_v57, %s5281_s8  ;;  %v995_v57 = vunpack.c.l.bf16 %v963_v40  ;;  %380 = vst.msk [vmem:[#allocation2 + $0x10] sm:$0xff] %vm7478_vm10, %v7527_v19 }
  0x3e   : > { %vm858_vm0 = vcmp.gt.s32.totalorder %v371_v47, 0  ;;  %381 = vst.msk [vmem:[#allocation2 + $0x18] sm:$0xff] %vm7478_vm10, %v7527_v19  ;;  %v967_v47 = vsel %vm5347_vm1, %v5352_v4, 0 }
  0x3f   : > { %v4916_v16 = vpack.i.bf16 %v995_v57, %v994_v56  ;;  %v5630_v56 = vld [vmem:[%s5345_s29 + $0x64] sm:$0xf]  ;;  %v5633_v57 = vld [vmem:[%s5345_s29 + $0x68] sm:$0xf]  ;;  %382 = vst.msk [vmem:[#allocation2 + $0x20] sm:$0xff] %vm7478_vm10, %v7527_v19  ;;  %vm5646_vm4 = vmpackc.low %vm858_vm0, %vm858_vm0  ;;  %v999_v4 = vunpack.c.l.bf16 %v967_v47  ;;  %v542_v47 = vsel %vm5347_vm1, %v5513_v58, 0 }
  0x40   : > { %v665_v7 = vunpack.c.l.bf16 %v5633_v57  ;;  %383 = vst.msk [vmem:[#allocation2 + $0x28] sm:$0xff] %vm7478_vm10, %v7527_v19  ;;  %v985_v12 = vsel %vm5347_vm1, %v5630_v56, 0  ;;  %v986_v15 = vsel %vm5646_vm4, %v5633_v57, 0  ;;  %v544_v58 = vsel %vm5347_vm1, %v5543_v34, 0 }
  0x41   : > { %384 = vst.msk [vmem:[#allocation2 + $0x30] sm:$0xff] %vm7478_vm10, %v7527_v19  ;;  %v1017_v29 = vunpack.c.l.bf16 %v985_v12  ;;  %v1018_v32 = vunpack.c.l.bf16 %v986_v15  ;;  %v7595_v12 = vmov 0  ;;  %v326_v15 = vadd.s32 104, %v5336_v1 }
  0x42   : > { %4897 = vrot.lane.b32.xlu1 %v4896_v20, %s5280_s30  ;;  %v5597_v20 = vld [vmem:[%s5345_s29 + $0x14] sm:$0xf]  ;;  %385 = vst.msk [vmem:[#allocation2 + $0x38] sm:$0xff] %vm7478_vm10, %v7527_v19 }
  0x43   : > { %v644_v40 = vunpack.c.l.bf16 %v5597_v20  ;;  %v965_v51 = vsel %vm5347_vm1, %v5597_v20, 0  ;;  %390 = vst.msk [vmem:[#allocation2 + $0x60] sm:$0xff] %vm7478_vm10, %v7527_v19 }
  0x44   : > { %v997_v61 = vunpack.c.l.bf16 %v965_v51  ;;  %391 = vst.msk [vmem:[#allocation2 + $0x68] sm:$0xff] %vm7478_vm10, %v7527_v19  ;;  %v316_v51 = vadd.s32 24, %v5336_v1 }
  0x45   : > { %4907 = vrot.lane.b32.xlu0 %v4906_v36, %s5280_s30  ;;  %v4901_v36 = vpack.i.bf16 %v992_v10, %v1016_v11  ;;  %v4921_v54 = vpack.i.bf16 %v645_v42, %v644_v40  ;;  %v7592_v10 = vmov 0  ;;  %392 = vst.msk [vmem:[#allocation2 + $0x70] sm:$0xff] %vm7478_vm10, %v7527_v19  ;;  %v314_v40 = vadd.s32 8, %v5336_v1 }
  0x46   : > { %v7593_v10 = vsel %vm5646_vm4, 4294967295, %v7592_v10  ;;  %v4926_v11 = vpack.i.bf16 %v998_v2, %v997_v61  ;;  %393 = vst.msk [vmem:[#allocation2 + $0x78] sm:$0xff] %vm7478_vm10, %v7527_v19  ;;  %v4936_v42 = vpack.i.bf16 %v1018_v32, %v1017_v29  ;;  %v318_v61 = vadd.s32 40, %v5336_v1 }
  0x47   : > { %4902 = vrot.lane.b32.xlu2 %v4901_v36, %s5281_s8  ;;  %7594 = vst [vmem:[#allocation9_spill] sm:$0xff] %v7593_v10  ;;  %v348_v2 = vand.u32 15, %v316_v51  ;;  %v556_v29 = vsel %vm5347_vm1, %v5451_v63, 0 }
  0x48   : > { %394 = vst.msk [vmem:[#allocation2 + $0x80] sm:$0xff] %vm7478_vm10, %v7527_v19  ;;  %v588_v51 = vunpack.c.l.bf16 %v556_v29 }
  0x49   : > { %395 = vst.msk [vmem:[#allocation2 + $0x88] sm:$0xff] %vm7478_vm10, %v7527_v19  ;;  %vm417_vm9 = vcmp.lt.s32.totalorder %v348_v2, 15  ;;  %v574_v2 = vunpack.c.l.bf16 %v542_v47 }
  0x4a   : > { %4912 = vrot.lane.b32.xlu1 %v4911_v6, %s5280_s30  ;;  %v664_v6 = vunpack.c.l.bf16 %v5630_v56  ;;  %396 = vst.msk [vmem:[#allocation2 + $0x90] sm:$0xff] %vm7478_vm10, %v7527_v19 }
  0x4b   : > { %397 = vst.msk [vmem:[#allocation2 + $0x98] sm:$0xff] %vm7478_vm10, %v7527_v19 }
  0x4c   : > { %v4931_v22 = vpack.i.bf16 %v665_v7, %v664_v6  ;;  %398 = vst.msk [vmem:[#allocation2 + $0xa0] sm:$0xff] %vm7478_vm10, %v7527_v19  ;;  %v354_v6 = vand.u32 15, %v322_v52  ;;  %v350_v7 = vand.u32 15, %v318_v61 }
  0x4d   : > { %4917 = vrot.lane.b32.xlu0 %v4916_v16, %s5281_s8  ;;  %v961_v16 = vsel %vm5347_vm1, %v5516_v60, 0  ;;  %399 = vst.msk [vmem:[#allocation2 + $0xa8] sm:$0xff] %vm7478_vm10, %v7527_v19 }
  0x4e   : > { %v993_v36 = vunpack.c.l.bf16 %v961_v16  ;;  %400 = vst.msk [vmem:[#allocation2 + $0xb0] sm:$0xff] %vm7478_vm10, %v7527_v19  ;;  %v558_v16 = vsel %vm5347_vm1, %v5382_v24, 0  ;;  %vm5734_vm7 = vcmp.lt.s32.totalorder %v354_v6, 15  ;;  %v332_v24 = vadd.s32 152, %v5336_v1 }
  0x4f   : > { %711 = vrot.lane.b32.xlu2 %v643_v0, %s5280_s30  ;;  %401 = vst.msk [vmem:[#allocation2 + $0xb8] sm:$0xff] %vm7478_vm10, %v7527_v19  ;;  %v324_v0 = vadd.s32 88, %v5336_v1  ;;  %vm419_vm13 = vcmp.lt.s32.totalorder %v350_v7, 15  ;;  %v590_v63 = vunpack.c.l.bf16 %v558_v16  ;;  %vm5771_vm15 = vmpackc.low %vm5734_vm7, %vm5734_vm7  ;;  %v546_v7 = vsel %vm5347_vm1, %v5588_v5, 0 }
  0x50   : > { %402 = vst.msk [vmem:[#allocation2 + $0xc0] sm:$0xff] %vm7478_vm10, %v7527_v19  ;;  %vm7609_vm7 = vcmask 23552   ;;  %v576_v16 = vunpack.c.l.bf16 %v544_v58  ;;  %v551_v5 = vsel %vm5771_vm15, %v5360_v9, 0  ;;  %v7616_v9 = vmov 0 }
  0x51   : > { %403 = vst.msk [vmem:[#allocation2 + $0xc8] sm:$0xff] %vm7478_vm10, %v7527_v19  ;;  %v560_v58 = vsel %vm5347_vm1, %v5402_v33, 0  ;;  %v562_v33 = vsel %vm5347_vm1, %v5432_v50, 0  ;;  %v4521_v50 = vld [vmem:[%s7448_s1 + $0x8] sm:$0xf] }
  0x52   : > { %1064 = vrot.lane.b32.xlu1 %v996_v48, %s5281_s8  ;;  %v360_v48 = vand.u32 15, %v328_v39  ;;  %404 = vst.msk [vmem:[#allocation2 + $0xd0] sm:$0xff] %vm7478_vm10, %v7527_v19 }
  0x53   : > { %405 = vst.msk [vmem:[#allocation2 + $0xd8] sm:$0xff] %vm7478_vm10, %v7527_v19 }
  0x54   : > { %vm429_vm0 = vcmp.lt.s32.totalorder %v360_v48, 15  ;;  %406 = vst.msk [vmem:[#allocation2 + $0xe0] sm:$0xff] %vm7478_vm10, %v7527_v19 }
  0x55   : > { %4922 = vrot.lane.b32.xlu0 %v4921_v54, %s5280_s30  ;;  %v346_v54 = vand.u32 15, %v314_v40  ;;  %vm5713_vm11 = vmpackc.low %vm429_vm0, %vm429_vm0  ;;  %407 = vst.msk [vmem:[#allocation2 + $0xe8] sm:$0xff] %vm7478_vm10, %v7527_v19 }
  0x56   : > { %v7596_v12 = vsel %vm5713_vm11, 4294967295, %v7595_v12  ;;  %408 = vst.msk [vmem:[#allocation2 + $0xf0] sm:$0xff] %vm7478_vm10, %v7527_v19  ;;  %v557_v39 = vsel %vm5713_vm11, %v5417_v41, 0  ;;  %v334_v41 = vadd.s32 168, %v5336_v1 }
  0x57   : > { %1058 = vrot.lane.b32.xlu2 %v993_v36, %s5281_s8  ;;  %vm415_vm4 = vcmp.lt.s32.totalorder %v346_v54, 15  ;;  %409 = vst.msk [vmem:[#allocation2 + $0xf8] sm:$0xff] %vm7478_vm10, %v7527_v19  ;;  %v589_v54 = vunpack.c.l.bf16 %v557_v39  ;;  %v552_v36 = vsel %vm5347_vm1, %v5368_v13, 0  ;;  %v578_v39 = vunpack.c.l.bf16 %v546_v7 }
  0x58   : > { %vm5728_vm0 = vmpackc.low %vm415_vm4, %vm415_vm4  ;;  %410 = vst.msk [vmem:[#allocation2 + $0x100] sm:$0xff] %vm7478_vm10, %v7527_v19  ;;  %v7629_v7 = vmov 0 }
  0x59   : > { %vm5747_vm4 = vmpackc.low %vm417_vm9, %vm417_vm9  ;;  %v543_v52 = vsel %vm5728_vm0, %v5516_v60, 0  ;;  %411 = vst.msk [vmem:[#allocation2 + $0x108] sm:$0xff] %vm7478_vm10, %v7527_v19  ;;  %v7605_v60 = vmov 0 }
  0x5a   : > { %4927 = vrot.lane.b32.xlu1 %v4926_v11, %s5281_s8  ;;  %v330_v11 = vadd.s32 136, %v5336_v1  ;;  %vm5762_vm9 = vmpackc.low %vm419_vm13, %vm419_vm13  ;;  %412 = vst.msk [vmem:[#allocation2 + $0x110] sm:$0xff] %vm7478_vm10, %v7527_v19  ;;  %v7606_v60 = vsel %vm5771_vm15, 4294967295, %v7605_v60  ;;  %v545_v34 = vsel %vm5747_vm4, %v5546_v35, 0  ;;  %v575_v6 = vunpack.c.l.bf16 %v543_v52 }
  0x5b   : > { %413 = vst.msk [vmem:[#allocation2 + $0x118] sm:$0xff] %vm7478_vm10, %v7527_v19  ;;  %v366_v35 = vand.u32 15, %v334_v41  ;;  %vm7612_vm10 = vmmov %vm7609_vm7  ;;  %v577_v29 = vunpack.c.l.bf16 %v545_v34  ;;  %v7620_v41 = vmov 0 }
  0x5c   : > { %v362_v40 = vand.u32 15, %v330_v11  ;;  %623 = vst.msk [vmem:[#allocation2 + $0x91] sm:$0xff] %vm7609_vm7, %v590_v63  ;;  %v7610_v11 = vmov 0 }
  0x5d   : > { %4932 = vrot.lane.b32.xlu0 %v4931_v22, %s5280_s30  ;;  %v356_v22 = vand.u32 15, %v324_v0  ;;  %621 = vst.msk [vmem:[#allocation2 + $0x81] sm:$0xff] %vm7612_vm10, %v588_v51  ;;  %vm7615_vm10 = vmmov %vm7609_vm7  ;;  %v584_v51 = vunpack.c.l.bf16 %v552_v36  ;;  %v592_v0 = vunpack.c.l.bf16 %v560_v58 }
  0x5e   : > { %vm5780_vm13 = vcmp.lt.s32.totalorder %v362_v40, 15  ;;  %622 = vst.msk [vmem:[#allocation2 + $0x89] sm:$0xff] %vm7609_vm7, %v589_v54  ;;  %v583_v40 = vunpack.c.l.bf16 %v551_v5  ;;  %v5283_v5 = vmov 65535  }
  0x5f   : > { %1070 = vrot.lane.b32.xlu2 %v999_v4, %s5281_s8  ;;  %vm425_vm11 = vcmp.lt.s32.totalorder %v356_v22, 15  ;;  %v364_v4 = vand.u32 15, %v332_v24  ;;  %v547_v22 = vsel %vm5762_vm9, %v5597_v20, 0  ;;  %v7613_v24 = vmov 0  ;;  %607 = vst.msk [vmem:[#allocation2 + $0x11] sm:$0xff] %vm7615_vm10, %v574_v2  ;;  %vm5813_vm15 = vmpackc.low %vm5780_vm13, %vm5780_vm13 }
  0x60   : > { %vm5788_vm3 = vmpackc.low %vm425_vm11, %vm425_vm11  ;;  %v338_v20 = vadd.s32 200, %v5336_v1  ;;  %v7617_v9 = vsel %vm5813_vm15, 4294967295, %v7616_v9  ;;  %v579_v63 = vunpack.c.l.bf16 %v547_v22  ;;  %v559_v52 = vsel %vm5813_vm15, %v5385_v25, 0 }
  0x61   : > { %v7611_v11 = vsel %vm5788_vm3, 4294967295, %v7610_v11  ;;  %vm433_vm11 = vcmp.lt.s32.totalorder %v364_v4, 15  ;;  %v553_v13 = vsel %vm5788_vm3, %v5420_v43, 0  ;;  %v7624_v2 = vmov 0 }
  0x62   : > { %4937 = vrot.lane.b32.xlu1 %v4936_v42, %s5281_s8  ;;  %v358_v42 = vand.u32 15, %v326_v15  ;;  %v336_v15 = vadd.s32 184, %v5336_v1  ;;  %vm5825_vm13 = vmpackc.low %vm433_vm11, %vm433_vm11  ;;  %v370_v54 = vand.u32 15, %v338_v20  ;;  %v591_v34 = vunpack.c.l.bf16 %v559_v52 }
  0x63   : > { %v7621_v41 = vsel %vm5825_vm13, 4294967295, %v7620_v41  ;;  %v7634_v22 = vmov 0 }
  0x64   : > { %vm427_vm6 = vcmp.lt.s32.totalorder %v358_v42, 15  ;;  %v554_v42 = vsel %vm5347_vm1, %v5423_v44, 0  ;;  %v368_v47 = vand.u32 15, %v336_v15  ;;  %v585_v44 = vunpack.c.l.bf16 %v553_v13 }
  0x65   : > { %vm5804_vm2 = vmpackc.low %vm427_vm6, %vm427_vm6  ;;  %v586_v4 = vunpack.c.l.bf16 %v554_v42 }
  0x66   : > { %v7614_v24 = vsel %vm5804_vm2, 4294967295, %v7613_v24  ;;  %vm7618_vm6 = vmmov %vm7609_vm7  ;;  %vm435_vm7 = vcmp.lt.s32.totalorder %v366_v35, 15  ;;  %v555_v43 = vsel %vm5804_vm2, %v5448_v62, 0  ;;  %v561_v62 = vsel %vm5825_vm13, %v5429_v49, 0  ;;  %v4778_v35 = vld [vmem:[%s7448_s1 + $0x8] sm:$0x10] }
  0x67   : > { %608 = vst.msk [vmem:[#allocation2 + $0x19] sm:$0xff] %vm7618_vm6, %v575_v6  ;;  %vm7619_vm10 = vmmov %vm7618_vm6  ;;  %v587_v25 = vunpack.c.l.bf16 %v555_v43  ;;  %v593_v49 = vunpack.c.l.bf16 %v561_v62  ;;  %v4522_v15 = vor.u32 %v4778_v35, %v4521_v50  ;;  %v568_v43 = vsel %vm5347_vm1, %v5633_v57, 0 }
  0x68   : > { %609 = vst.msk [vmem:[#allocation2 + $0x21] sm:$0xff] %vm7619_vm10, %v576_v16  ;;  %vm7622_vm3 = vmmov %vm7618_vm6  ;;  %v564_v16 = vsel %vm5347_vm1, %v5484_v28, 0  ;;  %v566_v28 = vsel %vm5347_vm1, %v5508_v53, 0 }
  0x69   : > { %610 = vst.msk [vmem:[#allocation2 + $0x29] sm:$0xff] %vm7622_vm3, %v577_v29  ;;  %vm7623_vm6 = vmmov %vm7622_vm3  ;;  %v598_v53 = vunpack.c.l.bf16 %v566_v28 }
  0x6a   : > { %611 = vst.msk [vmem:[#allocation2 + $0x31] sm:$0xff] %vm7623_vm6, %v578_v39  ;;  %vm5840_vm11 = vmpackc.low %vm435_vm7, %vm435_vm7  ;;  %vm439_vm7 = vcmp.lt.s32.totalorder %v370_v54, 15 }
  0x6b   : > { %v7625_v2 = vsel %vm5840_vm11, 4294967295, %v7624_v2  ;;  %vm7626_vm10 = vmmov %vm7622_vm3  ;;  %vm437_vm3 = vcmp.lt.s32.totalorder %v368_v47, 15  ;;  %617 = vst.msk [vmem:[#allocation2 + $0x61] sm:$0xff] %vm7623_vm6, %v584_v51  ;;  %v563_v6 = vsel %vm5840_vm11, %v5481_v27, 0  ;;  %v594_v27 = vunpack.c.l.bf16 %v562_v33 }
  0x6c   : > { %612 = vst.msk [vmem:[#allocation2 + $0x39] sm:$0xff] %vm7626_vm10, %v579_v63  ;;  %vm7627_vm15 = vmmov %vm7623_vm6  ;;  %v595_v36 = vunpack.c.l.bf16 %v563_v6  ;;  %v596_v47 = vunpack.c.l.bf16 %v564_v16  ;;  %v4777_v6 = vld [vmem:[%s7448_s1] sm:$0x10] }
  0x6d   : > { %616 = vst.msk [vmem:[#allocation2 + $0x59] sm:$0xff] %vm7627_vm15, %v583_v40  ;;  %vm7628_vm10 = vmmov %vm7623_vm6 }
  0x6e   : > { %618 = vst.msk [vmem:[#allocation2 + $0x69] sm:$0xff] %vm7628_vm10, %v585_v44  ;;  %vm5857_vm13 = vmpackc.low %vm437_vm3, %vm437_vm3 }
  0x6f   : > { %v7630_v7 = vsel %vm5857_vm13, 4294967295, %v7629_v7  ;;  %vm7632_vm15 = vmmov %vm7623_vm6  ;;  %vm1294_vm6 = vcmask 1043456   ;;  %v565_v39 = vsel %vm5857_vm13, %v5478_v23, 0 }
  0x70   : > { %7631 = vst [vmem:[#allocation10_spill] sm:$0xff] %v7630_v7  ;;  %vm7633_vm11 = vmmov %vm7628_vm10  ;;  %vm1295_vm10 = vcmask 1044480   ;;  %v1296_v29 = vsel %vm1294_vm6, 4294967295, %v5283_v5  ;;  %vm7493_vm6 = vcmask 48152   ;;  %v597_v23 = vunpack.c.l.bf16 %v565_v39 }
  0x71   : > { %619 = vst.msk [vmem:[#allocation2 + $0x71] sm:$0xff] %vm7632_vm15, %v586_v4  ;;  %vm5872_vm3 = vmpackc.low %vm439_vm7, %vm439_vm7  ;;  %v1297_v13 = vsel %vm1295_vm10, %v1296_v29, 0 }
  0x72   : > { %620 = vst.msk [vmem:[#allocation2 + $0x79] sm:$0xff] %vm7633_vm11, %v587_v25  ;;  %v7635_v22 = vsel %vm5872_vm3, 4294967295, %v7634_v22  ;;  %vm7637_vm15 = vmmov %vm7633_vm11  ;;  %v1299_v42 = vand.u32 %v4522_v15, %v1297_v13  ;;  %v567_v51 = vsel %vm5872_vm3, %v5630_v56, 0  ;;  %v600_v56 = vunpack.c.l.bf16 %v568_v43  ;;  %v4563_v25 = vld [vmem:[%s7448_s1 + $0x10] sm:$0xf] }
  0x73   : > { %7636 = vst [vmem:[#allocation11_spill] sm:$0xff] %v7635_v22  ;;  %vm7638_vm7 = vmmov %vm7633_vm11  ;;  %v599_v52 = vunpack.c.l.bf16 %v567_v51 }
  0x74   : > { %624 = vst.msk [vmem:[#allocation2 + $0x99] sm:$0xff] %vm7637_vm15, %v591_v34  ;;  %vm7639_vm15 = vmmov %vm7638_vm7  ;;  %4798 = vmatpush.bf16.msra.mxu1 %v1299_v42  ;;  %4799 = vmatpush.bf16.msra.mxu2 %v1299_v42  ;;  %v4779_v34 = vld [vmem:[%s7448_s1 + $0x10] sm:$0x10] }
  0x75   : > { %625 = vst.msk [vmem:[#allocation2 + $0xa1] sm:$0xff] %vm7633_vm11, %v592_v0  ;;  %1308 = vmatpush.bf16.msra.mxu0 %v1299_v42  ;;  %4800 = vmatpush.bf16.msra.mxu3 %v1299_v42  ;;  %vm7640_vm10 = vmmov %vm7638_vm7  ;;  %v4564_v33 = vor.u32 %v4779_v34, %v4563_v25  ;;  %v4541_v0 = vld [vmem:[%s7448_s1] sm:$0xf] }
  0x76   : > { %v4838_v20 = vpop.permute.xlu2 %4837  ;;  %626 = vst.msk [vmem:[#allocation2 + $0xa9] sm:$0xff] %vm7638_vm7, %v593_v49  ;;  %vm7641_vm11 = vmmov %vm7638_vm7  ;;  %v4542_v50 = vor.u32 %v4777_v6, %v4541_v0 }
  0x77   : > { %v4840_v63 = vunpack.i.h.bf16 %v4838_v20  ;;  %v4839_v40 = vunpack.i.l.bf16 %v4838_v20  ;;  %627 = vst.msk [vmem:[#allocation2 + $0xb1] sm:$0xff] %vm7639_vm15, %v594_v27  ;;  %vm7642_vm15 = vmmov %vm7638_vm7  ;;  %v1595_v49 = vand.u32 %v4564_v33, %v1297_v13 }
  0x78   : > { %628 = vst.msk [vmem:[#allocation2 + $0xb9] sm:$0xff] %vm7640_vm10, %v595_v36  ;;  %vm7643_vm3 = vmmov %vm7638_vm7  ;;  %vm7645_vm10 = vcmask 48152   ;;  %v1399_v15 = vand.u32 %v4542_v50, %v1297_v13 }
  0x79   : > { %815 = vst.msk [vmem:[#allocation2 + $0x88] sm:$0xff] %vm7493_vm6, %v4839_v40  ;;  %1604 = vmatpush.bf16.msrb.mxu2 %v1595_v49 }
  0x7a   : > { %816 = vst.msk [vmem:[#allocation2 + $0x90] sm:$0xff] %vm7493_vm6, %v4840_v63  ;;  %vm7644_vm6 = vmmov %vm7643_vm3  ;;  %1408 = vmatpush.bf16.msrb.mxu1 %v1399_v15 }
  0x7b   : > { %629 = vst.msk [vmem:[#allocation2 + $0xc1] sm:$0xff] %vm7641_vm11, %v596_v47  ;;  %vm7646_vm11 = vmmov %vm7645_vm10 }
  0x7c   : > { %630 = vst.msk [vmem:[#allocation2 + $0xc9] sm:$0xff] %vm7638_vm7, %v597_v23 }
  0x7d   : > { %631 = vst.msk [vmem:[#allocation2 + $0xd1] sm:$0xff] %vm7642_vm15, %v598_v53 }
  0x7e   : > { %v4843_v57 = vpop.permute.xlu2 %4842  ;;  %632 = vst.msk [vmem:[#allocation2 + $0xd9] sm:$0xff] %vm7643_vm3, %v599_v52  ;;  %vm7647_vm3 = vmmov %vm7645_vm10 }
  0x7f   : > { %v4845_v4 = vunpack.i.h.bf16 %v4843_v57  ;;  %633 = vst.msk [vmem:[#allocation2 + $0xe1] sm:$0xff] %vm7644_vm6, %v600_v56  ;;  %v4844_v62 = vunpack.i.l.bf16 %v4843_v57  ;;  %vm7494_vm6 = vcmask 72752   ;;  %vm7648_vm7 = vmmov %vm7647_vm3 }
  0x80   : > { %vm7649_vm15 = vmmov %vm7647_vm3 }
  0x81   : > { %818 = vst.msk [vmem:[#allocation2 + $0xa0] sm:$0xff] %vm7647_vm3, %v4845_v4 }
  0x82   : > { %817 = vst.msk [vmem:[#allocation2 + $0x98] sm:$0xff] %vm7648_vm7, %v4844_v62  ;;  %vm7652_vm7 = vmmov %vm7647_vm3 }
  0x86   : > { %v4858_v39 = vpop.permute.xlu2 %4857 }
  0x87   : > { %v4818_v44 = vpop.permute.xlu0 %4817  ;;  %v4859_v53 = vunpack.i.l.bf16 %v4858_v39 }
  0x88   : > { %v4820_v54 = vunpack.i.h.bf16 %v4818_v44  ;;  %v4819_v58 = vunpack.i.l.bf16 %v4818_v44  ;;  %v4860_v44 = vunpack.i.h.bf16 %v4858_v39 }
  0x8a   : > { %807 = vst.msk [vmem:[#allocation2 + $0x48] sm:$0xff] %vm7645_vm10, %v4819_v58  ;;  %vm7650_vm10 = vmmov %vm7647_vm3 }
  0x8b   : > { %808 = vst.msk [vmem:[#allocation2 + $0x50] sm:$0xff] %vm7646_vm11, %v4820_v54  ;;  %vm7651_vm11 = vmmov %vm7647_vm3 }
  0x8c   : > { %v4828_v35 = vpop.permute.xlu1 %4827 }
  0x8d   : > { %v4829_v27 = vunpack.i.l.bf16 %v4828_v35  ;;  %v4830_v5 = vunpack.i.h.bf16 %v4828_v35 }
  0x8e   : > { %v4873_v47 = vpop.permute.xlu2 %4872 }
  0x8f   : > { %v4823_v16 = vpop.permute.xlu0 %4822  ;;  %1161 = vst.msk [vmem:[#allocation2 + $0x4f] sm:$0xff] %vm7494_vm6, %v4829_v27  ;;  %v4875_v51 = vunpack.i.h.bf16 %v4873_v47  ;;  %v4874_v23 = vunpack.i.l.bf16 %v4873_v47 }
  0x90   : > { %v4825_v29 = vunpack.i.h.bf16 %v4823_v16  ;;  %v4824_v36 = vunpack.i.l.bf16 %v4823_v16 }
  0x91   : > { %814 = vst.msk [vmem:[#allocation2 + $0x80] sm:$0xff] %vm7651_vm11, %v4875_v51  ;;  %vm7655_vm11 = vmmov %vm7647_vm3 }
  0x92   : > { %810 = vst.msk [vmem:[#allocation2 + $0x60] sm:$0xff] %vm7649_vm15, %v4825_v29  ;;  %vm7653_vm15 = vmmov %vm7647_vm3 }
  0x93   : > { %809 = vst.msk [vmem:[#allocation2 + $0x58] sm:$0xff] %vm7650_vm10, %v4824_v36  ;;  %vm7654_vm10 = vcmask 72704  }
  0x94   : > { %1162 = vst.msk [vmem:[#allocation2 + $0x57] sm:$0xff] %vm7494_vm6, %v4830_v5  ;;  %v4833_v20 = vpop.permute.xlu1 %4832 }
  0x95   : > { %v4835_v28 = vunpack.i.h.bf16 %v4833_v20  ;;  %v4834_v63 = vunpack.i.l.bf16 %v4833_v20  ;;  %813 = vst.msk [vmem:[#allocation2 + $0x78] sm:$0xff] %vm7647_vm3, %v4874_v23 }
  0x96   : > { %v4888_v34 = vpop.permute.xlu2 %4887 }
  0x97   : > { %v4848_v40 = vpop.permute.xlu0 %4847  ;;  %1169 = vst.msk [vmem:[#allocation2 + $0x8f] sm:$0xff] %vm7494_vm6, %v4835_v28  ;;  %v4889_v36 = vunpack.i.l.bf16 %v4888_v34 }
  0x98   : > { %v4850_v13 = vunpack.i.h.bf16 %v4848_v40  ;;  %v4849_v42 = vunpack.i.l.bf16 %v4848_v40  ;;  %1163 = vst.msk [vmem:[#allocation2 + $0x5f] sm:$0xff] %vm7494_vm6, %v4834_v63  ;;  %v4890_v40 = vunpack.i.h.bf16 %v4888_v34 }
  0x9a   : > { %1171 = vst.msk [vmem:[#allocation2 + $0x9f] sm:$0xff] %vm7494_vm6, %v4850_v13 }
  0x9b   : > { %1170 = vst.msk [vmem:[#allocation2 + $0x97] sm:$0xff] %vm7494_vm6, %v4849_v42  ;;  %v1195_v58 = vld [vmem:[#allocation2 + $0x50] sm:$0xff] }
  0x9c   : > { %v4853_v43 = vpop.permute.xlu1 %4852 }
  0x9d   : > { %v4855_v52 = vunpack.i.h.bf16 %v4853_v43  ;;  %v4854_v56 = vunpack.i.l.bf16 %v4853_v43 }
  0x9f   : > { %v4863_v57 = vpop.permute.xlu0 %4862  ;;  %812 = vst.msk [vmem:[#allocation2 + $0x70] sm:$0xff] %vm7652_vm7, %v4855_v52  ;;  %v1196_v4 = vld [vmem:[#allocation2 + $0x58] sm:$0xff]  ;;  %vm7656_vm7 = vmmov %vm7654_vm10 }
  0xa0   : > { %v4865_v54 = vunpack.i.h.bf16 %v4863_v57  ;;  %811 = vst.msk [vmem:[#allocation2 + $0x68] sm:$0xff] %vm7653_vm15, %v4854_v56  ;;  %v4864_v62 = vunpack.i.l.bf16 %v4863_v57  ;;  %v5928_v25 = vpack.c.bf16 %v1196_v4, %v1195_v58  ;;  %vm7657_vm15 = vmmov %vm7647_vm3 }
  0xa1   : > { %1164 = vst.msk [vmem:[#allocation2 + $0x67] sm:$0xff] %vm7494_vm6, %v4859_v53  ;;  %v4903_v5 = vpop.permute.xlu2 %4902 }
  0xa2   : > { %v1203_v33 = vld [vmem:[#allocation2 + $0x90] sm:$0xff]  ;;  %v1204_v0 = vld [vmem:[#allocation2 + $0x98] sm:$0xff]  ;;  %1165 = vst.msk [vmem:[#allocation2 + $0x6f] sm:$0xff] %vm7494_vm6, %v4860_v44  ;;  %4527 = vmatmul.msk.bf16.vlgmr.msra.gmra.mxu1 %vm7654_vm10, %v5928_v25  ;;  %vm7658_vm10 = vmmov %vm7647_vm3  ;;  %v4905_v34 = vunpack.i.h.bf16 %v4903_v5 }
  0xa3   : > { %v5934_v6 = vpack.c.bf16 %v1204_v0, %v1203_v33  ;;  %820 = vst.msk [vmem:[#allocation2 + $0xb0] sm:$0xff] %vm7655_vm11, %v4865_v54  ;;  %vm7659_vm11 = vmmov %vm7656_vm7  ;;  %v4904_v54 = vunpack.i.l.bf16 %v4903_v5 }
  0xa4   : > { %819 = vst.msk [vmem:[#allocation2 + $0xa8] sm:$0xff] %vm7647_vm3, %v4864_v62  ;;  %v4868_v49 = vpop.permute.xlu1 %4867  ;;  %vm7660_vm3 = vmmov %vm7656_vm7 }
  0xa5   : > { %4531 = vmatmul.msk.bf16.vlgmr.msra.gmra.mxu2 %vm7656_vm7, %v5934_v6  ;;  %v4870_v50 = vunpack.i.h.bf16 %v4868_v49  ;;  %v4869_v35 = vunpack.i.l.bf16 %v4868_v49  ;;  %vm7661_vm7 = vmmov %vm7658_vm10 }
  0xa7   : > { %v4878_v27 = vpop.permute.xlu0 %4877  ;;  %1172 = vst.msk [vmem:[#allocation2 + $0xa7] sm:$0xff] %vm7494_vm6, %v4869_v35 }
  0xa8   : > { %v4880_v15 = vunpack.i.h.bf16 %v4878_v27  ;;  %v4879_v16 = vunpack.i.l.bf16 %v4878_v27  ;;  %1173 = vst.msk [vmem:[#allocation2 + $0xaf] sm:$0xff] %vm7494_vm6, %v4870_v50  ;;  %v1197_v28 = vld [vmem:[#allocation2 + $0x60] sm:$0xff] }
  0xa9   : > { %v1198_v63 = vld [vmem:[#allocation2 + $0x68] sm:$0xff]  ;;  %v712_v43 = vpop.permute.xlu2 %711 }
  0xaa   : > { %1167 = vst.msk [vmem:[#allocation2 + $0x7f] sm:$0xff] %vm7494_vm6, %v4880_v15  ;;  %v5946_v23 = vpack.c.bf16 %v1198_v63, %v1197_v28 }
  0xab   : > { %1166 = vst.msk [vmem:[#allocation2 + $0x77] sm:$0xff] %vm7494_vm6, %v4879_v16 }
  0xac   : > { %v4883_v29 = vpop.permute.xlu1 %4882  ;;  %804 = vst.msk [vmem:[#allocation2 + $0x30] sm:$0xff] %vm7661_vm7, %v712_v43 }
  0xad   : > { %v4885_v39 = vunpack.i.h.bf16 %v4883_v29  ;;  %v4884_v20 = vunpack.i.l.bf16 %v4883_v29 }
  0xae   : > { %v1205_v47 = vld [vmem:[#allocation2 + $0xa0] sm:$0xff] }
  0xaf   : > { %v4893_v13 = vpop.permute.xlu0 %4892  ;;  %822 = vst.msk [vmem:[#allocation2 + $0xc0] sm:$0xff] %vm7657_vm15, %v4885_v39  ;;  %v1206_v51 = vld [vmem:[#allocation2 + $0xa8] sm:$0xff]  ;;  %vm7662_vm15 = vmmov %vm7661_vm7 }
  0xb0   : > { %v4894_v42 = vunpack.i.l.bf16 %v4893_v13  ;;  %821 = vst.msk [vmem:[#allocation2 + $0xb8] sm:$0xff] %vm7658_vm10, %v4884_v20  ;;  %v5952_v53 = vpack.c.bf16 %v1206_v51, %v1205_v47  ;;  %v4895_v56 = vunpack.i.h.bf16 %v4893_v13  ;;  %vm7663_vm10 = vmmov %vm7661_vm7 }
  0xb1   : > { %1174 = vst.msk [vmem:[#allocation2 + $0xb7] sm:$0xff] %vm7494_vm6, %v4889_v36  ;;  %v1059_v33 = vpop.permute.xlu2 %1058 }
  0xb2   : > { %1175 = vst.msk [vmem:[#allocation2 + $0xbf] sm:$0xff] %vm7494_vm6, %v4890_v40  ;;  %4528 = vmatmul.msk.bf16.gmra.mxu1 %vm7659_vm11, %v5946_v23  ;;  %vm7664_vm11 = vmmov %vm7661_vm7  ;;  %v1199_v35 = vld [vmem:[#allocation2 + $0x70] sm:$0xff]  ;;  %v1200_v27 = vld [vmem:[#allocation2 + $0x78] sm:$0xff] }
  0xb3   : > { %1168 = vst.msk [vmem:[#allocation2 + $0x87] sm:$0xff] %vm7494_vm6, %v4894_v42  ;;  %v5968_v39 = vpack.c.bf16 %v1200_v27, %v1199_v35 }
  0xb4   : > { %v4898_v52 = vpop.permute.xlu1 %4897 }
  0xb5   : > { %4532 = vmatmul.msk.bf16.gmra.mxu2 %vm7660_vm3, %v5952_v53  ;;  %v4900_v44 = vunpack.i.h.bf16 %v4898_v52  ;;  %v4899_v57 = vunpack.i.l.bf16 %v4898_v52  ;;  %vm7665_vm3 = vmmov %vm7661_vm7 }
  0xb6   : > { %vm7666_vm7 = vmmov %vm7665_vm3 }
  0xb7   : > { %v4908_v58 = vpop.permute.xlu0 %4907  ;;  %824 = vst.msk [vmem:[#allocation2 + $0xd0] sm:$0xff] %vm7662_vm15, %v4900_v44  ;;  %vm7667_vm15 = vmmov %vm7665_vm3 }
  0xb8   : > { %v4909_v4 = vunpack.i.l.bf16 %v4908_v58  ;;  %823 = vst.msk [vmem:[#allocation2 + $0xc8] sm:$0xff] %vm7663_vm10, %v4899_v57  ;;  %v4910_v62 = vunpack.i.h.bf16 %v4908_v58  ;;  %v1207_v29 = vld [vmem:[#allocation2 + $0xb0] sm:$0xff]  ;;  %vm7668_vm10 = vcmask 72704  }
  0xb9   : > { %1176 = vst.msk [vmem:[#allocation2 + $0xc7] sm:$0xff] %vm7494_vm6, %v4895_v56  ;;  %v1208_v36 = vld [vmem:[#allocation2 + $0xb8] sm:$0xff]  ;;  %v1071_v47 = vpop.permute.xlu2 %1070 }
  0xba   : > { %1177 = vst.msk [vmem:[#allocation2 + $0xcf] sm:$0xff] %vm7494_vm6, %v4904_v54  ;;  %v5974_v20 = vpack.c.bf16 %v1208_v36, %v1207_v29  ;;  %v1201_v57 = vld [vmem:[#allocation2 + $0x80] sm:$0xff]  ;;  %v1202_v54 = vld [vmem:[#allocation2 + $0x88] sm:$0xff] }
  0xbb   : > { %800 = vst.msk [vmem:[#allocation2 + $0x10] sm:$0xff] %vm7664_vm11, %v4909_v4  ;;  %vm7669_vm11 = vmmov %vm7668_vm10  ;;  %v1185_v29 = vld [vmem:[#allocation2] sm:$0xff] }
  0xbc   : > { %801 = vst.msk [vmem:[#allocation2 + $0x18] sm:$0xff] %vm7665_vm3, %v4910_v62  ;;  %v4913_v0 = vpop.permute.xlu1 %4912 }
  0xbd   : > { %1153 = vst.msk [vmem:[#allocation2 + $0xf] sm:$0xff] %vm7494_vm6, %v4905_v34  ;;  %v4915_v49 = vunpack.i.h.bf16 %v4913_v0  ;;  %v4914_v50 = vunpack.i.l.bf16 %v4913_v0  ;;  %v5985_v0 = vpack.c.bf16 %v1202_v54, %v1201_v57  ;;  %v341_v54 = vadd.s32 224, %v5336_v1 }
  0xbe   : > { %1154 = vst.msk [vmem:[#allocation2 + $0x17] sm:$0xff] %vm7494_vm6, %v1059_v33 }
  0xbf   : > { %v4918_v15 = vpop.permute.xlu0 %4917  ;;  %802 = vst.msk [vmem:[#allocation2 + $0x20] sm:$0xff] %vm7666_vm7, %v4914_v50  ;;  %vm7670_vm7 = vmmov %vm7665_vm3 }
  0xc0   : > { %v4920_v16 = vunpack.i.h.bf16 %v4918_v15  ;;  %v4919_v5 = vunpack.i.l.bf16 %v4918_v15  ;;  %803 = vst.msk [vmem:[#allocation2 + $0x28] sm:$0xff] %vm7667_vm15, %v4915_v49  ;;  %vm7671_vm15 = vmmov %vm7668_vm10  ;;  %v1209_v34 = vld [vmem:[#allocation2 + $0xc0] sm:$0xff] }
  0xc1   : > { %v1210_v33 = vld [vmem:[#allocation2 + $0xc8] sm:$0xff] }
  0xc2   : > { %1155 = vst.msk [vmem:[#allocation2 + $0x1f] sm:$0xff] %vm7494_vm6, %v4919_v5  ;;  %4529 = vmatmul.msk.bf16.gmra.mxu1 %vm7668_vm10, %v5968_v39  ;;  %vm7672_vm10 = vmmov %vm7665_vm3  ;;  %v5991_v49 = vpack.c.bf16 %v1210_v33, %v1209_v34 }
  0xc3   : > { %1156 = vst.msk [vmem:[#allocation2 + $0x27] sm:$0xff] %vm7494_vm6, %v4920_v16 }
  0xc4   : > { %v1065_v28 = vpop.permute.xlu1 %1064  ;;  %v1186_v36 = vld [vmem:[#allocation2 + $0x8] sm:$0xff] }
  0xc5   : > { %4533 = vmatmul.msk.bf16.gmra.mxu2 %vm7669_vm11, %v5974_v20  ;;  %1157 = vst.msk [vmem:[#allocation2 + $0x2f] sm:$0xff] %vm7494_vm6, %v1065_v28  ;;  %v1187_v40 = vld [vmem:[#allocation2 + $0x10] sm:$0xff] }
  0xc7   : > { %v4923_v63 = vpop.permute.xlu0 %4922 }
  0xc8   : > { %v4925_v13 = vunpack.i.h.bf16 %v4923_v63  ;;  %v4924_v42 = vunpack.i.l.bf16 %v4923_v63 }
  0xc9   : > { %v1188_v51 = vld [vmem:[#allocation2 + $0x18] sm:$0xff] }
  0xca   : > { %805 = vst.msk [vmem:[#allocation2 + $0x38] sm:$0xff] %vm7665_vm3, %v4924_v42  ;;  %v1218_v43 = vpack.c.bf16 %v1188_v51, %v1187_v40  ;;  %v1189_v35 = vld [vmem:[#allocation2 + $0x20] sm:$0xff] }
  0xcb   : > { %806 = vst.msk [vmem:[#allocation2 + $0x40] sm:$0xff] %vm7670_vm7, %v4925_v13  ;;  %vm7673_vm7 = vmmov %vm7669_vm11  ;;  %v1217_v13 = vpack.c.bf16 %v1186_v36, %v1185_v29  ;;  %v7687_v36 = vmov 0 }
  0xcc   : > { %1160 = vst.msk [vmem:[#allocation2 + $0x47] sm:$0xff] %vm7494_vm6, %v1071_v47  ;;  %4523 = vmatmul.msk.bf16.vlgmr.msra.gmra.mxu0 %vm7671_vm15, %v1218_v43  ;;  %v4928_v52 = vpop.permute.xlu1 %4927  ;;  %v1190_v27 = vld [vmem:[#allocation2 + $0x28] sm:$0xff]  ;;  %vm7674_vm15 = vmmov %vm7673_vm7 }
  0xcd   : > { %v4930_v56 = vunpack.i.h.bf16 %v4928_v52  ;;  %v4929_v44 = vunpack.i.l.bf16 %v4928_v52  ;;  %v1219_v5 = vpack.c.bf16 %v1190_v27, %v1189_v35  ;;  %v4788_v52 = vld [vmem:[%s7450_s3 + $0x40] sm:$0xff] }
  0xce   : > { %2889 = vmatpush.bf16.msra.mxu1 %v4788_v52 }
  0xcf   : > { %v4933_v58 = vpop.permute.xlu0 %4932  ;;  %1158 = vst.msk [vmem:[#allocation2 + $0x37] sm:$0xff] %vm7494_vm6, %v4929_v44 }
  0xd0   : > { %v4935_v4 = vunpack.i.h.bf16 %v4933_v58  ;;  %v4934_v62 = vunpack.i.l.bf16 %v4933_v58  ;;  %1159 = vst.msk [vmem:[#allocation2 + $0x3f] sm:$0xff] %vm7494_vm6, %v4930_v56  ;;  %v373_v58 = vand.u32 15, %v341_v54 }
  0xd2   : > { %826 = vst.msk [vmem:[#allocation2 + $0xe0] sm:$0xff] %vm7672_vm10, %v4935_v4  ;;  %4530 = vmatmul.msk.bf16.gmra.mxu1 %vm7669_vm11, %v5985_v0  ;;  %vm7675_vm10 = vmmov %vm7673_vm7  ;;  %v307_v4 = vld [vmem:[%s5345_s29 + $0x6c] sm:$0xf] }
  0xd3   : > { %825 = vst.msk [vmem:[#allocation2 + $0xd8] sm:$0xff] %vm7665_vm3, %v4934_v62  ;;  %vm7676_vm11 = vmmov %vm7673_vm7  ;;  %v1194_v44 = vld [vmem:[#allocation2 + $0x48] sm:$0xff]  ;;  %v7682_v62 = vmov 0  ;;  %v987_v34 = vsel %vm5347_vm1, %v307_v4, 0 }
  0xd4   : > { %v4938_v50 = vpop.permute.xlu1 %4937  ;;  %vm7677_vm3 = vmmov %vm7673_vm7 }
  0xd5   : > { %4534 = vmatmul.msk.bf16.gmra.mxu2 %vm7673_vm7, %v5991_v49  ;;  %v4940_v15 = vunpack.i.h.bf16 %v4938_v50  ;;  %v4939_v16 = vunpack.i.l.bf16 %v4938_v50  ;;  %vm7678_vm7 = vmmov %vm7677_vm3  ;;  %v1019_v50 = vunpack.c.l.bf16 %v987_v34 }
  0xd6   : > { %v1191_v42 = vld [vmem:[#allocation2 + $0x30] sm:$0xff] }
  0xd7   : > { %1178 = vst.msk [vmem:[#allocation2 + $0xd7] sm:$0xff] %vm7494_vm6, %v4939_v16  ;;  %v1192_v47 = vld [vmem:[#allocation2 + $0x38] sm:$0xff]  ;;  %v1193_v56 = vld [vmem:[#allocation2 + $0x40] sm:$0xff] }
  0xd8   : > { %1179 = vst.msk [vmem:[#allocation2 + $0xdf] sm:$0xff] %vm7494_vm6, %v4940_v15  ;;  %v1220_v51 = vpack.c.bf16 %v1192_v47, %v1191_v42  ;;  %vm7680_vm6 = vmmov %vm7677_vm3  ;;  %v1221_v57 = vpack.c.bf16 %v1194_v44, %v1193_v56  ;;  %v340_v15 = vadd.s32 216, %v5336_v1  ;;  %v310_v42 = vld [vmem:[%s5345_s29 + $0x78] sm:$0xf]  ;;  %v342_v47 = vadd.s32 232, %v5336_v1 }
  0xd9   : > { %v572_v52 = vsel %vm5347_vm1, %v310_v42, 0  ;;  %v669_v44 = vunpack.c.l.bf16 %v310_v42 }
  0xda   : > { %v372_v29 = vand.u32 15, %v340_v15  ;;  %v374_v54 = vand.u32 15, %v342_v47 }
  0xdc   : > { %4524 = vmatmul.msk.bf16.gmra.mxu0 %vm7674_vm15, %v1219_v5  ;;  %vm7679_vm15 = vmmov %vm7677_vm3 }
  0xde   : > { %v1211_v28 = vld [vmem:[#allocation2 + $0xd0] sm:$0xff] }
  0xdf   : > { %v1212_v63 = vld [vmem:[#allocation2 + $0xd8] sm:$0xff] }
  0xe0   : > { %v5998_v40 = vpack.c.bf16 %v1212_v63, %v1211_v28 }
  0xe2   : > { %4535 = vmatmul.msk.bf16.vlgmr.msra.gmra.mxu3 %vm7675_vm10, %v5998_v40  ;;  %4543 = vmatmul.msk.bf16.vlgmr.msrb.gmra.mxu1 %vm7676_vm11, %v1217_v13  ;;  %vm7681_vm10 = vmmov %vm7677_vm3  ;;  %vm860_vm11 = vcmp.gt.s32.totalorder %v373_v58, 0  ;;  %v309_v13 = vld [vmem:[%s5345_s29 + $0x74] sm:$0xf]  ;;  %v604_v58 = vunpack.c.l.bf16 %v572_v52 }
  0xe3   : > { %v668_v56 = vunpack.c.l.bf16 %v309_v13 }
  0xe5   : > { %4565 = vmatmul.msk.bf16.vlgmr.msrb.gmra.mxu2 %vm7677_vm3, %v1219_v5  ;;  %v4951_v34 = vpack.i.bf16 %v669_v44, %v668_v56 }
  0xe7   : > { %4952 = vrot.lane.b32.xlu1 %v4951_v34, %s5280_s30 }
  0xec   : > { %4525 = vmatmul.msk.bf16.gmra.mxu0 %vm7678_vm7, %v1220_v51  ;;  %vm6015_vm7 = vmpackc.low %vm860_vm11, %vm860_vm11 }
  0xed   : > { %v7683_v62 = vsel %vm6015_vm7, 4294967295, %v7682_v62 }
  0xee   : > { %7684 = vst [vmem:[#allocation12_spill] sm:$0xff] %v7683_v62 }
  0xf2   : > { %4544 = vmatmul.msk.bf16.gmra.mxu1 %vm7679_vm15, %v1218_v43  ;;  %v308_v43 = vld [vmem:[%s5345_s29 + $0x70] sm:$0xf]  ;;  %vm7686_vm15 = vcmask 23552  }
  0xf3   : > { %v988_v33 = vsel %vm6015_vm7, %v308_v43, 0  ;;  %v570_v16 = vsel %vm5347_vm1, %v308_v43, 0  ;;  %vm7714_vm7 = vcmask 130048  }
  0xf4   : > { %v1020_v35 = vunpack.c.l.bf16 %v988_v33  ;;  %v666_v33 = vunpack.c.l.bf16 %v307_v4 }
  0xf5   : > { %4566 = vmatmul.msk.bf16.gmra.mxu2 %vm7680_vm6, %v1220_v51  ;;  %vm7685_vm6 = vmmov %vm7677_vm3 }
  0xf6   : > { %v4946_v27 = vpack.i.bf16 %v1020_v35, %v1019_v50  ;;  %v667_v50 = vunpack.c.l.bf16 %v308_v43 }
  0xf8   : > { %4947 = vrot.lane.b32.xlu0 %v4946_v27, %s5281_s8  ;;  %v4941_v15 = vpack.i.bf16 %v667_v50, %v666_v33 }
  0xfa   : > { %4942 = vrot.lane.b32.xlu2 %v4941_v15, %s5280_s30 }
  0xfc   : > { %4526 = vmatmul.msk.bf16.gmra.mxu0 %vm7681_vm10, %v1221_v57  ;;  %vm441_vm10 = vcmp.lt.s32.totalorder %v372_v29, 15 }
  0xfd   : > { %vm6029_vm11 = vmpackc.low %vm441_vm10, %vm441_vm10  ;;  %vm443_vm10 = vcmp.lt.s32.totalorder %v374_v54, 15 }
  0xfe   : > { %v7688_v36 = vsel %vm6029_vm11, 4294967295, %v7687_v36  ;;  %v569_v28 = vsel %vm6029_vm11, %v307_v4, 0  ;;  %v311_v4 = vld [vmem:[%s5345_s29 + $0x7c] sm:$0xf] }
  0xff   : > { %7689 = vst [vmem:[#allocation13_spill] sm:$0xff] %v7688_v36  ;;  %v601_v63 = vunpack.c.l.bf16 %v569_v28  ;;  %v344_v28 = vadd.s32 248, %v5336_v1  ;;  %v991_v47 = vsel %vm5347_vm1, %v311_v4, 0 }
 0x100   : > { %v1023_v56 = vunpack.c.l.bf16 %v991_v47  ;;  %v4787_v47 = vld [vmem:[%s7450_s3 + $0x38] sm:$0xff] }
 0x101   : > { %v376_v44 = vand.u32 15, %v344_v28  ;;  %2890 = vmatpush.bf16.msra.mxu1 %v4787_v47 }
 0x102   : > { %4545 = vmatmul.msk.bf16.gmra.mxu1 %vm7677_vm3, %v1219_v5  ;;  %v602_v5 = vunpack.c.l.bf16 %v570_v16  ;;  %vm7690_vm3 = vmmov %vm7686_vm15  ;;  %1118 = vrot.lane.b32.xlu1 %v1023_v56, %s5281_s8 }
 0x103   : > { %634 = vst.msk [vmem:[#allocation2 + $0xe9] sm:$0xff] %vm7690_vm3, %v601_v63  ;;  %v670_v63 = vunpack.c.l.bf16 %v311_v4 }
 0x104   : > { %635 = vst.msk [vmem:[#allocation2 + $0xf1] sm:$0xff] %vm7686_vm15, %v602_v5  ;;  %vm7691_vm15 = vmmov %vm7685_vm6  ;;  %v343_v5 = vadd.s32 240, %v5336_v1  ;;  %v989_v1 = vsel %vm5347_vm1, %v309_v13, 0 }
 0x105   : > { %4567 = vmatmul.msk.bf16.gmra.mxu2 %vm7685_vm6, %v1221_v57  ;;  %637 = vst.msk [vmem:[#allocation2 + $0x101] sm:$0xff] %vm7690_vm3, %v604_v58  ;;  %765 = vrot.lane.b32.xlu0 %v670_v63, %s5280_s30  ;;  %v7701_v58 = vmov 0  ;;  %v1021_v34 = vunpack.c.l.bf16 %v989_v1  ;;  %s5284_s30 = smov 16  }
 0x106   : > { %v375_v52 = vand.u32 15, %v343_v5 }
 0x112   : > { %4546 = vmatmul.msk.bf16.gmra.mxu1 %vm7685_vm6, %v1220_v51  ;;  %vm6045_vm6 = vmpackc.low %vm443_vm10, %vm443_vm10  ;;  %v7692_v51 = vmov 0 }
 0x113   : > { %v7693_v51 = vsel %vm6045_vm6, 4294967295, %v7692_v51  ;;  %v571_v35 = vsel %vm6045_vm6, %v309_v13, 0 }
 0x114   : > { %7694 = vst [vmem:[#allocation14_spill] sm:$0xff] %v7693_v51  ;;  %v603_v27 = vunpack.c.l.bf16 %v571_v35 }
 0x115   : > { %4568 = vmatmul.msk.bf16.gmra.mxu2 %vm7691_vm15, %v5928_v25  ;;  %vm7695_vm15 = vmmov %vm7690_vm3  ;;  %vm7696_vm3 = vcmask 72704  }
 0x116   : > { %636 = vst.msk [vmem:[#allocation2 + $0xf9] sm:$0xff] %vm7695_vm15, %v603_v27  ;;  %vm7697_vm10 = vmmov %vm7696_vm3  ;;  %vm862_vm15 = vcmp.gt.s32.totalorder %v375_v52, 0 }
 0x11f   : > { %v6054_v16 = vpop.f32.mrf.mxu1 }
 0x122   : > { %4547 = vmatmul.msk.bf16.gmra.mxu1 %vm7696_vm3, %v1221_v57  ;;  %vm6070_vm3 = vmpackc.low %vm862_vm15, %vm862_vm15  ;;  %v7698_v57 = vmov 0  ;;  %vm7704_vm15 = vcmask 23552  }
 0x123   : > { %v7699_v57 = vsel %vm6070_vm3, 4294967295, %v7698_v57  ;;  %v990_v54 = vsel %vm6070_vm3, %v310_v42, 0 }
 0x124   : > { %7700 = vst [vmem:[#allocation15_spill] sm:$0xff] %v7699_v57  ;;  %v1022_v33 = vunpack.c.l.bf16 %v990_v54 }
 0x125   : > { %4569 = vmatmul.msk.bf16.gmra.mxu2 %vm7697_vm10, %v5946_v23  ;;  %vm445_vm10 = vcmp.lt.s32.totalorder %v376_v44, 15 }
 0x126   : > { %vm6078_vm6 = vmpackc.low %vm445_vm10, %vm445_vm10  ;;  %v4956_v27 = vpack.i.bf16 %v1022_v33, %v1021_v34  ;;  %vm7705_vm10 = vcmask 72704  }
 0x127   : > { %v6061_v43 = vpop.f32.mrf.mxu1  ;;  %v7702_v58 = vsel %vm6078_vm6, 4294967295, %v7701_v58  ;;  %v573_v50 = vsel %vm6078_vm6, %v311_v4, 0  ;;  %vm7706_vm3 = vmmov %vm7705_vm10 }
 0x128   : > { %v6063_v29 = vpop.f32.mrf.mxu2  ;;  %7703 = vst [vmem:[#allocation16_spill] sm:$0xff] %v7702_v58  ;;  %v605_v35 = vunpack.c.l.bf16 %v573_v50  ;;  %4957 = vrot.lane.b32.xlu2 %v4956_v27, %s5281_s8  ;;  %vm7707_vm6 = vmmov %vm7706_vm3  ;;  %s5285_s8 = smov 32  }
 0x12a   : > { %638 = vst.msk [vmem:[#allocation2 + $0x109] sm:$0xff] %vm7704_vm15, %v605_v35  ;;  %vm7708_vm15 = vmmov %vm7706_vm3 }
 0x12f   : > { %v6084_v15 = vpop.f32.mrf.mxu1 }
 0x130   : > { %v6086_v5 = vpop.f32.mrf.mxu2 }
 0x132   : > { %4548 = vmatmul.msk.bf16.gmra.mxu1 %vm7705_vm10, %v5928_v25  ;;  %vm7526_vm10 = vcmask 392192  }
 0x133   : > { %1885 = vst.msk [vmem:[#allocation3 + $0x10] sm:$0xff] %vm7526_vm10, %v7527_v19 }
 0x134   : > { %1886 = vst.msk [vmem:[#allocation3 + $0x18] sm:$0xff] %vm7526_vm10, %v7527_v19 }
 0x135   : > { %4570 = vmatmul.msk.bf16.gmra.mxu2 %vm7706_vm3, %v5968_v39  ;;  %1883 = vst.msk [vmem:[#allocation3] sm:$0xff] %vm7526_vm10, %v7527_v19 }
 0x136   : > { %1884 = vst.msk [vmem:[#allocation3 + $0x8] sm:$0xff] %vm7526_vm10, %v7527_v19 }
 0x137   : > { %v6094_v13 = vpop.f32.mrf.mxu1  ;;  %1887 = vst.msk [vmem:[#allocation3 + $0x20] sm:$0xff] %vm7526_vm10, %v7527_v19 }
 0x138   : > { %v6096_v42 = vpop.f32.mrf.mxu2  ;;  %1888 = vst.msk [vmem:[#allocation3 + $0x28] sm:$0xff] %vm7526_vm10, %v7527_v19 }
 0x139   : > { %1889 = vst.msk [vmem:[#allocation3 + $0x30] sm:$0xff] %vm7526_vm10, %v7527_v19 }
 0x13a   : > { %1890 = vst.msk [vmem:[#allocation3 + $0x38] sm:$0xff] %vm7526_vm10, %v7527_v19 }
 0x13b   : > { %1891 = vst.msk [vmem:[#allocation3 + $0x40] sm:$0xff] %vm7526_vm10, %v7527_v19 }
 0x13c   : > { %1892 = vst.msk [vmem:[#allocation3 + $0x48] sm:$0xff] %vm7526_vm10, %v7527_v19 }
 0x13d   : > { %1893 = vst.msk [vmem:[#allocation3 + $0x50] sm:$0xff] %vm7526_vm10, %v7527_v19 }
 0x13e   : > { %1894 = vst.msk [vmem:[#allocation3 + $0x58] sm:$0xff] %vm7526_vm10, %v7527_v19 }
 0x13f   : > { %v6098_v4 = vpop.f32.mrf.mxu1  ;;  %1895 = vst.msk [vmem:[#allocation3 + $0x60] sm:$0xff] %vm7526_vm10, %v7527_v19 }
 0x140   : > { %v6100_v28 = vpop.f32.mrf.mxu2  ;;  %1896 = vst.msk [vmem:[#allocation3 + $0x68] sm:$0xff] %vm7526_vm10, %v7527_v19 }
 0x141   : > { %1897 = vst.msk [vmem:[#allocation3 + $0x70] sm:$0xff] %vm7526_vm10, %v7527_v19 }
 0x142   : > { %4549 = vmatmul.msk.bf16.gmra.mxu1 %vm7707_vm6, %v5946_v23  ;;  %vm7709_vm6 = vmmov %vm7706_vm3  ;;  %1898 = vst.msk [vmem:[#allocation3 + $0x78] sm:$0xff] %vm7526_vm10, %v7527_v19 }
 0x143   : > { %1899 = vst.msk [vmem:[#allocation3 + $0x80] sm:$0xff] %vm7526_vm10, %v7527_v19 }
 0x144   : > { %1900 = vst.msk [vmem:[#allocation3 + $0x88] sm:$0xff] %vm7526_vm10, %v7527_v19 }
 0x145   : > { %4571 = vmatmul.msk.bf16.gmra.mxu2 %vm7708_vm15, %v5985_v0  ;;  %vm7710_vm15 = vmmov %vm7706_vm3  ;;  %1901 = vst.msk [vmem:[#allocation3 + $0x90] sm:$0xff] %vm7526_vm10, %v7527_v19 }
 0x146   : > { %1902 = vst.msk [vmem:[#allocation3 + $0x98] sm:$0xff] %vm7526_vm10, %v7527_v19 }
 0x147   : > { %v6106_v63 = vpop.f32.mrf.mxu1  ;;  %1903 = vst.msk [vmem:[#allocation3 + $0xa0] sm:$0xff] %vm7526_vm10, %v7527_v19 }
 0x148   : > { %v6108_v25 = vpop.f32.mrf.mxu2  ;;  %1904 = vst.msk [vmem:[#allocation3 + $0xa8] sm:$0xff] %vm7526_vm10, %v7527_v19 }
 0x149   : > { %v1310_v23 = vpop.f32.mrf.mxu0  ;;  %1905 = vst.msk [vmem:[#allocation3 + $0xb0] sm:$0xff] %vm7526_vm10, %v7527_v19 }
 0x14a   : > { %1906 = vst.msk [vmem:[#allocation3 + $0xb8] sm:$0xff] %vm7526_vm10, %v7527_v19 }
 0x14b   : > { %1907 = vst.msk [vmem:[#allocation3 + $0xc0] sm:$0xff] %vm7526_vm10, %v7527_v19 }
 0x14c   : > { %1908 = vst.msk [vmem:[#allocation3 + $0xc8] sm:$0xff] %vm7526_vm10, %v7527_v19 }
 0x14d   : > { %1909 = vst.msk [vmem:[#allocation3 + $0xd0] sm:$0xff] %vm7526_vm10, %v7527_v19 }
 0x14e   : > { %1910 = vst.msk [vmem:[#allocation3 + $0xd8] sm:$0xff] %vm7526_vm10, %v7527_v19 }
 0x14f   : > { %v6113_v52 = vpop.f32.mrf.mxu1  ;;  %1911 = vst.msk [vmem:[#allocation3 + $0xe0] sm:$0xff] %vm7526_vm10, %v7527_v19 }
 0x150   : > { %v6115_v56 = vpop.f32.mrf.mxu2  ;;  %1912 = vst.msk [vmem:[#allocation3 + $0xe8] sm:$0xff] %vm7526_vm10, %v7527_v19 }
 0x151   : > { %v1312_v34 = vpop.f32.mrf.mxu0  ;;  %1913 = vst.msk [vmem:[#allocation3 + $0xf0] sm:$0xff] %vm7526_vm10, %v7527_v19 }
 0x152   : > { %4550 = vmatmul.msk.bf16.gmra.mxu1 %vm7706_vm3, %v5968_v39  ;;  %1914 = vst.msk [vmem:[#allocation3 + $0xf8] sm:$0xff] %vm7526_vm10, %v7527_v19 }
 0x153   : > { %1915 = vst.msk [vmem:[#allocation3 + $0x100] sm:$0xff] %vm7526_vm10, %v7527_v19 }
 0x154   : > { %v4943_v10 = vpop.permute.xlu2 %4942  ;;  %1916 = vst.msk [vmem:[#allocation3 + $0x108] sm:$0xff] %vm7526_vm10, %v7527_v19 }
 0x155   : > { %4572 = vmatmul.msk.bf16.gmra.mxu2 %vm7709_vm6, %v5934_v6  ;;  %1917 = vst.msk [vmem:[#allocation3 + $0x110] sm:$0xff] %vm7526_vm10, %v7527_v19  ;;  %v4944_v38 = vunpack.i.l.bf16 %v4943_v10 }
 0x156   : > { %1918 = vst.msk [vmem:[#allocation3 + $0x118] sm:$0xff] %vm7526_vm10, %v7527_v19 }
 0x157   : > { %v6123_v44 = vpop.f32.mrf.mxu1  ;;  %3169 = vst.msk [vmem:[#allocation4] sm:$0xff] %vm7526_vm10, %v7527_v19 }
 0x158   : > { %v6125_v1 = vpop.f32.mrf.mxu2  ;;  %3170 = vst.msk [vmem:[#allocation4 + $0x8] sm:$0xff] %vm7526_vm10, %v7527_v19 }
 0x159   : > { %v1315_v47 = vpop.f32.mrf.mxu0  ;;  %3171 = vst.msk [vmem:[#allocation4 + $0x10] sm:$0xff] %vm7526_vm10, %v7527_v19 }
 0x15a   : > { %3172 = vst.msk [vmem:[#allocation4 + $0x18] sm:$0xff] %vm7526_vm10, %v7527_v19 }
 0x15b   : > { %3173 = vst.msk [vmem:[#allocation4 + $0x20] sm:$0xff] %vm7526_vm10, %v7527_v19 }
 0x15c   : > { %3174 = vst.msk [vmem:[#allocation4 + $0x28] sm:$0xff] %vm7526_vm10, %v7527_v19 }
 0x15d   : > { %3175 = vst.msk [vmem:[#allocation4 + $0x30] sm:$0xff] %vm7526_vm10, %v7527_v19 }
 0x15e   : > { %3176 = vst.msk [vmem:[#allocation4 + $0x38] sm:$0xff] %vm7526_vm10, %v7527_v19 }
 0x15f   : > { %v1410_v39 = vpop.f32.mrf.mxu1  ;;  %3177 = vst.msk [vmem:[#allocation4 + $0x40] sm:$0xff] %vm7526_vm10, %v7527_v19 }
 0x160   : > { %v6143_v54 = vpop.f32.mrf.mxu2  ;;  %v1411_v33 = vadd.f32 %v1410_v39, %v1310_v23  ;;  %3178 = vst.msk [vmem:[#allocation4 + $0x48] sm:$0xff] %vm7526_vm10, %v7527_v19 }
 0x161   : > { %3179 = vst.msk [vmem:[#allocation4 + $0x50] sm:$0xff] %vm7526_vm10, %v7527_v19 }
 0x162   : > { %4551 = vmatmul.msk.bf16.gmra.mxu1 %vm7710_vm15, %v5985_v0  ;;  %v6166_v0 = vld [vmem:[%s7449_s2] ss:$0 sm:$0xff]  ;;  %vm7713_vm15 = vmmov %vm7706_vm3  ;;  %3180 = vst.msk [vmem:[#allocation4 + $0x58] sm:$0xff] %vm7526_vm10, %v7527_v19 }
 0x163   : > { %3181 = vst.msk [vmem:[#allocation4 + $0x60] sm:$0xff] %vm7526_vm10, %v7527_v19 }
 0x165   : > { %4573 = vmatmul.msk.bf16.gmra.mxu2 %vm7706_vm3, %v5952_v53 }
 0x167   : > { %v1412_v50 = vpop.f32.mrf.mxu1 }
 0x168   : > { %v1606_v35 = vpop.f32.mrf.mxu2 }
 0x169   : > { %v1686_v27 = vadd.f32 %v1606_v35, %v1411_v33  ;;  %v1413_v33 = vadd.f32 %v1412_v50, %v1312_v34 }
 0x16a   : > { %v4948_v22 = vpop.permute.xlu0 %4947 }
 0x16b   : > { %v6177_v23 = vadd.f32 %v6166_v0, %v1686_v27  ;;  %v4949_v45 = vunpack.i.l.bf16 %v4948_v22 }
 0x16d   : > { %7711 = vst [vmem:[#allocation17_spill] sm:$0xff] %v6177_v23  ;;  %vm1754_vm6 = vcmp.gt.f32.partialorder %v6177_v23, 0.0  ;;  %v1786_v39 = vmul.f32 0.2, %v6177_v23 }
 0x16f   : > { %v1818_v35 = vsel %vm1754_vm6, %v6177_v23, %v1786_v39  ;;  %v1415_v27 = vpop.f32.mrf.mxu1 }
 0x170   : > { %v1608_v58 = vpop.f32.mrf.mxu2  ;;  %v1850_v57 = vpack.c.bf16 %v1818_v35, %v1818_v35 }
 0x171   : > { %v1687_v51 = vadd.f32 %v1608_v58, %v1413_v33  ;;  %v1317_v58 = vpop.f32.mrf.mxu0 }
 0x172   : > { %v1919_v62 = vsel %vm5347_vm1, %v1850_v57, 0  ;;  %4552 = vmatmul.msk.bf16.gmra.mxu1 %vm7706_vm3, %v5934_v6  ;;  %v1416_v6 = vadd.f32 %v1415_v27, %v1315_v47  ;;  %v2209_v36 = vsel %vm5548_vm14, %v1850_v57, 0  ;;  %v4945_v27 = vunpack.i.h.bf16 %v4943_v10 }
 0x173   : > { %v6201_v34 = vadd.f32 %v6166_v0, %v1687_v51  ;;  %v1951_v50 = vunpack.c.l.bf16 %v1919_v62  ;;  %v2241_v57 = vunpack.c.l.bf16 %v2209_v36 }
 0x175   : > { %7712 = vst [vmem:[#allocation18_spill] sm:$0xff] %v6201_v34  ;;  %vm1755_vm6 = vcmp.gt.f32.partialorder %v6201_v34, 0.0  ;;  %v1787_v39 = vmul.f32 0.2, %v6201_v34  ;;  %4574 = vmatmul.msk.bf16.gmra.mxu2 %vm7713_vm15, %v5974_v20 }
 0x176   : > { %1984 = vst.msk [vmem:[#allocation3 + $0x11] sm:$0xff] %vm7714_vm7, %v1951_v50  ;;  %vm7716_vm7 = vcmask 48152  }
 0x177   : > { %v1819_v62 = vsel %vm1755_vm6, %v6201_v34, %v1787_v39  ;;  %v1417_v51 = vpop.f32.mrf.mxu1  ;;  %828 = vst.msk [vmem:[#allocation2 + $0xf0] sm:$0xff] %vm7716_vm7, %v4945_v27  ;;  %vm7717_vm3 = vmmov %vm7716_vm7  ;;  %vm7718_vm6 = vcmask 72752  }
 0x178   : > { %v1611_v33 = vpop.f32.mrf.mxu2  ;;  %v6219_v23 = vpack.c.bf16 %v1819_v62, %v1819_v62  ;;  %827 = vst.msk [vmem:[#allocation2 + $0xe8] sm:$0xff] %vm7717_vm3, %v4944_v38  ;;  %v1418_v36 = vadd.f32 %v1417_v51, %v1317_v58  ;;  %vm7719_vm7 = vmmov %vm7718_vm6 }
 0x179   : > { %v1688_v50 = vadd.f32 %v1611_v33, %v1416_v6  ;;  %v4961_v6 = vpack.i.bf16 %v1819_v62, %v1818_v35  ;;  %v4950_v33 = vunpack.i.h.bf16 %v4948_v22  ;;  %v1320_v10 = vpop.f32.mrf.mxu0  ;;  %1180 = vst.msk [vmem:[#allocation2 + $0xe7] sm:$0xff] %vm7719_vm7, %v4949_v45 }
 0x17a   : > { %v2210_v47 = vsel %vm5347_vm1, %v6219_v23, 0 }
 0x17b   : > { %v6233_v39 = vadd.f32 %v6166_v0, %v1688_v50  ;;  %v2242_v34 = vunpack.c.l.bf16 %v2210_v47  ;;  %4962 = vrot.lane.b32.xlu2 %v4961_v6, %s5284_s30  ;;  %1181 = vst.msk [vmem:[#allocation2 + $0xef] sm:$0xff] %vm7718_vm6, %v4950_v33 }
 0x17d   : > { %7715 = vst [vmem:[#allocation19_spill] sm:$0xff] %v6233_v39  ;;  %vm1756_vm15 = vcmp.gt.f32.partialorder %v6233_v39, 0.0  ;;  %v1788_v7 = vmul.f32 0.2, %v6233_v39  ;;  %v4966_v14 = vpack.i.bf16 %v2242_v34, %v2241_v57 }
 0x17f   : > { %4967 = vrot.lane.b32.xlu1 %v4966_v14, %s5285_s8  ;;  %v1820_v35 = vsel %vm1756_vm15, %v6233_v39, %v1788_v7  ;;  %v1420_v22 = vpop.f32.mrf.mxu1  ;;  %vm7721_vm15 = vcmask 72704  }
 0x180   : > { %v1613_v62 = vpop.f32.mrf.mxu2  ;;  %v6246_v50 = vpack.c.bf16 %v1820_v35, %v1820_v35  ;;  %vm7722_vm3 = vmmov %vm7721_vm15  ;;  %v1421_v47 = vadd.f32 %v1420_v22, %v1320_v10  ;;  %v4953_v35 = vpop.permute.xlu1 %4952 }
 0x181   : > { %v1689_v38 = vadd.f32 %v1613_v62, %v1418_v36  ;;  %vm7723_vm7 = vmmov %vm7722_vm3  ;;  %v1322_v10 = vpop.f32.mrf.mxu0  ;;  %v4955_v62 = vunpack.i.h.bf16 %v4953_v35 }
 0x182   : > { %v2018_v34 = vunpack.c.l.bf16 %v6246_v50  ;;  %v2211_v14 = vsel %vm5538_vm5, %v6246_v50, 0  ;;  %4553 = vmatmul.msk.bf16.gmra.mxu1 %vm7721_vm15, %v5952_v53  ;;  %v1514_v53 = vld [vmem:[#allocation2 + $0xe0] sm:$0xff]  ;;  %v1515_v51 = vld [vmem:[#allocation2 + $0xe8] sm:$0xff] }
 0x183   : > { %v6259_v45 = vadd.f32 %v6166_v0, %v1689_v38  ;;  %v2243_v7 = vunpack.c.l.bf16 %v2211_v14  ;;  %v6277_v27 = vpack.c.bf16 %v1515_v51, %v1514_v53  ;;  %v4958_v38 = vpop.permute.xlu2 %4957  ;;  %v4954_v14 = vunpack.i.l.bf16 %v4953_v35 }
 0x184   : > { %2084 = vrot.lane.b32.xlu0 %v2018_v34, %s5284_s30 }
 0x185   : > { %7720 = vst [vmem:[#allocation20_spill] sm:$0xff] %v6259_v45  ;;  %v1789_v58 = vmul.f32 0.2, %v6259_v45  ;;  %4575 = vmatmul.msk.bf16.gmra.mxu2 %vm7722_vm3, %v5991_v49  ;;  %vm1757_vm6 = vcmp.gt.f32.partialorder %v6259_v45, 0.0  ;;  %2309 = vrot.lane.b32.xlu2 %v2243_v7, %s5285_s8  ;;  %v4960_v7 = vunpack.i.h.bf16 %v4958_v38  ;;  %vm7725_vm3 = vcmask 48152  }
 0x186   : > { %4536 = vmatmul.msk.bf16.gmra.mxu3 %vm7723_vm7, %v6277_v27  ;;  %830 = vst.msk [vmem:[#allocation2 + $0x100] sm:$0xff] %vm7725_vm3, %v4955_v62  ;;  %vm7727_vm7 = vcmask 72752  }
 0x187   : > { %v1422_v57 = vpop.f32.mrf.mxu1  ;;  %v1821_v36 = vsel %vm1757_vm6, %v6259_v45, %v1789_v58  ;;  %v4959_v58 = vunpack.i.l.bf16 %v4958_v38  ;;  %vm7726_vm6 = vmmov %vm7725_vm3  ;;  %v7729_v45 = vmov 0.0   ;;  %vm7730_vm3 = vcmask 392192  }
 0x188   : > { %v1616_v6 = vpop.f32.mrf.mxu2  ;;  %v6295_v34 = vpack.c.bf16 %v1821_v36, %v1821_v36  ;;  %829 = vst.msk [vmem:[#allocation2 + $0xf8] sm:$0xff] %vm7726_vm6, %v4954_v14  ;;  %v1423_v51 = vadd.f32 %v1422_v57, %v1322_v10  ;;  %vm7728_vm10 = vmmov %vm7727_vm7  ;;  %vm7733_vm6 = vcmask 72704  }
 0x189   : > { %v1690_v33 = vadd.f32 %v1616_v6, %v1421_v47  ;;  %1183 = vst.msk [vmem:[#allocation2 + $0xff] sm:$0xff] %vm7727_vm7, %v4960_v7  ;;  %v1325_v7 = vpop.f32.mrf.mxu0  ;;  %vm7735_vm7 = vmmov %vm7730_vm3 }
 0x18a   : > { %v2212_v38 = vsel %vm5347_vm1, %v6295_v34, 0  ;;  %1182 = vst.msk [vmem:[#allocation2 + $0xf7] sm:$0xff] %vm7728_vm10, %v4959_v58  ;;  %vm7734_vm10 = vmmov %vm7730_vm3 }
 0x18b   : > { %v6291_v22 = vadd.f32 %v6166_v0, %v1690_v33  ;;  %3182 = vst.msk [vmem:[#allocation4 + $0x68] sm:$0xff] %vm7730_vm3, %v7729_v45  ;;  %v2244_v62 = vunpack.c.l.bf16 %v2212_v38 }
 0x18c   : > { %3184 = vst.msk [vmem:[#allocation4 + $0x78] sm:$0xff] %vm7734_vm10, %v7729_v45  ;;  %vm7738_vm10 = vmmov %vm7735_vm7 }
 0x18d   : > { %7724 = vst [vmem:[#allocation21_spill] sm:$0xff] %v6291_v22  ;;  %vm1758_vm15 = vcmp.gt.f32.partialorder %v6291_v22, 0.0  ;;  %v1790_v53 = vmul.f32 0.2, %v6291_v22 }
 0x18e   : > { %3185 = vst.msk [vmem:[#allocation4 + $0x80] sm:$0xff] %vm7735_vm7, %v7729_v45 }
 0x18f   : > { %v1822_v47 = vsel %vm1758_vm15, %v6291_v22, %v1790_v53  ;;  %v1425_v6 = vpop.f32.mrf.mxu1  ;;  %vm7731_vm15 = vmmov %vm7730_vm3  ;;  %3187 = vst.msk [vmem:[#allocation4 + $0x90] sm:$0xff] %vm7738_vm10, %v7729_v45  ;;  %vm7741_vm10 = vcmask 72704  }
 0x190   : > { %v1618_v33 = vpop.f32.mrf.mxu2  ;;  %v6305_v35 = vpack.c.bf16 %v1822_v47, %v1822_v47  ;;  %3183 = vst.msk [vmem:[#allocation4 + $0x70] sm:$0xff] %vm7731_vm15, %v7729_v45  ;;  %v4971_v58 = vpack.i.bf16 %v1822_v47, %v1821_v36  ;;  %vm7736_vm3 = vmmov %vm7733_vm6 }
 0x191   : > { %v1691_v19 = vadd.f32 %v1618_v33, %v1423_v51  ;;  %vm7737_vm15 = vmmov %vm7735_vm7  ;;  %v1516_v36 = vld [vmem:[#allocation2 + $0xf0] sm:$0xff]  ;;  %v1517_v51 = vld [vmem:[#allocation2 + $0xf8] sm:$0xff]  ;;  %3188 = vst.msk [vmem:[#allocation4 + $0x98] sm:$0xff] %vm7735_vm7, %v7729_v45 }
 0x192   : > { %v2213_v57 = vsel %vm5590_vm12, %v6305_v35, 0  ;;  %4554 = vmatmul.msk.bf16.gmra.mxu1 %vm7733_vm6, %v5974_v20  ;;  %3186 = vst.msk [vmem:[#allocation4 + $0x88] sm:$0xff] %vm7737_vm15, %v7729_v45  ;;  %4972 = vrot.lane.b32.xlu0 %v4971_v58, %s5284_s30  ;;  %v1426_v20 = vadd.f32 %v1425_v6, %v1325_v7  ;;  %v6339_v38 = vpack.c.bf16 %v1517_v51, %v1516_v36  ;;  %v766_v7 = vpop.permute.xlu0 %765 }
 0x193   : > { %v6319_v10 = vadd.f32 %v6166_v0, %v1691_v19  ;;  %v2245_v14 = vunpack.c.l.bf16 %v2213_v57 }
 0x195   : > { %7732 = vst [vmem:[#allocation22_spill] sm:$0xff] %v6319_v10  ;;  %v1791_v53 = vmul.f32 0.2, %v6319_v10  ;;  %4576 = vmatmul.msk.bf16.gmra.mxu2 %vm7736_vm3, %v5998_v40  ;;  %v4976_v19 = vpack.i.bf16 %v2245_v14, %v2244_v62  ;;  %vm1759_vm6 = vcmp.gt.f32.partialorder %v6319_v10, 0.0  ;;  %vm7739_vm3 = vmmov %vm7735_vm7 }
 0x196   : > { %3189 = vst.msk [vmem:[#allocation4 + $0xa0] sm:$0xff] %vm7739_vm3, %v7729_v45  ;;  %vm7740_vm15 = vmmov %vm7739_vm3  ;;  %4537 = vmatmul.msk.bf16.gmra.mxu3 %vm7741_vm10, %v6339_v38 }
 0x197   : > { %4977 = vrot.lane.b32.xlu1 %v4976_v19, %s5285_s8  ;;  %v1427_v47 = vpop.f32.mrf.mxu1  ;;  %v1823_v62 = vsel %vm1759_vm6, %v6319_v10, %v1791_v53  ;;  %3190 = vst.msk [vmem:[#allocation4 + $0xa8] sm:$0xff] %vm7740_vm15, %v7729_v45  ;;  %vm7742_vm12 = vmmov %vm7739_vm3  ;;  %vm7745_vm15 = vcmask 48152   ;;  %v1119_v53 = vpop.permute.xlu1 %1118 }
 0x198   : > { %v1621_v33 = vpop.f32.mrf.mxu2  ;;  %3191 = vst.msk [vmem:[#allocation4 + $0xb0] sm:$0xff] %vm7742_vm12, %v7729_v45  ;;  %vm7744_vm7 = vmmov %vm7739_vm3  ;;  %v1855_v14 = vpack.c.bf16 %v1823_v62, %v1823_v62  ;;  %v1327_v19 = vpop.f32.mrf.mxu0  ;;  %vm7746_vm12 = vcmask 72752  }
 0x199   : > { %v1692_v57 = vadd.f32 %v1621_v33, %v1426_v20  ;;  %3192 = vst.msk [vmem:[#allocation4 + $0xb8] sm:$0xff] %vm7744_vm7, %v7729_v45  ;;  %v1428_v20 = vadd.f32 %v1427_v47, %v1327_v19  ;;  %vm7747_vm10 = vmmov %vm7739_vm3 }
 0x19a   : > { %3193 = vst.msk [vmem:[#allocation4 + $0xc0] sm:$0xff] %vm7739_vm3, %v7729_v45  ;;  %v2214_v10 = vsel %vm5347_vm1, %v1855_v14, 0  ;;  %vm7748_vm7 = vmmov %vm7739_vm3  ;;  %v1924_v22 = vsel %vm5762_vm9, %v1855_v14, 0 }
 0x19b   : > { %v6351_v6 = vadd.f32 %v6166_v0, %v1692_v57  ;;  %831 = vst.msk [vmem:[#allocation2 + $0x108] sm:$0xff] %vm7745_vm15, %v766_v7  ;;  %vm7750_vm15 = vcmask 72704   ;;  %v1956_v14 = vunpack.c.l.bf16 %v1924_v22 }
 0x19c   : > { %1184 = vst.msk [vmem:[#allocation2 + $0x107] sm:$0xff] %vm7746_vm12, %v1119_v53  ;;  %v2246_v53 = vunpack.c.l.bf16 %v2214_v10  ;;  %vm7751_vm12 = vmmov %vm7739_vm3 }
 0x19d   : > { %7743 = vst [vmem:[#allocation23_spill] sm:$0xff] %v6351_v6  ;;  %vm1760_vm6 = vcmp.gt.f32.partialorder %v6351_v6, 0.0  ;;  %v1792_v58 = vmul.f32 0.2, %v6351_v6 }
 0x19e   : > { %3194 = vst.msk [vmem:[#allocation4 + $0xc8] sm:$0xff] %vm7747_vm10, %v7729_v45  ;;  %vm7752_vm10 = vmmov %vm7739_vm3 }
 0x19f   : > { %v1824_v36 = vsel %vm1760_vm6, %v6351_v6, %v1792_v58  ;;  %v1430_v51 = vpop.f32.mrf.mxu1  ;;  %3195 = vst.msk [vmem:[#allocation4 + $0xd0] sm:$0xff] %vm7748_vm7, %v7729_v45  ;;  %vm7749_vm6 = vmmov %vm7739_vm3 }
 0x1a0   : > { %v1623_v33 = vpop.f32.mrf.mxu2  ;;  %v1856_v57 = vpack.c.bf16 %v1824_v36, %v1824_v36  ;;  %3196 = vst.msk [vmem:[#allocation4 + $0xd8] sm:$0xff] %vm7739_vm3, %v7729_v45  ;;  %v4981_v6 = vpack.i.bf16 %v1824_v36, %v1823_v62  ;;  %vm7753_vm3 = vmmov %vm7750_vm15  ;;  %v1923_v36 = vsel %vm5347_vm1, %v6305_v35, 0 }
 0x1a1   : > { %v1693_v7 = vadd.f32 %v1623_v33, %v1428_v20  ;;  %3197 = vst.msk [vmem:[#allocation4 + $0xe0] sm:$0xff] %vm7749_vm6, %v7729_v45  ;;  %v1920_v20 = vsel %vm5728_vm0, %v6219_v23, 0  ;;  %v1921_v33 = vsel %vm5347_vm1, %v6246_v50, 0  ;;  %v4786_v23 = vld [vmem:[%s7450_s3 + $0x30] sm:$0xff]  ;;  %v1922_v50 = vsel %vm5747_vm4, %v6295_v34, 0 }
 0x1a2   : > { %v2215_v47 = vsel %vm5612_vm8, %v1856_v57, 0  ;;  %4555 = vmatmul.msk.bf16.gmra.mxu1 %vm7750_vm15, %v5991_v49  ;;  %3198 = vst.msk [vmem:[#allocation4 + $0xe8] sm:$0xff] %vm7751_vm12, %v7729_v45  ;;  %4982 = vrot.lane.b32.xlu2 %v4981_v6, %s5284_s30  ;;  %v1952_v62 = vunpack.c.l.bf16 %v1920_v20  ;;  %vm7754_vm15 = vmmov %vm7749_vm6  ;;  %v1953_v34 = vunpack.c.l.bf16 %v1921_v33  ;;  %v1925_v35 = vsel %vm5347_vm1, %v1856_v57, 0 }
 0x1a3   : > { %v6375_v58 = vadd.f32 %v6166_v0, %v1693_v7  ;;  %v2247_v19 = vunpack.c.l.bf16 %v2215_v47  ;;  %3199 = vst.msk [vmem:[#allocation4 + $0xf0] sm:$0xff] %vm7752_vm10, %v7729_v45  ;;  %v1518_v7 = vld [vmem:[#allocation2 + $0x100] sm:$0xff]  ;;  %v1519_v47 = vld [vmem:[#allocation2 + $0x108] sm:$0xff]  ;;  %2891 = vmatpush.bf16.msra.mxu1 %v4786_v23  ;;  %vm7755_vm12 = vmmov %vm7749_vm6  ;;  %v1955_v33 = vunpack.c.l.bf16 %v1923_v36  ;;  %v1957_v57 = vunpack.c.l.bf16 %v1925_v35 }
 0x1a4   : > { %3200 = vst.msk [vmem:[#allocation4 + $0xf8] sm:$0xff] %vm7749_vm6, %v7729_v45  ;;  %v6412_v46 = vpack.c.bf16 %v1519_v47, %v1518_v7  ;;  %vm7756_vm10 = vmmov %vm7749_vm6 }
 0x1a5   : > { %vm1761_vm7 = vcmp.gt.f32.partialorder %v6375_v58, 0.0  ;;  %v1793_v49 = vmul.f32 0.2, %v6375_v58  ;;  %4577 = vmatmul.msk.bf16.gmra.mxu2 %vm7753_vm3, %v6277_v27  ;;  %v4986_v10 = vpack.i.bf16 %v2247_v19, %v2246_v53  ;;  %v1431_v53 = vadd.f32 %v1430_v51, %v6054_v16  ;;  %3201 = vst.msk [vmem:[#allocation4 + $0x100] sm:$0xff] %vm7754_vm15, %v7729_v45 }
 0x1a6   : > { %3202 = vst.msk [vmem:[#allocation4 + $0x108] sm:$0xff] %vm7755_vm12, %v7729_v45  ;;  %v1954_v16 = vunpack.c.l.bf16 %v1922_v50  ;;  %4538 = vmatmul.msk.bf16.gmra.mxu3 %vm7753_vm3, %v6412_v46  ;;  %vm7758_vm15 = vcmask 130048  }
 0x1a7   : > { %4987 = vrot.lane.b32.xlu0 %v4986_v10, %s5285_s8  ;;  %v1825_v19 = vsel %vm1761_vm7, %v6375_v58, %v1793_v49  ;;  %v1432_v6 = vpop.f32.mrf.mxu1  ;;  %3203 = vst.msk [vmem:[#allocation4 + $0x110] sm:$0xff] %vm7756_vm10, %v7729_v45  ;;  %vm7757_vm7 = vnez %v7586_v55  ;;  %vm7759_vm12 = vmmov %vm7758_vm15 }
 0x1a8   : > { %v1626_v20 = vpop.f32.mrf.mxu2  ;;  %v1857_v39 = vpack.c.bf16 %v1825_v19, %v1825_v19  ;;  %3204 = vst.msk [vmem:[#allocation4 + $0x118] sm:$0xff] %vm7749_vm6, %v7729_v45  ;;  %v1433_v45 = vadd.f32 %v1432_v6, %v6061_v43 }
 0x1a9   : > { %v1694_v51 = vadd.f32 %v1626_v20, %v1431_v53  ;;  %1985 = vst.msk [vmem:[#allocation3 + $0x19] sm:$0xff] %vm7758_vm15, %v1952_v62 }
 0x1aa   : > { %v1926_v49 = vsel %vm7757_vm7, %v1857_v39, 0  ;;  %1986 = vst.msk [vmem:[#allocation3 + $0x21] sm:$0xff] %vm7759_vm12, %v1953_v34  ;;  %vm7760_vm7 = vmmov %vm7759_vm12  ;;  %v2216_v36 = vsel %vm5347_vm1, %v1857_v39, 0  ;;  %v4785_v34 = vld [vmem:[%s7450_s3 + $0x28] sm:$0xff]  ;;  %vm7765_vm12 = vnez %v7561_v17 }
 0x1ab   : > { %v6427_v10 = vadd.f32 %v6166_v0, %v1694_v51  ;;  %v1958_v7 = vunpack.c.l.bf16 %v1926_v49  ;;  %1987 = vst.msk [vmem:[#allocation3 + $0x29] sm:$0xff] %vm7760_vm7, %v1954_v16  ;;  %vm7761_vm3 = vmmov %vm7760_vm7  ;;  %v2248_v16 = vunpack.c.l.bf16 %v2216_v36  ;;  %2569 = vmatpush.bf16.msrb.mxu3 %v4785_v34 }
 0x1ac   : > { %1988 = vst.msk [vmem:[#allocation3 + $0x31] sm:$0xff] %vm7761_vm3, %v1955_v33  ;;  %vm7762_vm6 = vmmov %vm7761_vm3 }
 0x1ad   : > { %vm1762_vm10 = vcmp.gt.f32.partialorder %v6427_v10, 0.0  ;;  %v1794_v23 = vmul.f32 0.2, %v6427_v10  ;;  %1989 = vst.msk [vmem:[#allocation3 + $0x39] sm:$0xff] %vm7762_vm6, %v1956_v14  ;;  %vm7763_vm15 = vmmov %vm7761_vm3  ;;  %v4782_v14 = vld [vmem:[%s7450_s3 + $0x10] sm:$0xff] }
 0x1ae   : > { %1990 = vst.msk [vmem:[#allocation3 + $0x41] sm:$0xff] %vm7763_vm15, %v1957_v57  ;;  %vm7764_vm7 = vmmov %vm7761_vm3  ;;  %2679 = vmatpush.bf16.msrb.mxu0 %v4782_v14 }
 0x1af   : > { %v1826_v22 = vsel %vm1762_vm10, %v6427_v10, %v1794_v23  ;;  %v1435_v47 = vpop.f32.mrf.mxu1  ;;  %1991 = vst.msk [vmem:[#allocation3 + $0x49] sm:$0xff] %vm7764_vm7, %v1958_v7  ;;  %vm7766_vm10 = vcmask 72704   ;;  %vm7768_vm15 = vmmov %vm7764_vm7  ;;  %vm7769_vm7 = vnez %v7606_v60 }
 0x1b0   : > { %v1628_v50 = vpop.f32.mrf.mxu2  ;;  %v1858_v62 = vpack.c.bf16 %v1826_v22, %v1826_v22  ;;  %v4991_v51 = vpack.i.bf16 %v1826_v22, %v1825_v19  ;;  %vm7767_vm6 = vmmov %vm7766_vm10 }
 0x1b1   : > { %v1695_v53 = vadd.f32 %v1628_v50, %v1433_v45 }
 0x1b2   : > { %v1927_v43 = vsel %vm5347_vm1, %v1858_v62, 0  ;;  %v2217_v6 = vsel %vm7765_vm12, %v1858_v62, 0  ;;  %4556 = vmatmul.msk.bf16.gmra.mxu1 %vm7766_vm10, %v5998_v40  ;;  %4992 = vrot.lane.b32.xlu1 %v4991_v51, %s5284_s30  ;;  %v1436_v40 = vadd.f32 %v1435_v47, %v6084_v15 }
 0x1b3   : > { %v6450_v20 = vadd.f32 %v6166_v0, %v1695_v53  ;;  %v1959_v39 = vunpack.c.l.bf16 %v1927_v43  ;;  %v2249_v35 = vunpack.c.l.bf16 %v2217_v6 }
 0x1b5   : > { %vm1763_vm3 = vcmp.gt.f32.partialorder %v6450_v20, 0.0  ;;  %v1795_v33 = vmul.f32 0.2, %v6450_v20  ;;  %4578 = vmatmul.msk.bf16.gmra.mxu2 %vm7767_vm6, %v6339_v38  ;;  %v4996_v49 = vpack.i.bf16 %v2249_v35, %v2248_v16  ;;  %1992 = vst.msk [vmem:[#allocation3 + $0x51] sm:$0xff] %vm7768_vm15, %v1959_v39  ;;  %vm7770_vm6 = vmmov %vm7768_vm15  ;;  %vm7772_vm15 = vcmask 72704  }
 0x1b7   : > { %4997 = vrot.lane.b32.xlu2 %v4996_v49, %s5285_s8  ;;  %v1827_v19 = vsel %vm1763_vm3, %v6450_v20, %v1795_v33  ;;  %v1437_v57 = vpop.f32.mrf.mxu1  ;;  %vm7771_vm3 = vnez %v7563_v26 }
 0x1b8   : > { %v1631_v23 = vpop.f32.mrf.mxu2  ;;  %v1859_v7 = vpack.c.bf16 %v1827_v19, %v1827_v19  ;;  %v1438_v47 = vadd.f32 %v1437_v57, %v6094_v13 }
 0x1b9   : > { %v1696_v45 = vadd.f32 %v1631_v23, %v1436_v40  ;;  %v4784_v23 = vld [vmem:[%s7450_s3 + $0x20] sm:$0xff] }
 0x1ba   : > { %v1928_v22 = vsel %vm7769_vm7, %v1859_v7, 0  ;;  %v2218_v6 = vsel %vm5347_vm1, %v1859_v7, 0  ;;  %vm7774_vm7 = vcmask 130048   ;;  %2570 = vmatpush.bf16.msrb.mxu3 %v4784_v23 }
 0x1bb   : > { %v6469_v50 = vadd.f32 %v6166_v0, %v1696_v45  ;;  %v1960_v62 = vunpack.c.l.bf16 %v1928_v22  ;;  %v2250_v33 = vunpack.c.l.bf16 %v2218_v6  ;;  %v4781_v6 = vld [vmem:[%s7450_s3 + $0x8] sm:$0xff] }
 0x1bc   : > { %2680 = vmatpush.bf16.msrb.mxu0 %v4781_v6 }
 0x1bd   : > { %vm1764_vm10 = vcmp.gt.f32.partialorder %v6469_v50, 0.0  ;;  %v1796_v15 = vmul.f32 0.2, %v6469_v50  ;;  %1993 = vst.msk [vmem:[#allocation3 + $0x59] sm:$0xff] %vm7770_vm6, %v1960_v62  ;;  %vm7773_vm6 = vmmov %vm7772_vm15 }
 0x1bf   : > { %v1828_v36 = vsel %vm1764_vm10, %v6469_v50, %v1796_v15  ;;  %v1440_v53 = vpop.f32.mrf.mxu1 }
 0x1c0   : > { %v1633_v34 = vpop.f32.mrf.mxu2  ;;  %v1860_v43 = vpack.c.bf16 %v1828_v36, %v1828_v36  ;;  %v5001_v14 = vpack.i.bf16 %v1828_v36, %v1827_v19  ;;  %v1520_v36 = vld [vmem:[#allocation2 + $0x110] sm:$0xff] }
 0x1c1   : > { %v1697_v39 = vadd.f32 %v1633_v34, %v1438_v47 }
 0x1c2   : > { %v1929_v16 = vsel %vm5347_vm1, %v1860_v43, 0  ;;  %v2219_v35 = vsel %vm7771_vm3, %v1860_v43, 0  ;;  %4557 = vmatmul.msk.bf16.gmra.mxu1 %vm7772_vm15, %v6277_v27  ;;  %5002 = vrot.lane.b32.xlu0 %v5001_v14, %s5284_s30  ;;  %v1441_v27 = vadd.f32 %v1440_v53, %v6098_v4  ;;  %vm7775_vm15 = vnez %v7611_v11  ;;  %v1521_v53 = vld [vmem:[#allocation2 + $0x118] sm:$0xff] }
 0x1c3   : > { %v6483_v51 = vadd.f32 %v6166_v0, %v1697_v39  ;;  %v1961_v13 = vunpack.c.l.bf16 %v1929_v16  ;;  %v2251_v49 = vunpack.c.l.bf16 %v2219_v35  ;;  %vm7780_vm3 = vcmask 130048  }
 0x1c5   : > { %vm1765_vm10 = vcmp.gt.f32.partialorder %v6483_v51, 0.0  ;;  %v1797_v40 = vmul.f32 0.2, %v6483_v51  ;;  %4579 = vmatmul.msk.bf16.gmra.mxu2 %vm7773_vm6, %v6412_v46  ;;  %v5006_v57 = vpack.i.bf16 %v2251_v49, %v2250_v33  ;;  %1994 = vst.msk [vmem:[#allocation3 + $0x61] sm:$0xff] %vm7774_vm7, %v1961_v13  ;;  %vm7776_vm6 = vcmask 130048  }
 0x1c6   : > { %v1537_v49 = vpack.c.bf16 %v1521_v53, %v1520_v36 }
 0x1c7   : > { %5007 = vrot.lane.b32.xlu1 %v5006_v57, %s5285_s8  ;;  %v1829_v19 = vsel %vm1765_vm10, %v6483_v51, %v1797_v40  ;;  %v1442_v7 = vpop.f32.mrf.mxu1  ;;  %vm7777_vm10 = vnez %v7573_v31 }
 0x1c8   : > { %v1636_v45 = vpop.f32.mrf.mxu2  ;;  %v1861_v22 = vpack.c.bf16 %v1829_v19, %v1829_v19  ;;  %v1443_v34 = vadd.f32 %v1442_v7, %v6106_v63 }
 0x1c9   : > { %v1698_v46 = vadd.f32 %v1636_v45, %v1441_v27 }
 0x1ca   : > { %v1930_v62 = vsel %vm7775_vm15, %v1861_v22, 0  ;;  %v2220_v13 = vsel %vm5347_vm1, %v1861_v22, 0 }
 0x1cb   : > { %v6502_v15 = vadd.f32 %v6166_v0, %v1698_v46  ;;  %v1962_v47 = vunpack.c.l.bf16 %v1930_v62  ;;  %v2252_v23 = vunpack.c.l.bf16 %v2220_v13  ;;  %v4783_v13 = vld [vmem:[%s7450_s3 + $0x18] sm:$0xff] }
 0x1cc   : > { %2571 = vmatpush.bf16.msrb.mxu3 %v4783_v13 }
 0x1cd   : > { %vm1766_vm7 = vcmp.gt.f32.partialorder %v6502_v15, 0.0  ;;  %v1798_v4 = vmul.f32 0.2, %v6502_v15  ;;  %1995 = vst.msk [vmem:[#allocation3 + $0x69] sm:$0xff] %vm7776_vm6, %v1962_v47 }
 0x1cf   : > { %v1830_v43 = vsel %vm1766_vm7, %v6502_v15, %v1798_v4  ;;  %v1445_v39 = vpop.f32.mrf.mxu1  ;;  %vm7778_vm7 = vcmask 72704  }
 0x1d0   : > { %v1638_v16 = vpop.f32.mrf.mxu2  ;;  %v1862_v35 = vpack.c.bf16 %v1830_v43, %v1830_v43  ;;  %v5011_v7 = vpack.i.bf16 %v1830_v43, %v1829_v19  ;;  %vm7779_vm15 = vmmov %vm7778_vm7  ;;  %v1446_v46 = vadd.f32 %v1445_v39, %v6113_v52 }
 0x1d1   : > { %v1699_v33 = vadd.f32 %v1638_v16, %v1443_v34 }
 0x1d2   : > { %v1931_v14 = vsel %vm5347_vm1, %v1862_v35, 0  ;;  %v2221_v63 = vsel %vm7777_vm10, %v1862_v35, 0  ;;  %4558 = vmatmul.msk.bf16.gmra.mxu1 %vm7778_vm7, %v6339_v38  ;;  %5012 = vrot.lane.b32.xlu2 %v5011_v7, %s5284_s30  ;;  %vm7536_vm7 = vcmask 261248   ;;  %vm7805_vm10 = vcmask 392192  }
 0x1d3   : > { %v6519_v40 = vadd.f32 %v6166_v0, %v1699_v33  ;;  %v1963_v57 = vunpack.c.l.bf16 %v1931_v14  ;;  %v2253_v27 = vunpack.c.l.bf16 %v2221_v63  ;;  %v4780_v33 = vld [vmem:[%s7450_s3] sm:$0xff] }
 0x1d4   : > { %2681 = vmatpush.bf16.msrb.mxu0 %v4780_v33 }
 0x1d5   : > { %vm1767_vm6 = vcmp.gt.f32.partialorder %v6519_v40, 0.0  ;;  %v1799_v45 = vmul.f32 0.2, %v6519_v40  ;;  %4580 = vmatmul.msk.bf16.gmra.mxu2 %vm7779_vm15, %v1537_v49  ;;  %v5016_v22 = vpack.i.bf16 %v2253_v27, %v2252_v23  ;;  %1996 = vst.msk [vmem:[#allocation3 + $0x71] sm:$0xff] %vm7780_vm3, %v1963_v57  ;;  %v4963_v36 = vpop.permute.xlu2 %4962  ;;  %vm7781_vm15 = vcmask 130048  }
 0x1d6   : > { %v4965_v53 = vunpack.i.h.bf16 %v4963_v36  ;;  %v4964_v34 = vunpack.i.l.bf16 %v4963_v36 }
 0x1d7   : > { %5017 = vrot.lane.b32.xlu0 %v5016_v22, %s5285_s8  ;;  %v1831_v38 = vsel %vm1767_vm6, %v6519_v40, %v1799_v45  ;;  %v1447_v62 = vpop.f32.mrf.mxu1  ;;  %vm7782_vm6 = vnez %v7571_v8 }
 0x1d8   : > { %v1641_v47 = vpop.f32.mrf.mxu2  ;;  %v1863_v19 = vpack.c.bf16 %v1831_v38, %v1831_v38  ;;  %2177 = vst.msk [vmem:[#allocation3 + $0x10] sm:$0xff] %vm7536_vm7, %v4964_v34  ;;  %v1448_v39 = vadd.f32 %v1447_v62, %v6123_v44 }
 0x1d9   : > { %v1700_v4 = vadd.f32 %v1641_v47, %v1446_v46  ;;  %2178 = vst.msk [vmem:[#allocation3 + $0x18] sm:$0xff] %vm7536_vm7, %v4965_v53  ;;  %vm7784_vm7 = vnez %v7596_v12 }
 0x1da   : > { %v1932_v43 = vsel %vm5804_vm2, %v1863_v19, 0  ;;  %v2222_v57 = vsel %vm5347_vm1, %v1863_v19, 0  ;;  %vm7800_vm2 = vcmask 130048  }
 0x1db   : > { %v6534_v6 = vadd.f32 %v6166_v0, %v1700_v4  ;;  %v1964_v16 = vunpack.c.l.bf16 %v1932_v43  ;;  %v2254_v22 = vunpack.c.l.bf16 %v2222_v57 }
 0x1dd   : > { %vm1768_vm3 = vcmp.gt.f32.partialorder %v6534_v6, 0.0  ;;  %v1800_v52 = vmul.f32 0.2, %v6534_v6  ;;  %1997 = vst.msk [vmem:[#allocation3 + $0x79] sm:$0xff] %vm7781_vm15, %v1964_v16 }
 0x1df   : > { %v1832_v35 = vsel %vm1768_vm3, %v6534_v6, %v1800_v52  ;;  %v1450_v49 = vpop.f32.mrf.mxu1 }
 0x1e0   : > { %v1643_v14 = vpop.f32.mrf.mxu2  ;;  %v1864_v63 = vpack.c.bf16 %v1832_v35, %v1832_v35  ;;  %v5021_v62 = vpack.i.bf16 %v1832_v35, %v1831_v38  ;;  %v1451_v4 = vadd.f32 %v1450_v49, %v6063_v29 }
 0x1e1   : > { %v1701_v23 = vadd.f32 %v1643_v14, %v1448_v39 }
 0x1e2   : > { %v1933_v44 = vsel %vm5347_vm1, %v1864_v63, 0  ;;  %v2223_v27 = vsel %vm7782_vm6, %v1864_v63, 0  ;;  %5022 = vrot.lane.b32.xlu1 %v5021_v62, %s5284_s30  ;;  %vm7786_vm6 = vcmask 130048  }
 0x1e3   : > { %v6556_v7 = vadd.f32 %v6166_v0, %v1701_v23  ;;  %v1965_v45 = vunpack.c.l.bf16 %v1933_v44  ;;  %v2255_v46 = vunpack.c.l.bf16 %v2223_v27 }
 0x1e5   : > { %7783 = vst [vmem:[#allocation24_spill] sm:$0xff] %v6556_v7  ;;  %vm1769_vm3 = vcmp.gt.f32.partialorder %v6556_v7, 0.0  ;;  %v1801_v47 = vmul.f32 0.2, %v6556_v7  ;;  %v5026_v19 = vpack.i.bf16 %v2255_v46, %v2254_v22 }
 0x1e6   : > { %1998 = vst.msk [vmem:[#allocation3 + $0x81] sm:$0xff] %vm7781_vm15, %v1965_v45 }
 0x1e7   : > { %5027 = vrot.lane.b32.xlu2 %v5026_v19, %s5285_s8  ;;  %v1833_v36 = vsel %vm1769_vm3, %v6556_v7, %v1801_v47  ;;  %v1452_v53 = vpop.f32.mrf.mxu1  ;;  %vm7537_vm3 = vcmask 392448  }
 0x1e8   : > { %v1646_v34 = vpop.f32.mrf.mxu2  ;;  %v1865_v43 = vpack.c.bf16 %v1833_v36, %v1833_v36  ;;  %v1453_v29 = vadd.f32 %v1452_v53, %v6086_v5 }
 0x1e9   : > { %v1702_v16 = vadd.f32 %v1646_v34, %v1451_v4 }
 0x1ea   : > { %v1934_v38 = vsel %vm7784_vm7, %v1865_v43, 0  ;;  %v2224_v23 = vsel %vm5347_vm1, %v1865_v43, 0  ;;  %vm7789_vm7 = vcmask 130048   ;;  %v2310_v43 = vpop.permute.xlu2 %2309 }
 0x1eb   : > { %v6568_v52 = vadd.f32 %v6166_v0, %v1702_v16  ;;  %v1966_v39 = vunpack.c.l.bf16 %v1934_v38  ;;  %v2256_v47 = vunpack.c.l.bf16 %v2224_v23 }
 0x1ed   : > { %7785 = vst [vmem:[#allocation25_spill] sm:$0xff] %v6568_v52  ;;  %vm1770_vm15 = vcmp.gt.f32.partialorder %v6568_v52, 0.0  ;;  %v1802_v35 = vmul.f32 0.2, %v6568_v52 }
 0x1ee   : > { %1999 = vst.msk [vmem:[#allocation3 + $0x89] sm:$0xff] %vm7786_vm6, %v1966_v39  ;;  %vm7788_vm6 = vnez %v7565_v30 }
 0x1ef   : > { %v1834_v13 = vsel %vm1770_vm15, %v6568_v52, %v1802_v35  ;;  %v1455_v33 = vpop.f32.mrf.mxu1 }
 0x1f0   : > { %v1648_v49 = vpop.f32.mrf.mxu2  ;;  %v1866_v14 = vpack.c.bf16 %v1834_v13, %v1834_v13  ;;  %v5031_v62 = vpack.i.bf16 %v1834_v13, %v1833_v36  ;;  %v1456_v16 = vadd.f32 %v1455_v33, %v6096_v42  ;;  %v2434_v13 = vld [vmem:[#allocation3] sm:$0xff] }
 0x1f1   : > { %v1703_v63 = vadd.f32 %v1648_v49, %v1453_v29  ;;  %v4968_v57 = vpop.permute.xlu1 %4967 }
 0x1f2   : > { %v4970_v44 = vunpack.i.h.bf16 %v4968_v57  ;;  %v4969_v27 = vunpack.i.l.bf16 %v4968_v57  ;;  %v1935_v45 = vsel %vm5347_vm1, %v1866_v14, 0  ;;  %v2225_v46 = vsel %vm7788_vm6, %v1866_v14, 0  ;;  %5032 = vrot.lane.b32.xlu0 %v5031_v62, %s5284_s30 }
 0x1f3   : > { %v6580_v22 = vadd.f32 %v6166_v0, %v1703_v63  ;;  %v1967_v5 = vunpack.c.l.bf16 %v1935_v45  ;;  %v2257_v19 = vunpack.c.l.bf16 %v2225_v46  ;;  %vm7790_vm6 = vcmask 261248  }
 0x1f4   : > { %2402 = vst.msk [vmem:[#allocation3 + $0xf] sm:$0xff] %vm7537_vm3, %v4969_v27 }
 0x1f5   : > { %7787 = vst [vmem:[#allocation26_spill] sm:$0xff] %v6580_v22  ;;  %vm1771_vm15 = vcmp.gt.f32.partialorder %v6580_v22, 0.0  ;;  %v1803_v4 = vmul.f32 0.2, %v6580_v22  ;;  %v5036_v34 = vpack.i.bf16 %v2257_v19, %v2256_v47 }
 0x1f6   : > { %2403 = vst.msk [vmem:[#allocation3 + $0x17] sm:$0xff] %vm7537_vm3, %v4970_v44  ;;  %v2085_v53 = vpop.permute.xlu0 %2084 }
 0x1f7   : > { %2000 = vst.msk [vmem:[#allocation3 + $0x91] sm:$0xff] %vm7789_vm7, %v1967_v5  ;;  %v1835_v36 = vsel %vm1771_vm15, %v6580_v22, %v1803_v4  ;;  %v1457_v38 = vpop.f32.mrf.mxu1  ;;  %5037 = vrot.lane.b32.xlu1 %v5036_v34, %s5285_s8  ;;  %vm7791_vm7 = vnez %v7617_v9  ;;  %vm7793_vm15 = vcmask 130048  }
 0x1f8   : > { %2179 = vst.msk [vmem:[#allocation3 + $0x20] sm:$0xff] %vm7790_vm6, %v2085_v53  ;;  %v1651_v39 = vpop.f32.mrf.mxu2  ;;  %v1867_v35 = vpack.c.bf16 %v1835_v36, %v1835_v36  ;;  %v1458_v23 = vadd.f32 %v1457_v38, %v6100_v28 }
 0x1f9   : > { %2404 = vst.msk [vmem:[#allocation3 + $0x1f] sm:$0xff] %vm7537_vm3, %v2310_v43  ;;  %v1704_v29 = vadd.f32 %v1651_v39, %v1456_v16  ;;  %vm7794_vm3 = vcmask 392192  }
 0x1fa   : > { %v1936_v49 = vsel %vm7791_vm7, %v1867_v35, 0  ;;  %v2226_v53 = vsel %vm5347_vm1, %v1867_v35, 0 }
 0x1fb   : > { %v6598_v14 = vadd.f32 %v6166_v0, %v1704_v29  ;;  %v2435_v42 = vld [vmem:[#allocation3 + $0x8] sm:$0xff]  ;;  %v1968_v33 = vunpack.c.l.bf16 %v1936_v49 }
 0x1fc   : > { %v2466_v63 = vpack.c.bf16 %v2435_v42, %v2434_v13  ;;  %v4983_v4 = vpop.permute.xlu2 %4982  ;;  %v2258_v13 = vunpack.c.l.bf16 %v2226_v53 }
 0x1fd   : > { %7792 = vst [vmem:[#allocation27_spill] sm:$0xff] %v6598_v14  ;;  %vm1772_vm6 = vcmp.gt.f32.partialorder %v6598_v14, 0.0  ;;  %v1804_v57 = vmul.f32 0.2, %v6598_v14  ;;  %v2436_v27 = vld [vmem:[#allocation3 + $0x10] sm:$0xff]  ;;  %v4985_v34 = vunpack.i.h.bf16 %v4983_v4  ;;  %v4984_v43 = vunpack.i.l.bf16 %v4983_v4 }
 0x1fe   : > { %2001 = vst.msk [vmem:[#allocation3 + $0x99] sm:$0xff] %vm7793_vm15, %v1968_v33  ;;  %4627 = vmatmul.msk.bf16.vlgmr.msrb.gmra.mxu0 %vm7794_vm3, %v2466_v63  ;;  %vm7795_vm15 = vmmov %vm7794_vm3  ;;  %vm7797_vm3 = vnez %v7567_v37 }
 0x1ff   : > { %v1836_v44 = vsel %vm1772_vm6, %v6598_v14, %v1804_v57  ;;  %v1460_v5 = vpop.f32.mrf.mxu1  ;;  %vm7798_vm6 = vcmask 261248  }
 0x200   : > { %v2437_v45 = vld [vmem:[#allocation3 + $0x18] sm:$0xff]  ;;  %v1653_v46 = vpop.f32.mrf.mxu2  ;;  %v1868_v47 = vpack.c.bf16 %v1836_v44, %v1836_v44  ;;  %2183 = vst.msk [vmem:[#allocation3 + $0x40] sm:$0xff] %vm7798_vm6, %v4985_v34  ;;  %v5041_v29 = vpack.i.bf16 %v1836_v44, %v1835_v36  ;;  %v1461_v33 = vadd.f32 %v1460_v5, %v6108_v25 }
 0x201   : > { %v2467_v62 = vpack.c.bf16 %v2437_v45, %v2436_v27  ;;  %v1705_v19 = vadd.f32 %v1653_v46, %v1458_v23 }
 0x202   : > { %v1937_v28 = vsel %vm5347_vm1, %v1868_v47, 0  ;;  %v2227_v39 = vsel %vm7797_vm3, %v1868_v47, 0  ;;  %5042 = vrot.lane.b32.xlu2 %v5041_v29, %s5284_s30  ;;  %vm7804_vm3 = vcmask 392448  }
 0x203   : > { %4599 = vmatmul.msk.bf16.vlgmr.msrb.gmra.mxu3 %vm7795_vm15, %v2467_v62  ;;  %v6612_v16 = vadd.f32 %v6166_v0, %v1705_v19  ;;  %v1969_v38 = vunpack.c.l.bf16 %v1937_v28  ;;  %v2259_v49 = vunpack.c.l.bf16 %v2227_v39  ;;  %vm7799_vm15 = vmmov %vm7798_vm6 }
 0x204   : > { %2182 = vst.msk [vmem:[#allocation3 + $0x38] sm:$0xff] %vm7799_vm15, %v4984_v43  ;;  %v4973_v27 = vpop.permute.xlu0 %4972  ;;  %vm7803_vm15 = vmmov %vm7798_vm6 }
 0x205   : > { %7796 = vst [vmem:[#allocation28_spill] sm:$0xff] %v6612_v16  ;;  %vm1773_vm7 = vcmp.gt.f32.partialorder %v6612_v16, 0.0  ;;  %v1805_v35 = vmul.f32 0.2, %v6612_v16  ;;  %v5046_v42 = vpack.i.bf16 %v2259_v49, %v2258_v13  ;;  %v4975_v46 = vunpack.i.h.bf16 %v4973_v27  ;;  %vm7806_vm12 = vmmov %vm7804_vm3 }
 0x206   : > { %2002 = vst.msk [vmem:[#allocation3 + $0xa1] sm:$0xff] %vm7800_vm2, %v1969_v38  ;;  %v4974_v47 = vunpack.i.l.bf16 %v4973_v27  ;;  %vm7802_vm2 = vnez %v7621_v41 }
 0x207   : > { %v1837_v63 = vsel %vm1773_vm7, %v6612_v16, %v1805_v35  ;;  %v1462_v57 = vpop.f32.mrf.mxu1  ;;  %5047 = vrot.lane.b32.xlu0 %v5046_v42, %s5285_s8  ;;  %2181 = vst.msk [vmem:[#allocation3 + $0x30] sm:$0xff] %vm7798_vm6, %v4975_v46  ;;  %vm7807_vm6 = vcmask 130048  }
 0x208   : > { %v1656_v36 = vpop.f32.mrf.mxu2  ;;  %v1869_v23 = vpack.c.bf16 %v1837_v63, %v1837_v63  ;;  %2180 = vst.msk [vmem:[#allocation3 + $0x28] sm:$0xff] %vm7803_vm15, %v4974_v47 }
 0x209   : > { %v1706_v44 = vadd.f32 %v1656_v36, %v1461_v33  ;;  %v4978_v45 = vpop.permute.xlu1 %4977 }
 0x20a   : > { %v4980_v19 = vunpack.i.h.bf16 %v4978_v45  ;;  %v4979_v53 = vunpack.i.l.bf16 %v4978_v45  ;;  %v1938_v25 = vsel %vm7802_vm2, %v1869_v23, 0  ;;  %v2228_v13 = vsel %vm5347_vm1, %v1869_v23, 0 }
 0x20b   : > { %v6626_v4 = vadd.f32 %v6166_v0, %v1706_v44  ;;  %v1970_v5 = vunpack.c.l.bf16 %v1938_v25  ;;  %v1463_v0 = vadd.f32 %v1462_v57, %v6115_v56  ;;  %v6647_v56 = vld [vmem:[%s7449_s2] ss:$0 sm:$0xff]  ;;  %v2260_v57 = vunpack.c.l.bf16 %v2228_v13  ;;  %v1370_v44 = vpop.f32.mrf.mxu3 }
 0x20c   : > { %2406 = vst.msk [vmem:[#allocation3 + $0x2f] sm:$0xff] %vm7804_vm3, %v4980_v19  ;;  %vm7810_vm3 = vmmov %vm7807_vm6 }
 0x20d   : > { %7801 = vst [vmem:[#allocation29_spill] sm:$0xff] %v6626_v4  ;;  %vm1774_vm7 = vcmp.gt.f32.partialorder %v6626_v4, 0.0  ;;  %v1806_v34 = vmul.f32 0.2, %v6626_v4 }
 0x20e   : > { %4628 = vmatmul.msk.bf16.gmra.mxu0 %vm7805_vm10, %v2467_v62  ;;  %2405 = vst.msk [vmem:[#allocation3 + $0x27] sm:$0xff] %vm7806_vm12, %v4979_v53  ;;  %vm7809_vm12 = vnez %v7569_v59 }
 0x20f   : > { %v1838_v43 = vsel %vm1774_vm7, %v6626_v4, %v1806_v34  ;;  %v1465_v28 = vpop.f32.mrf.mxu1  ;;  %2003 = vst.msk [vmem:[#allocation3 + $0xa9] sm:$0xff] %vm7807_vm6, %v1970_v5  ;;  %vm7811_vm7 = vcmask 392192   ;;  %vm7813_vm6 = vnez %v7625_v2 }
 0x210   : > { %v1658_v38 = vpop.f32.mrf.mxu2  ;;  %v1870_v39 = vpack.c.bf16 %v1838_v43, %v1838_v43  ;;  %v5051_v33 = vpack.i.bf16 %v1838_v43, %v1837_v63  ;;  %v1466_v47 = vadd.f32 %v1465_v28, %v6125_v1  ;;  %vm7812_vm15 = vmmov %vm7811_vm7 }
 0x211   : > { %v1707_v29 = vadd.f32 %v1658_v38, %v1463_v0 }
 0x212   : > { %v1939_v49 = vsel %vm5347_vm1, %v1870_v39, 0  ;;  %v2229_v42 = vsel %vm7809_vm12, %v1870_v39, 0  ;;  %5052 = vrot.lane.b32.xlu1 %v5051_v33, %s5284_s30  ;;  %vm7817_vm12 = vcmask 130048  }
 0x213   : > { %v6650_v62 = vadd.f32 %v6647_v56, %v1707_v29  ;;  %v1971_v35 = vunpack.c.l.bf16 %v1939_v49  ;;  %v2261_v36 = vunpack.c.l.bf16 %v2229_v42  ;;  %v1372_v13 = vpop.f32.mrf.mxu3 }
 0x215   : > { %7808 = vst [vmem:[#allocation30_spill] sm:$0xff] %v6650_v62  ;;  %vm1775_vm10 = vcmp.gt.f32.partialorder %v6650_v62, 0.0  ;;  %v1807_v23 = vmul.f32 0.2, %v6650_v62  ;;  %v2438_v27 = vld [vmem:[#allocation3 + $0x20] sm:$0xff]  ;;  %v2439_v45 = vld [vmem:[#allocation3 + $0x28] sm:$0xff]  ;;  %v5056_v46 = vpack.i.bf16 %v2261_v36, %v2260_v57 }
 0x216   : > { %2004 = vst.msk [vmem:[#allocation3 + $0xb1] sm:$0xff] %vm7810_vm3, %v1971_v35  ;;  %v2468_v19 = vpack.c.bf16 %v2439_v45, %v2438_v27  ;;  %v7818_v45 = vld [vmem:[#allocation5_spill] sm:$0xff] }
 0x217   : > { %v1839_v53 = vsel %vm1775_vm10, %v6650_v62, %v1807_v23  ;;  %v1467_v63 = vpop.f32.mrf.mxu1  ;;  %5057 = vrot.lane.b32.xlu2 %v5056_v46, %s5285_s8  ;;  %vm7815_vm10 = vcmask 392448  }
 0x218   : > { %v1661_v25 = vpop.f32.mrf.mxu2  ;;  %v1871_v5 = vpack.c.bf16 %v1839_v53, %v1839_v53  ;;  %4600 = vmatmul.msk.bf16.gmra.mxu3 %vm7811_vm7, %v2468_v19  ;;  %4661 = vmatmul.msk.bf16.vlgmr.msra.gmra.mxu1 %vm7812_vm15, %v2468_v19  ;;  %vm7816_vm7 = vmmov %vm7815_vm10  ;;  %v1468_v49 = vadd.f32 %v1467_v63, %v6143_v54 }
 0x219   : > { %v1708_v34 = vadd.f32 %v1661_v25, %v1466_v47  ;;  %v4988_v0 = vpop.permute.xlu0 %4987 }
 0x21a   : > { %v4990_v43 = vunpack.i.h.bf16 %v4988_v0  ;;  %v4989_v38 = vunpack.i.l.bf16 %v4988_v0  ;;  %v1940_v39 = vsel %vm7813_vm6, %v1871_v5, 0  ;;  %v2230_v36 = vsel %vm5347_vm1, %v1871_v5, 0 }
 0x21b   : > { %v6666_v1 = vadd.f32 %v6647_v56, %v1708_v34  ;;  %v1972_v28 = vunpack.c.l.bf16 %v1940_v39  ;;  %v2262_v63 = vunpack.c.l.bf16 %v2230_v36 }
 0x21c   : > { %2407 = vst.msk [vmem:[#allocation3 + $0x37] sm:$0xff] %vm7815_vm10, %v4989_v38  ;;  %vm7819_vm10 = vnez %v7818_v45 }
 0x21d   : > { %7814 = vst [vmem:[#allocation31_spill] sm:$0xff] %v6666_v1  ;;  %vm1776_vm3 = vcmp.gt.f32.partialorder %v6666_v1, 0.0  ;;  %v1808_v29 = vmul.f32 0.2, %v6666_v1 }
 0x21e   : > { %2408 = vst.msk [vmem:[#allocation3 + $0x3f] sm:$0xff] %vm7816_vm7, %v4990_v43  ;;  %4629 = vmatmul.msk.bf16.gmra.mxu0 %vm7812_vm15, %v2468_v19  ;;  %vm7822_vm7 = vmmov %vm7812_vm15 }
 0x21f   : > { %2005 = vst.msk [vmem:[#allocation3 + $0xb9] sm:$0xff] %vm7817_vm12, %v1972_v28  ;;  %v1840_v35 = vsel %vm1776_vm3, %v6666_v1, %v1808_v29  ;;  %v1470_v42 = vpop.f32.mrf.mxu1  ;;  %vm7821_vm3 = vcmask 130048   ;;  %v1375_v28 = vpop.f32.mrf.mxu3  ;;  %vm7823_vm15 = vmmov %vm7822_vm7 }
 0x220   : > { %v1663_v33 = vpop.f32.mrf.mxu2  ;;  %v1872_v57 = vpack.c.bf16 %v1840_v35, %v1840_v35  ;;  %v5061_v34 = vpack.i.bf16 %v1840_v35, %v1839_v53  ;;  %v1471_v39 = vadd.f32 %v1470_v42, %v1370_v44  ;;  %v4998_v35 = vpop.permute.xlu2 %4997 }
 0x221   : > { %v1709_v23 = vadd.f32 %v1663_v33, %v1468_v49 }
 0x222   : > { %v1941_v27 = vsel %vm5347_vm1, %v1872_v57, 0  ;;  %v2231_v46 = vsel %vm7819_vm10, %v1872_v57, 0  ;;  %5062 = vrot.lane.b32.xlu0 %v5061_v34, %s5284_s30  ;;  %vm7829_vm10 = vcmask 392192  }
 0x223   : > { %v6683_v47 = vadd.f32 %v6647_v56, %v1709_v23  ;;  %v1973_v19 = vunpack.c.l.bf16 %v1941_v27  ;;  %v2440_v54 = vld [vmem:[#allocation3 + $0x30] sm:$0xff]  ;;  %v2263_v25 = vunpack.c.l.bf16 %v2231_v46  ;;  %v7824_v46 = vld [vmem:[#allocation10_spill] sm:$0xff] }
 0x224   : > { %v4993_v36 = vpop.permute.xlu1 %4992 }
 0x225   : > { %7820 = vst [vmem:[#allocation5_spill] sm:$0xff] %v6683_v47  ;;  %v2441_v0 = vld [vmem:[#allocation3 + $0x38] sm:$0xff]  ;;  %vm1777_vm12 = vcmp.gt.f32.partialorder %v6683_v47, 0.0  ;;  %v1809_v5 = vmul.f32 0.2, %v6683_v47  ;;  %v5066_v38 = vpack.i.bf16 %v2263_v25, %v2262_v63  ;;  %v4995_v23 = vunpack.i.h.bf16 %v4993_v36 }
 0x226   : > { %2006 = vst.msk [vmem:[#allocation3 + $0xc1] sm:$0xff] %vm7821_vm3, %v1973_v19  ;;  %v2469_v43 = vpack.c.bf16 %v2441_v0, %v2440_v54  ;;  %v4994_v27 = vunpack.i.l.bf16 %v4993_v36  ;;  %v4999_v19 = vunpack.i.l.bf16 %v4998_v35  ;;  %v5000_v63 = vunpack.i.h.bf16 %v4998_v35 }
 0x227   : > { %5067 = vrot.lane.b32.xlu1 %v5066_v38, %s5285_s8  ;;  %v1841_v29 = vsel %vm1777_vm12, %v6683_v47, %v1809_v5  ;;  %v1472_v49 = vpop.f32.mrf.mxu1  ;;  %vm7826_vm12 = vcmask 261248  }
 0x228   : > { %v1666_v33 = vpop.f32.mrf.mxu2  ;;  %v1873_v53 = vpack.c.bf16 %v1841_v29, %v1841_v29  ;;  %4601 = vmatmul.msk.bf16.gmra.mxu3 %vm7822_vm7, %v2469_v43  ;;  %4662 = vmatmul.msk.bf16.gmra.mxu1 %vm7823_vm15, %v2469_v43  ;;  %2185 = vst.msk [vmem:[#allocation3 + $0x50] sm:$0xff] %vm7826_vm12, %v4995_v23  ;;  %vm7827_vm7 = vmmov %vm7826_vm12  ;;  %vm7828_vm15 = vcmask 392448   ;;  %v1473_v34 = vadd.f32 %v1472_v49, %v1372_v13  ;;  %vm7831_vm12 = vcmask 130048   ;;  %v1377_v49 = vpop.f32.mrf.mxu3 }
 0x229   : > { %v1710_v57 = vadd.f32 %v1666_v33, %v1471_v39  ;;  %2184 = vst.msk [vmem:[#allocation3 + $0x48] sm:$0xff] %vm7827_vm7, %v4994_v27 }
 0x22a   : > { %v1942_v44 = vsel %vm5857_vm13, %v1873_v53, 0  ;;  %2409 = vst.msk [vmem:[#allocation3 + $0x47] sm:$0xff] %vm7828_vm15, %v4999_v19  ;;  %vm7830_vm13 = vmmov %vm7828_vm15 }
 0x22b   : > { %v6696_v42 = vadd.f32 %v6647_v56, %v1710_v57  ;;  %v1974_v54 = vunpack.c.l.bf16 %v1942_v44  ;;  %2410 = vst.msk [vmem:[#allocation3 + $0x4f] sm:$0xff] %vm7830_vm13, %v5000_v63  ;;  %v2232_v57 = vsel %vm5347_vm1, %v1873_v53, 0  ;;  %v7833_v44 = vld [vmem:[#allocation7_spill] sm:$0xff]  ;;  %vm7836_vm15 = vmmov %vm7831_vm12 }
 0x22c   : > { %v5013_v35 = vpop.permute.xlu2 %5012  ;;  %vm7834_vm13 = vnez %v7833_v44  ;;  %v2264_v63 = vunpack.c.l.bf16 %v2232_v57 }
 0x22d   : > { %7825 = vst [vmem:[#allocation10_spill] sm:$0xff] %v6696_v42  ;;  %vm1778_vm3 = vcmp.gt.f32.partialorder %v6696_v42, 0.0  ;;  %v1810_v25 = vmul.f32 0.2, %v6696_v42  ;;  %v5015_v36 = vunpack.i.h.bf16 %v5013_v35  ;;  %v5014_v23 = vunpack.i.l.bf16 %v5013_v35 }
 0x22e   : > { %4630 = vmatmul.msk.bf16.gmra.mxu0 %vm7829_vm10, %v2469_v43  ;;  %2007 = vst.msk [vmem:[#allocation3 + $0xc9] sm:$0xff] %vm7831_vm12, %v1974_v54  ;;  %vm7835_vm10 = vmmov %vm7827_vm7  ;;  %vm7837_vm12 = vcmask 392192  }
 0x22f   : > { %v1842_v0 = vsel %vm1778_vm3, %v6696_v42, %v1810_v25  ;;  %v1475_v5 = vpop.f32.mrf.mxu1  ;;  %2189 = vst.msk [vmem:[#allocation3 + $0x70] sm:$0xff] %vm7835_vm10, %v5015_v36  ;;  %vm7838_vm10 = vmmov %vm7837_vm12 }
 0x230   : > { %v1668_v38 = vpop.f32.mrf.mxu2  ;;  %v1874_v39 = vpack.c.bf16 %v1842_v0, %v1842_v0  ;;  %v5071_v54 = vpack.i.bf16 %v1842_v0, %v1841_v29  ;;  %2188 = vst.msk [vmem:[#allocation3 + $0x68] sm:$0xff] %vm7827_vm7, %v5014_v23  ;;  %v1476_v35 = vadd.f32 %v1475_v5, %v1375_v28 }
 0x231   : > { %v1711_v33 = vadd.f32 %v1668_v38, %v1473_v34  ;;  %v2442_v34 = vld [vmem:[#allocation3 + $0x40] sm:$0xff] }
 0x232   : > { %v1943_v43 = vsel %vm5347_vm1, %v1874_v39, 0  ;;  %v2233_v19 = vsel %vm7834_vm13, %v1874_v39, 0  ;;  %5072 = vrot.lane.b32.xlu2 %v5071_v54, %s5284_s30  ;;  %v2443_v38 = vld [vmem:[#allocation3 + $0x48] sm:$0xff]  ;;  %vm7844_vm13 = vcmask 392192  }
 0x233   : > { %v6712_v13 = vadd.f32 %v6647_v56, %v1711_v33  ;;  %v1975_v27 = vunpack.c.l.bf16 %v1943_v43  ;;  %v2265_v25 = vunpack.c.l.bf16 %v2233_v19  ;;  %v2470_v39 = vpack.c.bf16 %v2443_v38, %v2442_v34  ;;  %v1380_v38 = vpop.f32.mrf.mxu3 }
 0x234   : > { %v5003_v43 = vpop.permute.xlu0 %5002 }
 0x235   : > { %7832 = vst [vmem:[#allocation32_spill] sm:$0xff] %v6712_v13  ;;  %vm1779_vm3 = vcmp.gt.f32.partialorder %v6712_v13, 0.0  ;;  %v1811_v53 = vmul.f32 0.2, %v6712_v13  ;;  %v5076_v33 = vpack.i.bf16 %v2265_v25, %v2264_v63  ;;  %v5005_v54 = vunpack.i.h.bf16 %v5003_v43  ;;  %v7840_v63 = vld [vmem:[#allocation11_spill] sm:$0xff] }
 0x236   : > { %2008 = vst.msk [vmem:[#allocation3 + $0xd1] sm:$0xff] %vm7836_vm15, %v1975_v27  ;;  %v5004_v27 = vunpack.i.l.bf16 %v5003_v43 }
 0x237   : > { %v1843_v36 = vsel %vm1779_vm3, %v6712_v13, %v1811_v53  ;;  %v1477_v29 = vpop.f32.mrf.mxu1  ;;  %5077 = vrot.lane.b32.xlu0 %v5076_v33, %s5285_s8  ;;  %vm7841_vm3 = vnez %v7840_v63  ;;  %2187 = vst.msk [vmem:[#allocation3 + $0x60] sm:$0xff] %vm7827_vm7, %v5005_v54 }
 0x238   : > { %v1671_v0 = vpop.f32.mrf.mxu2  ;;  %v1875_v57 = vpack.c.bf16 %v1843_v36, %v1843_v36  ;;  %4602 = vmatmul.msk.bf16.gmra.mxu3 %vm7837_vm12, %v2470_v39  ;;  %4663 = vmatmul.msk.bf16.gmra.mxu1 %vm7838_vm10, %v2470_v39  ;;  %vm7842_vm12 = vmmov %vm7827_vm7  ;;  %vm7843_vm10 = vcmask 392448   ;;  %v1478_v33 = vadd.f32 %v1477_v29, %v1377_v49  ;;  %vm7846_vm7 = vcmask 130048  }
 0x239   : > { %v1712_v23 = vadd.f32 %v1671_v0, %v1476_v35  ;;  %v5008_v19 = vpop.permute.xlu1 %5007  ;;  %2186 = vst.msk [vmem:[#allocation3 + $0x58] sm:$0xff] %vm7842_vm12, %v5004_v27  ;;  %vm7845_vm6 = vmmov %vm7843_vm10  ;;  %vm7851_vm12 = vcmask 392192  }
 0x23a   : > { %v5010_v42 = vunpack.i.h.bf16 %v5008_v19  ;;  %v5009_v5 = vunpack.i.l.bf16 %v5008_v19  ;;  %v1944_v25 = vsel %vm7841_vm3, %v1875_v57, 0  ;;  %v2234_v54 = vsel %vm5347_vm1, %v1875_v57, 0  ;;  %v4794_v57 = vld [vmem:[%s7452_s5 + $0x28] sm:$0xff] }
 0x23b   : > { %v6727_v28 = vadd.f32 %v6647_v56, %v1712_v23  ;;  %v1976_v53 = vunpack.c.l.bf16 %v1944_v25  ;;  %v2266_v25 = vunpack.c.l.bf16 %v2234_v54  ;;  %3852 = vmatpush.bf16.msra.mxu2 %v4794_v57 }
 0x23c   : > { %2412 = vst.msk [vmem:[#allocation3 + $0x5f] sm:$0xff] %vm7843_vm10, %v5010_v42  ;;  %vm7852_vm10 = vmmov %vm7851_vm12 }
 0x23d   : > { %7839 = vst [vmem:[#allocation7_spill] sm:$0xff] %v6727_v28  ;;  %vm1780_vm15 = vcmp.gt.f32.partialorder %v6727_v28, 0.0  ;;  %v1812_v34 = vmul.f32 0.2, %v6727_v28 }
 0x23e   : > { %4631 = vmatmul.msk.bf16.gmra.mxu0 %vm7844_vm13, %v2470_v39  ;;  %2411 = vst.msk [vmem:[#allocation3 + $0x57] sm:$0xff] %vm7845_vm6, %v5009_v5  ;;  %v7848_v39 = vld [vmem:[#allocation9_spill] sm:$0xff] }
 0x23f   : > { %v1844_v35 = vsel %vm1780_vm15, %v6727_v28, %v1812_v34  ;;  %v1480_v0 = vpop.f32.mrf.mxu1  ;;  %2009 = vst.msk [vmem:[#allocation3 + $0xd9] sm:$0xff] %vm7846_vm7, %v1976_v53  ;;  %vm7849_vm13 = vnez %v7848_v39  ;;  %vm7850_vm15 = vmmov %vm7846_vm7  ;;  %vm7855_vm7 = vcmask 392448  }
 0x240   : > { %v1673_v23 = vpop.f32.mrf.mxu2  ;;  %v1876_v43 = vpack.c.bf16 %v1844_v35, %v1844_v35  ;;  %v5081_v5 = vpack.i.bf16 %v1844_v35, %v1843_v36 }
 0x241   : > { %v1713_v19 = vadd.f32 %v1673_v23, %v1478_v33  ;;  %v4791_v33 = vld [vmem:[%s7452_s5 + $0x10] sm:$0xff] }
 0x242   : > { %v1945_v27 = vsel %vm5347_vm1, %v1876_v43, 0  ;;  %v2235_v29 = vsel %vm7849_vm13, %v1876_v43, 0  ;;  %5082 = vrot.lane.b32.xlu1 %v5081_v5, %s5284_s30  ;;  %v1481_v43 = vadd.f32 %v1480_v0, %v1380_v38  ;;  %3962 = vmatpush.bf16.msra.mxu3 %v4791_v33  ;;  %v7853_v38 = vld [vmem:[#allocation13_spill] sm:$0xff] }
 0x243   : > { %v6745_v42 = vadd.f32 %v6647_v56, %v1713_v19  ;;  %v1977_v49 = vunpack.c.l.bf16 %v1945_v27  ;;  %v2267_v34 = vunpack.c.l.bf16 %v2235_v29  ;;  %v1382_v19 = vpop.f32.mrf.mxu3 }
 0x245   : > { %7847 = vst [vmem:[#allocation11_spill] sm:$0xff] %v6745_v42  ;;  %vm1781_vm6 = vcmp.gt.f32.partialorder %v6745_v42, 0.0  ;;  %v1813_v53 = vmul.f32 0.2, %v6745_v42  ;;  %v2444_v23 = vld [vmem:[#allocation3 + $0x50] sm:$0xff]  ;;  %v2445_v36 = vld [vmem:[#allocation3 + $0x58] sm:$0xff]  ;;  %v5086_v35 = vpack.i.bf16 %v2267_v34, %v2266_v25 }
 0x246   : > { %2010 = vst.msk [vmem:[#allocation3 + $0xe1] sm:$0xff] %vm7850_vm15, %v1977_v49  ;;  %v2471_v54 = vpack.c.bf16 %v2445_v36, %v2444_v23  ;;  %vm7856_vm15 = vmmov %vm7855_vm7 }
 0x247   : > { %v1845_v27 = vsel %vm1781_vm6, %v6745_v42, %v1813_v53  ;;  %v1482_v49 = vpop.f32.mrf.mxu1  ;;  %5087 = vrot.lane.b32.xlu2 %v5086_v35, %s5285_s8 }
 0x248   : > { %v1676_v29 = vpop.f32.mrf.mxu2  ;;  %v1877_v28 = vpack.c.bf16 %v1845_v27, %v1845_v27  ;;  %4603 = vmatmul.msk.bf16.gmra.mxu3 %vm7851_vm12, %v2471_v54  ;;  %4664 = vmatmul.msk.bf16.gmra.mxu1 %vm7852_vm10, %v2471_v54  ;;  %vm7857_vm12 = vmmov %vm7852_vm10  ;;  %vm7858_vm10 = vcmask 130048   ;;  %v1483_v33 = vadd.f32 %v1482_v49, %v1382_v19 }
 0x249   : > { %v1714_v5 = vadd.f32 %v1676_v29, %v1481_v43  ;;  %v5018_v13 = vpop.permute.xlu0 %5017 }
 0x24a   : > { %v5020_v47 = vunpack.i.h.bf16 %v5018_v13  ;;  %v5019_v25 = vunpack.i.l.bf16 %v5018_v13  ;;  %v1946_v0 = vsel %vm6029_vm11, %v1877_v28, 0  ;;  %v4797_v13 = vld [vmem:[%s7452_s5 + $0x40] sm:$0xff]  ;;  %v2236_v43 = vsel %vm5347_vm1, %v1877_v28, 0 }
 0x24b   : > { %v6766_v34 = vadd.f32 %v6647_v56, %v1714_v5  ;;  %v1978_v53 = vunpack.c.l.bf16 %v1946_v0  ;;  %4172 = vmatpush.bf16.msra.mxu0 %v4797_v13  ;;  %v1385_v5 = vpop.f32.mrf.mxu3  ;;  %vm7870_vm11 = vcmask 392192  }
 0x24c   : > { %2413 = vst.msk [vmem:[#allocation3 + $0x67] sm:$0xff] %vm7855_vm7, %v5019_v25  ;;  %v7859_v25 = vld [vmem:[#allocation12_spill] sm:$0xff] }
 0x24d   : > { %7854 = vst [vmem:[#allocation9_spill] sm:$0xff] %v6766_v34  ;;  %vm1782_vm6 = vcmp.gt.f32.partialorder %v6766_v34, 0.0  ;;  %v1814_v57 = vmul.f32 0.2, %v6766_v34  ;;  %vm7860_vm7 = vnez %v7859_v25 }
 0x24e   : > { %2414 = vst.msk [vmem:[#allocation3 + $0x6f] sm:$0xff] %vm7856_vm15, %v5020_v47  ;;  %4632 = vmatmul.msk.bf16.gmra.mxu0 %vm7857_vm12, %v2471_v54  ;;  %vm7862_vm15 = vmmov %vm7858_vm10 }
 0x24f   : > { %2011 = vst.msk [vmem:[#allocation3 + $0xe9] sm:$0xff] %vm7858_vm10, %v1978_v53  ;;  %v1846_v23 = vsel %vm1782_vm6, %v6766_v34, %v1814_v57  ;;  %v1485_v47 = vpop.f32.mrf.mxu1  ;;  %v2268_v57 = vunpack.c.l.bf16 %v2236_v43  ;;  %vm7863_vm10 = vmmov %vm7857_vm12 }
 0x250   : > { %v1678_v36 = vpop.f32.mrf.mxu2  ;;  %v1878_v35 = vpack.c.bf16 %v1846_v23, %v1846_v23  ;;  %v5091_v42 = vpack.i.bf16 %v1846_v23, %v1845_v27 }
 0x251   : > { %v1715_v29 = vadd.f32 %v1678_v36, %v1483_v33  ;;  %v1486_v36 = vadd.f32 %v1485_v47, %v1385_v5 }
 0x252   : > { %v1947_v54 = vsel %vm5347_vm1, %v1878_v35, 0  ;;  %v2237_v0 = vsel %vm7860_vm7, %v1878_v35, 0  ;;  %5092 = vrot.lane.b32.xlu0 %v5091_v42, %s5284_s30  ;;  %vm7869_vm7 = vcmask 392448  }
 0x253   : > { %v6785_v53 = vadd.f32 %v6647_v56, %v1715_v29  ;;  %v1979_v19 = vunpack.c.l.bf16 %v1947_v54  ;;  %v2446_v49 = vld [vmem:[#allocation3 + $0x60] sm:$0xff]  ;;  %v2269_v34 = vunpack.c.l.bf16 %v2237_v0  ;;  %v5028_v29 = vpop.permute.xlu2 %5027  ;;  %v1387_v47 = vpop.f32.mrf.mxu3 }
 0x254   : > { %v5023_v23 = vpop.permute.xlu1 %5022  ;;  %v5029_v5 = vunpack.i.l.bf16 %v5028_v29 }
 0x255   : > { %7861 = vst [vmem:[#allocation13_spill] sm:$0xff] %v6785_v53  ;;  %v2447_v1 = vld [vmem:[#allocation3 + $0x68] sm:$0xff]  ;;  %vm1783_vm6 = vcmp.gt.f32.partialorder %v6785_v53, 0.0  ;;  %v1815_v28 = vmul.f32 0.2, %v6785_v53  ;;  %v5096_v33 = vpack.i.bf16 %v2269_v34, %v2268_v57  ;;  %v5025_v0 = vunpack.i.h.bf16 %v5023_v23 }
 0x256   : > { %2012 = vst.msk [vmem:[#allocation3 + $0xf1] sm:$0xff] %vm7862_vm15, %v1979_v19  ;;  %v2472_v13 = vpack.c.bf16 %v2447_v1, %v2446_v49  ;;  %v5024_v19 = vunpack.i.l.bf16 %v5023_v23  ;;  %v7864_v1 = vld [vmem:[#allocation14_spill] sm:$0xff] }
 0x257   : > { %5097 = vrot.lane.b32.xlu1 %v5096_v33, %s5285_s8  ;;  %v1847_v35 = vsel %vm1783_vm6, %v6785_v53, %v1815_v28  ;;  %vm7865_vm15 = vnez %v7864_v1  ;;  %v1487_v49 = vpop.f32.mrf.mxu1  ;;  %vm7867_vm6 = vcmask 261248   ;;  %v5030_v28 = vunpack.i.h.bf16 %v5028_v29 }
 0x258   : > { %v1681_v43 = vpop.f32.mrf.mxu2  ;;  %v1879_v54 = vpack.c.bf16 %v1847_v35, %v1847_v35  ;;  %4604 = vmatmul.msk.bf16.gmra.mxu3 %vm7857_vm12, %v2472_v13  ;;  %4665 = vmatmul.msk.bf16.gmra.mxu1 %vm7863_vm10, %v2472_v13  ;;  %2191 = vst.msk [vmem:[#allocation3 + $0x80] sm:$0xff] %vm7867_vm6, %v5025_v0  ;;  %vm7868_vm10 = vmmov %vm7867_vm6  ;;  %vm7872_vm6 = vcmask 130048  }
 0x259   : > { %v1716_v27 = vadd.f32 %v1681_v43, %v1486_v36  ;;  %2190 = vst.msk [vmem:[#allocation3 + $0x78] sm:$0xff] %vm7868_vm10, %v5024_v19  ;;  %v1488_v36 = vadd.f32 %v1487_v49, %v1387_v47 }
 0x25a   : > { %v1948_v34 = vsel %vm7865_vm15, %v1879_v54, 0  ;;  %2415 = vst.msk [vmem:[#allocation3 + $0x77] sm:$0xff] %vm7869_vm7, %v5029_v5  ;;  %vm7871_vm15 = vmmov %vm7869_vm7  ;;  %v2238_v29 = vsel %vm5347_vm1, %v1879_v54, 0 }
 0x25b   : > { %v6798_v42 = vadd.f32 %v6647_v56, %v1716_v27  ;;  %v1980_v57 = vunpack.c.l.bf16 %v1948_v34  ;;  %2416 = vst.msk [vmem:[#allocation3 + $0x7f] sm:$0xff] %vm7871_vm15, %v5030_v28  ;;  %vm7876_vm7 = vmmov %vm7868_vm10 }
 0x25c   : > { %v5043_v23 = vpop.permute.xlu2 %5042  ;;  %vm7877_vm15 = vmmov %vm7876_vm7 }
 0x25d   : > { %7866 = vst [vmem:[#allocation12_spill] sm:$0xff] %v6798_v42  ;;  %vm1784_vm12 = vcmp.gt.f32.partialorder %v6798_v42, 0.0  ;;  %v1816_v33 = vmul.f32 0.2, %v6798_v42  ;;  %v5045_v53 = vunpack.i.h.bf16 %v5043_v23  ;;  %v5044_v19 = vunpack.i.l.bf16 %v5043_v23 }
 0x25e   : > { %4633 = vmatmul.msk.bf16.gmra.mxu0 %vm7870_vm11, %v2472_v13  ;;  %2013 = vst.msk [vmem:[#allocation3 + $0xf9] sm:$0xff] %vm7872_vm6, %v1980_v57  ;;  %v7873_v13 = vld [vmem:[#allocation15_spill] sm:$0xff] }
 0x25f   : > { %v1848_v43 = vsel %vm1784_vm12, %v6798_v42, %v1816_v33  ;;  %vm7874_vm11 = vnez %v7873_v13  ;;  %2195 = vst.msk [vmem:[#allocation3 + $0xa0] sm:$0xff] %vm7876_vm7, %v5045_v53  ;;  %v2270_v33 = vunpack.c.l.bf16 %v2238_v29  ;;  %vm7878_vm12 = vmmov %vm7872_vm6  ;;  %vm7879_vm6 = vcmask 392192  }
 0x260   : > { %v1683_v27 = vpop.f32.mrf.mxu2  ;;  %v1880_v0 = vpack.c.bf16 %v1848_v43, %v1848_v43  ;;  %2194 = vst.msk [vmem:[#allocation3 + $0x98] sm:$0xff] %vm7877_vm15, %v5044_v19  ;;  %v5101_v54 = vpack.i.bf16 %v1848_v43, %v1847_v35  ;;  %vm7880_vm7 = vmmov %vm7879_vm6 }
 0x261   : > { %v1717_v34 = vadd.f32 %v1683_v27, %v1488_v36  ;;  %v2448_v27 = vld [vmem:[#allocation3 + $0x70] sm:$0xff] }
 0x262   : > { %v1949_v5 = vsel %vm5347_vm1, %v1880_v0, 0  ;;  %v2239_v47 = vsel %vm7874_vm11, %v1880_v0, 0  ;;  %5102 = vrot.lane.b32.xlu2 %v5101_v54, %s5284_s30  ;;  %vm7887_vm11 = vcmask 392192  }
 0x263   : > { %v6816_v49 = vadd.f32 %v6647_v56, %v1717_v34  ;;  %v1981_v28 = vunpack.c.l.bf16 %v1949_v5  ;;  %v2271_v57 = vunpack.c.l.bf16 %v2239_v47  ;;  %v2449_v56 = vld [vmem:[#allocation3 + $0x78] sm:$0xff]  ;;  %vm7890_vm13 = vmmov %vm7887_vm11 }
 0x264   : > { %v2473_v0 = vpack.c.bf16 %v2449_v56, %v2448_v27  ;;  %v5033_v29 = vpop.permute.xlu0 %5032  ;;  %v7881_v5 = vld [vmem:[#allocation16_spill] sm:$0xff] }
 0x265   : > { %7875 = vst [vmem:[#allocation14_spill] sm:$0xff] %v6816_v49  ;;  %v1817_v36 = vmul.f32 0.2, %v6816_v49  ;;  %v5106_v23 = vpack.i.bf16 %v2271_v57, %v2270_v33  ;;  %vm1785_vm10 = vcmp.gt.f32.partialorder %v6816_v49, 0.0  ;;  %v5035_v43 = vunpack.i.h.bf16 %v5033_v29 }
 0x266   : > { %2014 = vst.msk [vmem:[#allocation3 + $0x101] sm:$0xff] %vm7878_vm12, %v1981_v28  ;;  %v5034_v34 = vunpack.i.l.bf16 %v5033_v29  ;;  %vm7882_vm15 = vnez %v7881_v5  ;;  %vm7883_vm12 = vcmask 261248  }
 0x267   : > { %5107 = vrot.lane.b32.xlu0 %v5106_v23, %s5285_s8  ;;  %v6826_v53 = vsel %vm1785_vm10, %v6816_v49, %v1817_v36  ;;  %2193 = vst.msk [vmem:[#allocation3 + $0x90] sm:$0xff] %vm7883_vm12, %v5035_v43  ;;  %vm7884_vm10 = vmmov %vm7883_vm12 }
 0x268   : > { %v1881_v35 = vpack.c.bf16 %v6826_v53, %v6826_v53  ;;  %4605 = vmatmul.msk.bf16.gmra.mxu3 %vm7879_vm6, %v2473_v0  ;;  %4666 = vmatmul.msk.bf16.gmra.mxu1 %vm7880_vm7, %v2473_v0  ;;  %2192 = vst.msk [vmem:[#allocation3 + $0x88] sm:$0xff] %vm7884_vm10, %v5034_v34  ;;  %vm7885_vm6 = vcmask 392448   ;;  %vm7889_vm12 = vmmov %vm7887_vm11 }
 0x269   : > { %v5038_v19 = vpop.permute.xlu1 %5037  ;;  %vm7886_vm7 = vmmov %vm7885_vm6 }
 0x26a   : > { %v1950_v47 = vsel %vm7882_vm15, %v1881_v35, 0  ;;  %v2240_v28 = vsel %vm5347_vm1, %v1881_v35, 0  ;;  %v5040_v33 = vunpack.i.h.bf16 %v5038_v19  ;;  %v5039_v57 = vunpack.i.l.bf16 %v5038_v19  ;;  %vm7891_vm10 = vmmov %vm7885_vm6 }
 0x26b   : > { %v1982_v54 = vunpack.c.l.bf16 %v1950_v47  ;;  %v2272_v36 = vunpack.c.l.bf16 %v2240_v28  ;;  %vm7888_vm15 = vcmask 130048  }
 0x26c   : > { %2418 = vst.msk [vmem:[#allocation3 + $0x8f] sm:$0xff] %vm7885_vm6, %v5040_v33 }
 0x26d   : > { %2417 = vst.msk [vmem:[#allocation3 + $0x87] sm:$0xff] %vm7886_vm7, %v5039_v57  ;;  %2367 = vrot.lane.b32.xlu2 %v2272_v36, %s5285_s8  ;;  %vm7892_vm7 = vmmov %vm7887_vm11 }
 0x26e   : > { %4634 = vmatmul.msk.bf16.gmra.mxu0 %vm7887_vm11, %v2473_v0  ;;  %2015 = vst.msk [vmem:[#allocation3 + $0x109] sm:$0xff] %vm7888_vm15, %v1982_v54  ;;  %vm7893_vm11 = vmmov %vm7892_vm7 }
 0x26f   : > { %vm7894_vm15 = vmmov %vm7892_vm7 }
 0x271   : > { %v5058_v33 = vpop.permute.xlu2 %5057 }
 0x274   : > { %v2450_v27 = vld [vmem:[#allocation3 + $0x80] sm:$0xff]  ;;  %v2451_v23 = vld [vmem:[#allocation3 + $0x88] sm:$0xff] }
 0x275   : > { %v2474_v56 = vpack.c.bf16 %v2451_v23, %v2450_v27  ;;  %v5059_v23 = vunpack.i.l.bf16 %v5058_v33 }
 0x278   : > { %4606 = vmatmul.msk.bf16.gmra.mxu3 %vm7889_vm12, %v2474_v56  ;;  %4667 = vmatmul.msk.bf16.gmra.mxu1 %vm7890_vm13, %v2474_v56  ;;  %vm7895_vm13 = vcmask 261248  }
 0x279   : > { %v5048_v29 = vpop.permute.xlu0 %5047  ;;  %vm7896_vm12 = vmmov %vm7895_vm13 }
 0x27a   : > { %v5050_v35 = vunpack.i.h.bf16 %v5048_v29  ;;  %v5049_v43 = vunpack.i.l.bf16 %v5048_v29 }
 0x27b   : > { %v2683_v34 = vpop.f32.mrf.mxu0 }
 0x27c   : > { %2419 = vst.msk [vmem:[#allocation3 + $0x97] sm:$0xff] %vm7891_vm10, %v5049_v43  ;;  %vm7897_vm10 = vmmov %vm7885_vm6 }
 0x27d   : > { %2420 = vst.msk [vmem:[#allocation3 + $0x9f] sm:$0xff] %vm7885_vm6, %v5050_v35  ;;  %v5060_v35 = vunpack.i.h.bf16 %v5058_v33 }
 0x27e   : > { %4635 = vmatmul.msk.bf16.gmra.mxu0 %vm7892_vm7, %v2474_v56 }
 0x283   : > { %v2685_v0 = vpop.f32.mrf.mxu0  ;;  %v2452_v19 = vld [vmem:[#allocation3 + $0x90] sm:$0xff] }
 0x284   : > { %v2453_v47 = vld [vmem:[#allocation3 + $0x98] sm:$0xff]  ;;  %v5053_v57 = vpop.permute.xlu1 %5052 }
 0x285   : > { %v2475_v28 = vpack.c.bf16 %v2453_v47, %v2452_v19  ;;  %v5055_v54 = vunpack.i.h.bf16 %v5053_v57  ;;  %v5054_v36 = vunpack.i.l.bf16 %v5053_v57 }
 0x286   : > { %v2573_v27 = vpop.f32.mrf.mxu3 }
 0x287   : > { %2197 = vst.msk [vmem:[#allocation3 + $0xb0] sm:$0xff] %vm7895_vm13, %v5055_v54  ;;  %v2684_v33 = vadd.f32 %v2683_v34, %v2573_v27  ;;  %vm7900_vm13 = vmmov %vm7892_vm7 }
 0x288   : > { %4607 = vmatmul.msk.bf16.gmra.mxu3 %vm7893_vm11, %v2475_v28  ;;  %4668 = vmatmul.msk.bf16.gmra.mxu1 %vm7894_vm15, %v2475_v28  ;;  %2196 = vst.msk [vmem:[#allocation3 + $0xa8] sm:$0xff] %vm7896_vm12, %v5054_v36  ;;  %vm7898_vm11 = vmmov %vm7896_vm12  ;;  %v6862_v36 = vld [vmem:[%s7451_s4] ss:$0 sm:$0xff] }
 0x289   : > { %2421 = vst.msk [vmem:[#allocation3 + $0xa7] sm:$0xff] %vm7897_vm10, %v5059_v23  ;;  %vm7899_vm15 = vmmov %vm7898_vm11 }
 0x28a   : > { %2422 = vst.msk [vmem:[#allocation3 + $0xaf] sm:$0xff] %vm7885_vm6, %v5060_v35  ;;  %vm7901_vm12 = vmmov %vm7892_vm7 }
 0x28b   : > { %v2688_v29 = vpop.f32.mrf.mxu0  ;;  %vm7902_vm6 = vmmov %vm7898_vm11 }
 0x28c   : > { %v5073_v56 = vpop.permute.xlu2 %5072 }
 0x28d   : > { %v5075_v43 = vunpack.i.h.bf16 %v5073_v56  ;;  %v5074_v19 = vunpack.i.l.bf16 %v5073_v56 }
 0x28e   : > { %4636 = vmatmul.msk.bf16.gmra.mxu0 %vm7892_vm7, %v2475_v28  ;;  %v2575_v57 = vpop.f32.mrf.mxu3  ;;  %vm7903_vm7 = vmmov %vm7902_vm6 }
 0x28f   : > { %2201 = vst.msk [vmem:[#allocation3 + $0xd0] sm:$0xff] %vm7898_vm11, %v5075_v43  ;;  %vm7904_vm11 = vcmask 392448  }
 0x290   : > { %2200 = vst.msk [vmem:[#allocation3 + $0xc8] sm:$0xff] %vm7899_vm15, %v5074_v19  ;;  %v2454_v54 = vld [vmem:[#allocation3 + $0xa0] sm:$0xff]  ;;  %vm7905_vm15 = vmmov %vm7904_vm11 }
 0x291   : > { %v2455_v23 = vld [vmem:[#allocation3 + $0xa8] sm:$0xff] }
 0x292   : > { %v2476_v28 = vpack.c.bf16 %v2455_v23, %v2454_v54 }
 0x293   : > { %v6856_v47 = vpop.f32.mrf.mxu0 }
 0x294   : > { %v5063_v42 = vpop.permute.xlu0 %5062 }
 0x295   : > { %v2893_v35 = vpop.f32.mrf.mxu1  ;;  %v5065_v43 = vunpack.i.h.bf16 %v5063_v42  ;;  %v5064_v19 = vunpack.i.l.bf16 %v5063_v42 }
 0x296   : > { %v2973_v49 = vadd.f32 %v2893_v35, %v2684_v33  ;;  %v2686_v33 = vadd.f32 %v2685_v0, %v2575_v57  ;;  %v4793_v57 = vld [vmem:[%s7452_s5 + $0x20] sm:$0xff] }
 0x297   : > { %2199 = vst.msk [vmem:[#allocation3 + $0xc0] sm:$0xff] %vm7902_vm6, %v5065_v43  ;;  %3853 = vmatpush.bf16.msra.mxu2 %v4793_v57 }
 0x298   : > { %v3009_v56 = vadd.f32 %v6862_v36, %v2973_v49  ;;  %4608 = vmatmul.msk.bf16.gmra.mxu3 %vm7900_vm13, %v2476_v28  ;;  %4669 = vmatmul.msk.bf16.gmra.mxu1 %vm7901_vm12, %v2476_v28  ;;  %2198 = vst.msk [vmem:[#allocation3 + $0xb8] sm:$0xff] %vm7903_vm7, %v5064_v19  ;;  %vm7906_vm13 = vmmov %vm7901_vm12  ;;  %vm7907_vm12 = vcmask 130048  }
 0x299   : > { %v5068_v62 = vpop.permute.xlu1 %5067  ;;  %vm7909_vm6 = vmmov %vm7906_vm13 }
 0x29a   : > { %v5070_v34 = vunpack.i.h.bf16 %v5068_v62  ;;  %v5069_v27 = vunpack.i.l.bf16 %v5068_v62  ;;  %vm3041_vm10 = vcmp.gt.f32.partialorder %v3009_v56, 0.0  ;;  %v3073_v4 = vmul.f32 0.2, %v3009_v56  ;;  %vm7910_vm7 = vmmov %vm7909_vm6 }
 0x29b   : > { %v6868_v16 = vpop.f32.mrf.mxu0  ;;  %v2578_v54 = vpop.f32.mrf.mxu3 }
 0x29c   : > { %v3105_v49 = vsel %vm3041_vm10, %v3009_v56, %v3073_v4  ;;  %2424 = vst.msk [vmem:[#allocation3 + $0xbf] sm:$0xff] %vm7904_vm11, %v5070_v34  ;;  %v2689_v34 = vadd.f32 %v2688_v29, %v2578_v54  ;;  %vm7911_vm11 = vmmov %vm7907_vm12 }
 0x29d   : > { %v3137_v23 = vpack.c.bf16 %v3105_v49, %v3105_v49  ;;  %2423 = vst.msk [vmem:[#allocation3 + $0xb7] sm:$0xff] %vm7905_vm15, %v5069_v27  ;;  %v2895_v42 = vpop.f32.mrf.mxu1  ;;  %v5111_v19 = vpack.i.bf16 %v3105_v49, %v6826_v53 }
 0x29e   : > { %4637 = vmatmul.msk.bf16.gmra.mxu0 %vm7906_vm13, %v2476_v28  ;;  %v2974_v62 = vadd.f32 %v2895_v42, %v2686_v33  ;;  %v4790_v28 = vld [vmem:[%s7452_s5 + $0x8] sm:$0xff]  ;;  %vm7914_vm13 = vmmov %vm7909_vm6 }
 0x29f   : > { %v3205_v35 = vsel %vm5347_vm1, %v3137_v23, 0  ;;  %5112 = vrot.lane.b32.xlu1 %v5111_v19, %s5284_s30  ;;  %3963 = vmatpush.bf16.msra.mxu3 %v4790_v28  ;;  %v3493_v22 = vsel %vm5548_vm14, %v3137_v23, 0  ;;  %vm7912_vm14 = vcmask 392448  }
 0x2a0   : > { %v3237_v43 = vunpack.c.l.bf16 %v3205_v35  ;;  %v3010_v14 = vadd.f32 %v6862_v36, %v2974_v62 }
 0x2a2   : > { %3269 = vst.msk [vmem:[#allocation4 + $0x11] sm:$0xff] %vm7907_vm12, %v3237_v43  ;;  %vm3042_vm10 = vcmp.gt.f32.partialorder %v3010_v14, 0.0  ;;  %v3074_v4 = vmul.f32 0.2, %v3010_v14  ;;  %vm7915_vm12 = vmmov %vm7911_vm11 }
 0x2a3   : > { %v6879_v0 = vpop.f32.mrf.mxu0  ;;  %v2580_v56 = vpop.f32.mrf.mxu3 }
 0x2a4   : > { %v3106_v27 = vsel %vm3042_vm10, %v3010_v14, %v3074_v4  ;;  %v2456_v53 = vld [vmem:[#allocation3 + $0xb0] sm:$0xff]  ;;  %v2457_v33 = vld [vmem:[#allocation3 + $0xb8] sm:$0xff]  ;;  %v3525_v4 = vunpack.c.l.bf16 %v3493_v22 }
 0x2a5   : > { %v3138_v49 = vpack.c.bf16 %v3106_v27, %v3106_v27  ;;  %v2898_v42 = vpop.f32.mrf.mxu1  ;;  %v2477_v62 = vpack.c.bf16 %v2457_v33, %v2456_v53  ;;  %v2691_v33 = vadd.f32 %v6856_v47, %v2580_v56 }
 0x2a6   : > { %v2975_v35 = vadd.f32 %v2898_v42, %v2689_v34 }
 0x2a7   : > { %v3206_v52 = vsel %vm5728_vm0, %v3138_v49, 0  ;;  %v3494_v7 = vsel %vm5347_vm1, %v3138_v49, 0  ;;  %vm7913_vm0 = vmmov %vm7912_vm14 }
 0x2a8   : > { %v3238_v19 = vunpack.c.l.bf16 %v3206_v52  ;;  %v3011_v14 = vadd.f32 %v6862_v36, %v2975_v35  ;;  %4609 = vmatmul.msk.bf16.gmra.mxu3 %vm7909_vm6, %v2477_v62  ;;  %4670 = vmatmul.msk.bf16.gmra.mxu1 %vm7910_vm7, %v2477_v62  ;;  %v3526_v29 = vunpack.c.l.bf16 %v3494_v7  ;;  %v4796_v52 = vld [vmem:[%s7452_s5 + $0x38] sm:$0xff]  ;;  %vm7918_vm7 = vmmov %vm7911_vm11 }
 0x2a9   : > { %v5078_v54 = vpop.permute.xlu0 %5077  ;;  %4173 = vmatpush.bf16.msra.mxu0 %v4796_v52 }
 0x2aa   : > { %3270 = vst.msk [vmem:[#allocation4 + $0x19] sm:$0xff] %vm7911_vm11, %v3238_v19  ;;  %vm3043_vm15 = vcmp.gt.f32.partialorder %v3011_v14, 0.0  ;;  %v3075_v23 = vmul.f32 0.2, %v3011_v14  ;;  %v5080_v57 = vunpack.i.h.bf16 %v5078_v54  ;;  %v5079_v32 = vunpack.i.l.bf16 %v5078_v54 }
 0x2ab   : > { %v6898_v28 = vpop.f32.mrf.mxu0  ;;  %v2583_v34 = vpop.f32.mrf.mxu3  ;;  %v5116_v53 = vpack.i.bf16 %v3526_v29, %v3525_v4 }
 0x2ac   : > { %v3107_v49 = vsel %vm3043_vm15, %v3011_v14, %v3075_v23  ;;  %2425 = vst.msk [vmem:[#allocation3 + $0xc7] sm:$0xff] %vm7912_vm14, %v5079_v32  ;;  %v2694_v21 = vadd.f32 %v6868_v16, %v2583_v34  ;;  %vm7919_vm15 = vcmask 261248   ;;  %vm7921_vm14 = vmmov %vm7913_vm0 }
 0x2ad   : > { %v3139_v7 = vpack.c.bf16 %v3107_v49, %v3107_v49  ;;  %2426 = vst.msk [vmem:[#allocation3 + $0xcf] sm:$0xff] %vm7913_vm0, %v5080_v57  ;;  %5117 = vrot.lane.b32.xlu1 %v5116_v53, %s5285_s8  ;;  %v2900_v22 = vpop.f32.mrf.mxu1  ;;  %v5121_v14 = vpack.i.bf16 %v3107_v49, %v3106_v27 }
 0x2ae   : > { %4638 = vmatmul.msk.bf16.gmra.mxu0 %vm7914_vm13, %v2477_v62  ;;  %v2976_v42 = vadd.f32 %v2900_v22, %v2691_v33  ;;  %v5088_v33 = vpop.permute.xlu2 %5087  ;;  %vm7923_vm13 = vmmov %vm7921_vm14 }
 0x2af   : > { %v3207_v35 = vsel %vm5347_vm1, %v3139_v7, 0  ;;  %v3495_v43 = vsel %vm5538_vm5, %v3139_v7, 0  ;;  %5122 = vrot.lane.b32.xlu0 %v5121_v14, %s5284_s30  ;;  %vm7916_vm5 = vmmov %vm7909_vm6 }
 0x2b0   : > { %v3239_v47 = vunpack.c.l.bf16 %v3207_v35  ;;  %v3012_v56 = vadd.f32 %v6862_v36, %v2976_v42  ;;  %v3527_v19 = vunpack.c.l.bf16 %v3495_v43  ;;  %vm7917_vm6 = vmmov %vm7916_vm5 }
 0x2b1   : > { %vm7922_vm0 = vmmov %vm7916_vm5 }
 0x2b2   : > { %3271 = vst.msk [vmem:[#allocation4 + $0x21] sm:$0xff] %vm7915_vm12, %v3239_v47  ;;  %vm3044_vm10 = vcmp.gt.f32.partialorder %v3012_v56, 0.0  ;;  %v3076_v29 = vmul.f32 0.2, %v3012_v56  ;;  %3593 = vrot.lane.b32.xlu2 %v3527_v19, %s5285_s8  ;;  %v5089_v47 = vunpack.i.l.bf16 %v5088_v33  ;;  %vm7924_vm12 = vnez %v7588_v18 }
 0x2b3   : > { %v6915_v54 = vpop.f32.mrf.mxu0  ;;  %v2585_v62 = vpop.f32.mrf.mxu3  ;;  %v2458_v4 = vld [vmem:[#allocation3 + $0xc0] sm:$0xff] }
 0x2b4   : > { %v3108_v23 = vsel %vm3044_vm10, %v3012_v56, %v3076_v29  ;;  %v2459_v57 = vld [vmem:[#allocation3 + $0xc8] sm:$0xff]  ;;  %v5083_v7 = vpop.permute.xlu1 %5082  ;;  %v5090_v56 = vunpack.i.h.bf16 %v5088_v33  ;;  %v2696_v19 = vadd.f32 %v6879_v0, %v2585_v62  ;;  %vm7925_vm10 = vmmov %vm7918_vm7 }
 0x2b5   : > { %v3140_v32 = vpack.c.bf16 %v3108_v23, %v3108_v23  ;;  %v2903_v52 = vpop.f32.mrf.mxu1  ;;  %v2478_v53 = vpack.c.bf16 %v2459_v57, %v2458_v4  ;;  %v5085_v35 = vunpack.i.h.bf16 %v5083_v7  ;;  %v5084_v16 = vunpack.i.l.bf16 %v5083_v7 }
 0x2b6   : > { %v2977_v27 = vadd.f32 %v2903_v52, %v2694_v21 }
 0x2b7   : > { %v3208_v49 = vsel %vm5747_vm4, %v3140_v32, 0  ;;  %2203 = vst.msk [vmem:[#allocation3 + $0xe0] sm:$0xff] %vm7919_vm15, %v5085_v35  ;;  %vm7920_vm4 = vmmov %vm7919_vm15  ;;  %v3496_v57 = vsel %vm5347_vm1, %v3140_v32, 0 }
 0x2b8   : > { %v3240_v22 = vunpack.c.l.bf16 %v3208_v49  ;;  %v3013_v42 = vadd.f32 %v6862_v36, %v2977_v27  ;;  %4610 = vmatmul.msk.bf16.gmra.mxu3 %vm7916_vm5, %v2478_v53  ;;  %4671 = vmatmul.msk.bf16.gmra.mxu1 %vm7917_vm6, %v2478_v53  ;;  %2202 = vst.msk [vmem:[#allocation3 + $0xd8] sm:$0xff] %vm7920_vm4, %v5084_v16  ;;  %vm7926_vm6 = vmmov %vm7920_vm4 }
 0x2b9   : > { %2427 = vst.msk [vmem:[#allocation3 + $0xd7] sm:$0xff] %vm7921_vm14, %v5089_v47  ;;  %vm7929_vm15 = vmmov %vm7922_vm0 }
 0x2ba   : > { %3272 = vst.msk [vmem:[#allocation4 + $0x29] sm:$0xff] %vm7918_vm7, %v3240_v22  ;;  %vm3045_vm11 = vcmp.gt.f32.partialorder %v3013_v42, 0.0  ;;  %v3077_v34 = vmul.f32 0.2, %v3013_v42  ;;  %vm7927_vm7 = vmmov %vm7920_vm4 }
 0x2bb   : > { %v6925_v43 = vpop.f32.mrf.mxu0  ;;  %v2588_v48 = vpop.f32.mrf.mxu3  ;;  %2428 = vst.msk [vmem:[#allocation3 + $0xdf] sm:$0xff] %vm7923_vm13, %v5090_v56  ;;  %vm7930_vm4 = vmmov %vm7925_vm10 }
 0x2bc   : > { %v3109_v14 = vsel %vm3045_vm11, %v3013_v42, %v3077_v34  ;;  %v5103_v27 = vpop.permute.xlu2 %5102  ;;  %v2699_v34 = vadd.f32 %v6898_v28, %v2588_v48  ;;  %vm7928_vm11 = vmmov %vm7922_vm0 }
 0x2bd   : > { %v3141_v29 = vpack.c.bf16 %v3109_v14, %v3109_v14  ;;  %v2905_v4 = vpop.f32.mrf.mxu1  ;;  %v5105_v49 = vunpack.i.h.bf16 %v5103_v27  ;;  %v5104_v7 = vunpack.i.l.bf16 %v5103_v27  ;;  %v5126_v22 = vpack.i.bf16 %v3109_v14, %v3108_v23 }
 0x2be   : > { %4639 = vmatmul.msk.bf16.gmra.mxu0 %vm7922_vm0, %v2478_v53  ;;  %v2978_v21 = vadd.f32 %v2905_v4, %v2696_v19  ;;  %v3528_v53 = vunpack.c.l.bf16 %v3496_v57  ;;  %vm7932_vm0 = vmmov %vm7926_vm6 }
 0x2bf   : > { %v3209_v52 = vsel %vm5347_vm1, %v3141_v29, 0  ;;  %v3497_v0 = vsel %vm7924_vm12, %v3141_v29, 0  ;;  %2207 = vst.msk [vmem:[#allocation3 + $0x100] sm:$0xff] %vm7926_vm6, %v5105_v49  ;;  %5127 = vrot.lane.b32.xlu0 %v5126_v22, %s5284_s30  ;;  %vm7933_vm12 = vmmov %vm7928_vm11 }
 0x2c0   : > { %v3241_v62 = vunpack.c.l.bf16 %v3209_v52  ;;  %v3014_v33 = vadd.f32 %v6862_v36, %v2978_v21  ;;  %v3529_v42 = vunpack.c.l.bf16 %v3497_v0  ;;  %2206 = vst.msk [vmem:[#allocation3 + $0xf8] sm:$0xff] %vm7927_vm7, %v5104_v7  ;;  %v2460_v23 = vld [vmem:[#allocation3 + $0xd0] sm:$0xff]  ;;  %vm7938_vm7 = vmmov %vm7928_vm11 }
 0x2c2   : > { %3273 = vst.msk [vmem:[#allocation4 + $0x31] sm:$0xff] %vm7925_vm10, %v3241_v62  ;;  %vm3046_vm5 = vcmp.gt.f32.partialorder %v3014_v33, 0.0  ;;  %v3078_v35 = vmul.f32 0.2, %v3014_v33  ;;  %v5131_v18 = vpack.i.bf16 %v3529_v42, %v3528_v53  ;;  %v2461_v14 = vld [vmem:[#allocation3 + $0xd8] sm:$0xff]  ;;  %vm7934_vm10 = vmmov %vm7923_vm13 }
 0x2c3   : > { %v6941_v32 = vpop.f32.mrf.mxu0  ;;  %v2590_v16 = vpop.f32.mrf.mxu3  ;;  %v2479_v4 = vpack.c.bf16 %v2461_v14, %v2460_v23 }
 0x2c4   : > { %v3110_v47 = vsel %vm3046_vm5, %v3014_v33, %v3078_v35  ;;  %5132 = vrot.lane.b32.xlu1 %v5131_v18, %s5285_s8  ;;  %v5093_v57 = vpop.permute.xlu0 %5092  ;;  %v2701_v22 = vadd.f32 %v6915_v54, %v2590_v16  ;;  %vm7936_vm5 = vmmov %vm7930_vm4 }
 0x2c5   : > { %v3142_v56 = vpack.c.bf16 %v3110_v47, %v3110_v47  ;;  %v2908_v19 = vpop.f32.mrf.mxu1  ;;  %v5095_v28 = vunpack.i.h.bf16 %v5093_v57  ;;  %v5094_v48 = vunpack.i.l.bf16 %v5093_v57 }
 0x2c6   : > { %v2979_v29 = vadd.f32 %v2908_v19, %v2699_v34 }
 0x2c7   : > { %v3210_v21 = vsel %vm5762_vm9, %v3142_v56, 0  ;;  %vm7931_vm9 = vmmov %vm7926_vm6  ;;  %2204 = vst.msk [vmem:[#allocation3 + $0xe8] sm:$0xff] %vm7932_vm0, %v5094_v48  ;;  %v3498_v18 = vsel %vm5347_vm1, %v3142_v56, 0 }
 0x2c8   : > { %v3242_v52 = vunpack.c.l.bf16 %v3210_v21  ;;  %v3015_v27 = vadd.f32 %v6862_v36, %v2979_v29  ;;  %4611 = vmatmul.msk.bf16.gmra.mxu3 %vm7928_vm11, %v2479_v4  ;;  %4672 = vmatmul.msk.bf16.gmra.mxu1 %vm7929_vm15, %v2479_v4  ;;  %2205 = vst.msk [vmem:[#allocation3 + $0xf0] sm:$0xff] %vm7931_vm9, %v5095_v28  ;;  %v3530_v29 = vunpack.c.l.bf16 %v3498_v18  ;;  %vm7939_vm11 = vmmov %vm7938_vm7 }
 0x2c9   : > { %v5098_v0 = vpop.permute.xlu1 %5097  ;;  %vm7940_vm15 = vmmov %vm7930_vm4 }
 0x2ca   : > { %v5100_v62 = vunpack.i.h.bf16 %v5098_v0  ;;  %3274 = vst.msk [vmem:[#allocation4 + $0x39] sm:$0xff] %vm7930_vm4, %v3242_v52  ;;  %vm3047_vm14 = vcmp.gt.f32.partialorder %v3015_v27, 0.0  ;;  %v3079_v33 = vmul.f32 0.2, %v3015_v27  ;;  %v5099_v49 = vunpack.i.l.bf16 %v5098_v0  ;;  %vm7942_vm9 = vmmov %vm7934_vm10 }
 0x2cb   : > { %v6954_v7 = vpop.f32.mrf.mxu0  ;;  %v2593_v61 = vpop.f32.mrf.mxu3  ;;  %vm7943_vm0 = vmmov %vm7938_vm7 }
 0x2cc   : > { %v3111_v53 = vsel %vm3047_vm14, %v3015_v27, %v3079_v33  ;;  %2430 = vst.msk [vmem:[#allocation3 + $0xef] sm:$0xff] %vm7923_vm13, %v5100_v62  ;;  %v2704_v28 = vadd.f32 %v6925_v43, %v2593_v61  ;;  %vm7941_vm14 = vmmov %vm7934_vm10  ;;  %vm7944_vm13 = vnez %v7561_v17 }
 0x2cd   : > { %v3143_v42 = vpack.c.bf16 %v3111_v53, %v3111_v53  ;;  %v2910_v35 = vpop.f32.mrf.mxu1  ;;  %2429 = vst.msk [vmem:[#allocation3 + $0xe7] sm:$0xff] %vm7934_vm10, %v5099_v49  ;;  %v5136_v57 = vpack.i.bf16 %v3111_v53, %v3110_v47 }
 0x2ce   : > { %4640 = vmatmul.msk.bf16.gmra.mxu0 %vm7933_vm12, %v2479_v4  ;;  %v2980_v34 = vadd.f32 %v2910_v35, %v2701_v22  ;;  %vm7945_vm12 = vmmov %vm7936_vm5 }
 0x2cf   : > { %v3211_v23 = vsel %vm5347_vm1, %v3143_v42, 0  ;;  %v3499_v54 = vsel %vm5612_vm8, %v3143_v42, 0  ;;  %5137 = vrot.lane.b32.xlu2 %v5136_v57, %s5284_s30  ;;  %vm7937_vm8 = vnez %v7586_v55 }
 0x2d0   : > { %v3243_v16 = vunpack.c.l.bf16 %v3211_v23  ;;  %v3016_v14 = vadd.f32 %v6862_v36, %v2980_v34  ;;  %v3531_v21 = vunpack.c.l.bf16 %v3499_v54 }
 0x2d2   : > { %3275 = vst.msk [vmem:[#allocation4 + $0x41] sm:$0xff] %vm7936_vm5, %v3243_v16  ;;  %vm3048_vm6 = vcmp.gt.f32.partialorder %v3016_v14, 0.0  ;;  %v3080_v4 = vmul.f32 0.2, %v3016_v14  ;;  %v5141_v56 = vpack.i.bf16 %v3531_v21, %v3530_v29  ;;  %vm7946_vm5 = vnez %v7606_v60 }
 0x2d3   : > { %v6970_v52 = vpop.f32.mrf.mxu0  ;;  %v2595_v27 = vpop.f32.mrf.mxu3 }
 0x2d4   : > { %v3112_v48 = vsel %vm3048_vm6, %v3016_v14, %v3080_v4  ;;  %5142 = vrot.lane.b32.xlu0 %v5141_v56, %s5285_s8  ;;  %v2462_v33 = vld [vmem:[#allocation3 + $0xe0] sm:$0xff]  ;;  %v2463_v49 = vld [vmem:[#allocation3 + $0xe8] sm:$0xff]  ;;  %v2706_v19 = vadd.f32 %v6941_v32, %v2595_v27  ;;  %vm7947_vm6 = vmmov %vm7943_vm0 }
 0x2d5   : > { %v3144_v0 = vpack.c.bf16 %v3112_v48, %v3112_v48  ;;  %v2913_v62 = vpop.f32.mrf.mxu1  ;;  %v2480_v22 = vpack.c.bf16 %v2463_v49, %v2462_v33 }
 0x2d6   : > { %v2981_v47 = vadd.f32 %v2913_v62, %v2704_v28 }
 0x2d7   : > { %v3212_v53 = vsel %vm7937_vm8, %v3144_v0, 0  ;;  %v3500_v29 = vsel %vm5347_vm1, %v3144_v0, 0  ;;  %vm7948_vm8 = vmmov %vm7943_vm0 }
 0x2d8   : > { %v3244_v42 = vunpack.c.l.bf16 %v3212_v53  ;;  %v3017_v35 = vadd.f32 %v6862_v36, %v2981_v47  ;;  %4612 = vmatmul.msk.bf16.gmra.mxu3 %vm7938_vm7, %v2480_v22  ;;  %4673 = vmatmul.msk.bf16.gmra.mxu1 %vm7939_vm11, %v2480_v22  ;;  %v3532_v27 = vunpack.c.l.bf16 %v3500_v29  ;;  %vm7949_vm7 = vmmov %vm7945_vm12 }
 0x2d9   : > { %v5108_v43 = vpop.permute.xlu0 %5107 }
 0x2da   : > { %v5110_v61 = vunpack.i.h.bf16 %v5108_v43  ;;  %v5109_v18 = vunpack.i.l.bf16 %v5108_v43  ;;  %3276 = vst.msk [vmem:[#allocation4 + $0x49] sm:$0xff] %vm7940_vm15, %v3244_v42  ;;  %vm3049_vm4 = vcmp.gt.f32.partialorder %v3017_v35, 0.0  ;;  %v3081_v34 = vmul.f32 0.2, %v3017_v35  ;;  %vm7950_vm15 = vmmov %vm7943_vm0 }
 0x2db   : > { %v6981_v23 = vpop.f32.mrf.mxu0  ;;  %v2598_v55 = vpop.f32.mrf.mxu3 }
 0x2dc   : > { %2431 = vst.msk [vmem:[#allocation3 + $0xf7] sm:$0xff] %vm7941_vm14, %v5109_v18  ;;  %v3113_v54 = vsel %vm3049_vm4, %v3017_v35, %v3081_v34  ;;  %v2709_v17 = vadd.f32 %v6954_v7, %v2598_v55  ;;  %vm7951_vm4 = vnez %v7563_v26  ;;  %vm7952_vm14 = vmmov %vm7949_vm7 }
 0x2dd   : > { %2432 = vst.msk [vmem:[#allocation3 + $0xff] sm:$0xff] %vm7942_vm9, %v5110_v61  ;;  %v3145_v16 = vpack.c.bf16 %v3113_v54, %v3113_v54  ;;  %v2915_v14 = vpop.f32.mrf.mxu1  ;;  %v5146_v62 = vpack.i.bf16 %v3113_v54, %v3112_v48 }
 0x2de   : > { %4641 = vmatmul.msk.bf16.gmra.mxu0 %vm7943_vm0, %v2480_v22  ;;  %v2982_v21 = vadd.f32 %v2915_v14, %v2706_v19  ;;  %vm7953_vm0 = vnez %v7611_v11 }
 0x2df   : > { %v3213_v57 = vsel %vm5347_vm1, %v3145_v16, 0  ;;  %v3501_v4 = vsel %vm7944_vm13, %v3145_v16, 0  ;;  %5147 = vrot.lane.b32.xlu1 %v5146_v62, %s5284_s30  ;;  %vm7954_vm13 = vmmov %vm7949_vm7 }
 0x2e0   : > { %v3245_v56 = vunpack.c.l.bf16 %v3213_v57  ;;  %v3018_v32 = vadd.f32 %v6862_v36, %v2982_v21  ;;  %v3533_v28 = vunpack.c.l.bf16 %v3501_v4 }
 0x2e2   : > { %3277 = vst.msk [vmem:[#allocation4 + $0x51] sm:$0xff] %vm7945_vm12, %v3245_v56  ;;  %vm3050_vm10 = vcmp.gt.f32.partialorder %v3018_v32, 0.0  ;;  %v3082_v33 = vmul.f32 0.2, %v3018_v32  ;;  %v5151_v49 = vpack.i.bf16 %v3533_v28, %v3532_v27 }
 0x2e3   : > { %v2715_v47 = vpop.f32.mrf.mxu0  ;;  %v2464_v0 = vld [vmem:[#allocation3 + $0xf0] sm:$0xff]  ;;  %v2600_v22 = vpop.f32.mrf.mxu3 }
 0x2e4   : > { %v2465_v53 = vld [vmem:[#allocation3 + $0xf8] sm:$0xff]  ;;  %v3114_v42 = vsel %vm3050_vm10, %v3018_v32, %v3082_v33  ;;  %5152 = vrot.lane.b32.xlu2 %v5151_v49, %s5285_s8  ;;  %v2711_v16 = vadd.f32 %v6970_v52, %v2600_v22  ;;  %vm7955_vm10 = vnez %v7573_v31 }
 0x2e5   : > { %v2481_v35 = vpack.c.bf16 %v2465_v53, %v2464_v0  ;;  %v3146_v43 = vpack.c.bf16 %v3114_v42, %v3114_v42  ;;  %v2918_v61 = vpop.f32.mrf.mxu1 }
 0x2e6   : > { %v2983_v48 = vadd.f32 %v2918_v61, %v2709_v17 }
 0x2e7   : > { %v3214_v18 = vsel %vm7946_vm5, %v3146_v43, 0  ;;  %v3502_v60 = vsel %vm5347_vm1, %v3146_v43, 0  ;;  %vm7956_vm5 = vmmov %vm7949_vm7 }
 0x2e8   : > { %v3246_v34 = vunpack.c.l.bf16 %v3214_v18  ;;  %v3019_v19 = vadd.f32 %v6862_v36, %v2983_v48  ;;  %4613 = vmatmul.msk.bf16.gmra.mxu3 %vm7947_vm6, %v2481_v35  ;;  %4674 = vmatmul.msk.bf16.gmra.mxu1 %vm7948_vm8, %v2481_v35  ;;  %v3534_v28 = vunpack.c.l.bf16 %v3502_v60  ;;  %vm7957_vm8 = vnez %v7614_v24 }
 0x2ea   : > { %3278 = vst.msk [vmem:[#allocation4 + $0x59] sm:$0xff] %vm7949_vm7, %v3246_v34  ;;  %vm3051_vm11 = vcmp.gt.f32.partialorder %v3019_v19, 0.0  ;;  %v3083_v7 = vmul.f32 0.2, %v3019_v19  ;;  %v4789_v34 = vld [vmem:[%s7452_s5] sm:$0xff]  ;;  %vm7958_vm7 = vmmov %vm7956_vm5 }
 0x2eb   : > { %v2718_v55 = vpop.f32.mrf.mxu0  ;;  %v2603_v54 = vpop.f32.mrf.mxu3  ;;  %3964 = vmatpush.bf16.msra.mxu3 %v4789_v34 }
 0x2ec   : > { %v3115_v14 = vsel %vm3051_vm11, %v3019_v19, %v3083_v7  ;;  %v2714_v53 = vadd.f32 %v6981_v23, %v2603_v54  ;;  %v4792_v23 = vld [vmem:[%s7452_s5 + $0x18] sm:$0xff] }
 0x2ed   : > { %v3147_v29 = vpack.c.bf16 %v3115_v14, %v3115_v14  ;;  %v2920_v21 = vpop.f32.mrf.mxu1  ;;  %v5156_v62 = vpack.i.bf16 %v3115_v14, %v3114_v42  ;;  %3854 = vmatpush.bf16.msra.mxu2 %v4792_v23 }
 0x2ee   : > { %4642 = vmatmul.msk.bf16.gmra.mxu0 %vm7950_vm15, %v2481_v35  ;;  %v2984_v57 = vadd.f32 %v2920_v21, %v2711_v16  ;;  %vm7959_vm15 = vnez %v7571_v8 }
 0x2ef   : > { %v3215_v4 = vsel %vm5347_vm1, %v3147_v29, 0  ;;  %v3503_v56 = vsel %vm7951_vm4, %v3147_v29, 0  ;;  %5157 = vrot.lane.b32.xlu0 %v5156_v62, %s5284_s30  ;;  %v4795_v62 = vld [vmem:[%s7452_s5 + $0x30] sm:$0xff]  ;;  %vm7960_vm4 = vmmov %vm7956_vm5 }
 0x2f0   : > { %v3247_v32 = vunpack.c.l.bf16 %v3215_v4  ;;  %v3020_v27 = vadd.f32 %v6862_v36, %v2984_v57  ;;  %v3535_v52 = vunpack.c.l.bf16 %v3503_v56  ;;  %4174 = vmatpush.bf16.msra.mxu0 %v4795_v62 }
 0x2f2   : > { %3279 = vst.msk [vmem:[#allocation4 + $0x61] sm:$0xff] %vm7952_vm14, %v3247_v32  ;;  %vm3052_vm9 = vcmp.gt.f32.partialorder %v3020_v27, 0.0  ;;  %v3084_v33 = vmul.f32 0.2, %v3020_v27  ;;  %v5161_v49 = vpack.i.bf16 %v3535_v52, %v3534_v28 }
 0x2f3   : > { %v2720_v0 = vpop.f32.mrf.mxu0  ;;  %v2605_v22 = vpop.f32.mrf.mxu3 }
 0x2f4   : > { %v3116_v17 = vsel %vm3052_vm9, %v3020_v27, %v3084_v33  ;;  %5162 = vrot.lane.b32.xlu1 %v5161_v49, %s5285_s8  ;;  %v2716_v7 = vadd.f32 %v2715_v47, %v2605_v22  ;;  %vm7961_vm9 = vnez %v7596_v12 }
 0x2f5   : > { %v3148_v26 = vpack.c.bf16 %v3116_v17, %v3116_v17  ;;  %v2923_v35 = vpop.f32.mrf.mxu1 }
 0x2f6   : > { %v2985_v43 = vadd.f32 %v2923_v35, %v2714_v53 }
 0x2f7   : > { %v3216_v42 = vsel %vm7953_vm0, %v3148_v26, 0  ;;  %v3504_v29 = vsel %vm5347_vm1, %v3148_v26, 0  ;;  %vm7962_vm0 = vcmask 261248  }
 0x2f8   : > { %v3248_v61 = vunpack.c.l.bf16 %v3216_v42  ;;  %v3021_v48 = vadd.f32 %v6862_v36, %v2985_v43  ;;  %v3536_v47 = vunpack.c.l.bf16 %v3504_v29 }
 0x2fa   : > { %3280 = vst.msk [vmem:[#allocation4 + $0x69] sm:$0xff] %vm7954_vm13, %v3248_v61  ;;  %vm3053_vm12 = vcmp.gt.f32.partialorder %v3021_v48, 0.0  ;;  %v3085_v18 = vmul.f32 0.2, %v3021_v48  ;;  %vm7963_vm13 = vcmask 392448  }
 0x2fb   : > { %v2608_v19 = vpop.f32.mrf.mxu3  ;;  %v2723_v11 = vpop.f32.mrf.mxu0 }
 0x2fc   : > { %v3117_v54 = vsel %vm3053_vm12, %v3021_v48, %v3085_v18  ;;  %v2719_v31 = vadd.f32 %v2718_v55, %v2608_v19  ;;  %vm7964_vm12 = vmmov %vm7960_vm4 }
 0x2fd   : > { %v3149_v16 = vpack.c.bf16 %v3117_v54, %v3117_v54  ;;  %v2925_v14 = vpop.f32.mrf.mxu1  ;;  %v5166_v27 = vpack.i.bf16 %v3117_v54, %v3116_v17 }
 0x2fe   : > { %v2986_v21 = vadd.f32 %v2925_v14, %v2716_v7 }
 0x2ff   : > { %v3217_v60 = vsel %vm5347_vm1, %v3149_v16, 0  ;;  %v3505_v57 = vsel %vm7955_vm10, %v3149_v16, 0  ;;  %5167 = vrot.lane.b32.xlu2 %v5166_v27, %s5284_s30 }
 0x300   : > { %v3249_v4 = vunpack.c.l.bf16 %v3217_v60  ;;  %v3022_v56 = vadd.f32 %v6862_v36, %v2986_v21  ;;  %v3537_v32 = vunpack.c.l.bf16 %v3505_v57 }
 0x302   : > { %3281 = vst.msk [vmem:[#allocation4 + $0x71] sm:$0xff] %vm7956_vm5, %v3249_v4  ;;  %vm3054_vm6 = vcmp.gt.f32.partialorder %v3022_v56, 0.0  ;;  %v3086_v28 = vmul.f32 0.2, %v3022_v56  ;;  %v5171_v52 = vpack.i.bf16 %v3537_v32, %v3536_v47  ;;  %vm7965_vm5 = vmmov %vm7962_vm0 }
 0x303   : > { %v2610_v33 = vpop.f32.mrf.mxu3  ;;  %v2725_v17 = vpop.f32.mrf.mxu0 }
 0x304   : > { %v3118_v49 = vsel %vm3054_vm6, %v3022_v56, %v3086_v28  ;;  %5172 = vrot.lane.b32.xlu0 %v5171_v52, %s5285_s8  ;;  %v2721_v55 = vadd.f32 %v2720_v0, %v2610_v33  ;;  %vm7966_vm6 = vnez %v7565_v30 }
 0x305   : > { %v3150_v22 = vpack.c.bf16 %v3118_v49, %v3118_v49  ;;  %v2928_v53 = vpop.f32.mrf.mxu1 }
 0x306   : > { %v2987_v26 = vadd.f32 %v2928_v53, %v2719_v31 }
 0x307   : > { %v3218_v35 = vsel %vm7957_vm8, %v3150_v22, 0  ;;  %v3506_v19 = vsel %vm5347_vm1, %v3150_v22, 0  ;;  %vm7967_vm8 = vmmov %vm7960_vm4 }
 0x308   : > { %v3250_v43 = vunpack.c.l.bf16 %v3218_v35  ;;  %v3023_v42 = vadd.f32 %v6862_v36, %v2987_v26  ;;  %v3538_v21 = vunpack.c.l.bf16 %v3506_v19 }
 0x30a   : > { %3282 = vst.msk [vmem:[#allocation4 + $0x79] sm:$0xff] %vm7958_vm7, %v3250_v43  ;;  %vm3055_vm11 = vcmp.gt.f32.partialorder %v3023_v42, 0.0  ;;  %v3087_v61 = vmul.f32 0.2, %v3023_v42 }
 0x30b   : > { %v2613_v48 = vpop.f32.mrf.mxu3  ;;  %v2728_v14 = vpop.f32.mrf.mxu0 }
 0x30c   : > { %v3119_v18 = vsel %vm3055_vm11, %v3023_v42, %v3087_v61  ;;  %v2724_v47 = vadd.f32 %v2723_v11, %v2613_v48  ;;  %vm7968_vm11 = vmmov %vm7963_vm13 }
 0x30d   : > { %v3151_v23 = vpack.c.bf16 %v3119_v18, %v3119_v18  ;;  %v2930_v34 = vpop.f32.mrf.mxu1  ;;  %v5176_v0 = vpack.i.bf16 %v3119_v18, %v3118_v49  ;;  %v2368_v49 = vpop.permute.xlu2 %2367 }
 0x30e   : > { %v2988_v7 = vadd.f32 %v2930_v34, %v2721_v55 }
 0x30f   : > { %v3219_v24 = vsel %vm5347_vm1, %v3151_v23, 0  ;;  %v3507_v54 = vsel %vm7959_vm15, %v3151_v23, 0  ;;  %5177 = vrot.lane.b32.xlu1 %v5176_v0, %s5284_s30  ;;  %vm7969_vm15 = vcmask 392192  }
 0x310   : > { %v3251_v16 = vunpack.c.l.bf16 %v3219_v24  ;;  %v3024_v29 = vadd.f32 %v6862_v36, %v2988_v7  ;;  %v3539_v60 = vunpack.c.l.bf16 %v3507_v54 }
 0x311   : > { %v5113_v28 = vpop.permute.xlu1 %5112 }
 0x312   : > { %3283 = vst.msk [vmem:[#allocation4 + $0x81] sm:$0xff] %vm7960_vm4, %v3251_v16  ;;  %vm3056_vm14 = vcmp.gt.f32.partialorder %v3024_v29, 0.0  ;;  %v3088_v57 = vmul.f32 0.2, %v3024_v29  ;;  %v5181_v4 = vpack.i.bf16 %v3539_v60, %v3538_v21  ;;  %v5114_v62 = vunpack.i.l.bf16 %v5113_v28  ;;  %vm7970_vm4 = vmmov %vm7969_vm15 }
 0x313   : > { %v2615_v56 = vpop.f32.mrf.mxu3  ;;  %v5115_v31 = vunpack.i.h.bf16 %v5113_v28  ;;  %v2730_v11 = vpop.f32.mrf.mxu0 }
 0x314   : > { %v3120_v32 = vsel %vm3056_vm14, %v3024_v29, %v3088_v57  ;;  %5182 = vrot.lane.b32.xlu2 %v5181_v4, %s5285_s8  ;;  %2208 = vst.msk [vmem:[#allocation3 + $0x108] sm:$0xff] %vm7962_vm0, %v5114_v62  ;;  %v2726_v43 = vadd.f32 %v2725_v17, %v2615_v56  ;;  %vm7971_vm14 = vnez %v7617_v9 }
 0x315   : > { %v3152_v8 = vpack.c.bf16 %v3120_v32, %v3120_v32  ;;  %v2933_v27 = vpop.f32.mrf.mxu1  ;;  %2433 = vst.msk [vmem:[#allocation3 + $0x107] sm:$0xff] %vm7963_vm13, %v2368_v49  ;;  %v3594_v4 = vpop.permute.xlu2 %3593  ;;  %vm7973_vm13 = vmmov %vm7967_vm8 }
 0x316   : > { %v2989_v52 = vadd.f32 %v2933_v27, %v2724_v47  ;;  %3461 = vst.msk [vmem:[#allocation4 + $0x10] sm:$0xff] %vm7965_vm5, %v5115_v31 }
 0x317   : > { %v3220_v33 = vsel %vm7961_vm9, %v3152_v8, 0  ;;  %v3508_v55 = vsel %vm5347_vm1, %v3152_v8, 0  ;;  %vm7972_vm9 = vmmov %vm7962_vm0 }
 0x318   : > { %v3252_v22 = vunpack.c.l.bf16 %v3220_v33  ;;  %v3025_v53 = vadd.f32 %v6862_v36, %v2989_v52  ;;  %v3540_v21 = vunpack.c.l.bf16 %v3508_v55 }
 0x31a   : > { %3284 = vst.msk [vmem:[#allocation4 + $0x89] sm:$0xff] %vm7964_vm12, %v3252_v22  ;;  %vm3057_vm10 = vcmp.gt.f32.partialorder %v3025_v53, 0.0  ;;  %v3089_v26 = vmul.f32 0.2, %v3025_v53 }
 0x31b   : > { %v2618_v35 = vpop.f32.mrf.mxu3  ;;  %v2733_v47 = vpop.f32.mrf.mxu0 }
 0x31c   : > { %v3121_v12 = vsel %vm3057_vm10, %v3025_v53, %v3089_v26  ;;  %v2488_v54 = vld [vmem:[#allocation3 + $0x100] sm:$0xff]  ;;  %v2489_v17 = vld [vmem:[#allocation3 + $0x108] sm:$0xff]  ;;  %v2729_v56 = vadd.f32 %v2728_v14, %v2618_v35  ;;  %vm7974_vm10 = vmmov %vm7968_vm11 }
 0x31d   : > { %v3153_v42 = vpack.c.bf16 %v3121_v12, %v3121_v12  ;;  %v2935_v61 = vpop.f32.mrf.mxu1  ;;  %v5186_v16 = vpack.i.bf16 %v3121_v12, %v3120_v32  ;;  %v2490_v29 = vpack.c.bf16 %v2489_v17, %v2488_v54  ;;  %vm7975_vm5 = vmmov %vm7974_vm10 }
 0x31e   : > { %v2990_v48 = vadd.f32 %v2935_v61, %v2726_v43 }
 0x31f   : > { %v3221_v18 = vsel %vm5347_vm1, %v3153_v42, 0  ;;  %v5118_v23 = vpop.permute.xlu1 %5117  ;;  %v3509_v34 = vsel %vm7966_vm6, %v3153_v42, 0  ;;  %5187 = vrot.lane.b32.xlu0 %v5186_v16, %s5284_s30  ;;  %4614 = vmatmul.msk.bf16.gmra.mxu3 %vm7969_vm15, %v2490_v29  ;;  %vm7976_vm6 = vnez %v7567_v37 }
 0x320   : > { %v3253_v19 = vunpack.c.l.bf16 %v3221_v18  ;;  %v3026_v7 = vadd.f32 %v6862_v36, %v2990_v48  ;;  %v5119_v24 = vunpack.i.l.bf16 %v5118_v23  ;;  %v3541_v60 = vunpack.c.l.bf16 %v3509_v34  ;;  %4675 = vmatmul.msk.bf16.gmra.mxu1 %vm7970_vm4, %v2490_v29 }
 0x321   : > { %v5123_v28 = vpop.permute.xlu0 %5122  ;;  %v5120_v14 = vunpack.i.h.bf16 %v5118_v23  ;;  %v3717_v23 = vld [vmem:[#allocation4] sm:$0xff] }
 0x322   : > { %3285 = vst.msk [vmem:[#allocation4 + $0x91] sm:$0xff] %vm7967_vm8, %v3253_v19  ;;  %vm3058_vm7 = vcmp.gt.f32.partialorder %v3026_v7, 0.0  ;;  %v3090_v0 = vmul.f32 0.2, %v3026_v7  ;;  %v5191_v30 = vpack.i.bf16 %v3541_v60, %v3540_v21  ;;  %v5125_v62 = vunpack.i.h.bf16 %v5123_v28  ;;  %vm7977_vm8 = vmmov %vm7962_vm0 }
 0x323   : > { %3685 = vst.msk [vmem:[#allocation4 + $0xf] sm:$0xff] %vm7968_vm11, %v5119_v24  ;;  %v2620_v57 = vpop.f32.mrf.mxu3  ;;  %v5124_v33 = vunpack.i.l.bf16 %v5123_v28  ;;  %v2735_v19 = vpop.f32.mrf.mxu0  ;;  %v2793_v24 = vld [vmem:[#allocation3 + $0x110] sm:$0xff]  ;;  %vm7979_vm11 = vmmov %vm7973_vm13 }
 0x324   : > { %v3122_v8 = vsel %vm3058_vm7, %v3026_v7, %v3090_v0  ;;  %5192 = vrot.lane.b32.xlu1 %v5191_v30, %s5285_s8  ;;  %3463 = vst.msk [vmem:[#allocation4 + $0x20] sm:$0xff] %vm7962_vm0, %v5125_v62  ;;  %v2731_v35 = vadd.f32 %v2730_v11, %v2620_v57  ;;  %v2794_v11 = vld [vmem:[#allocation3 + $0x118] sm:$0xff]  ;;  %vm7978_vm7 = vmmov %vm7962_vm0 }
 0x325   : > { %v3154_v32 = vpack.c.bf16 %v3122_v8, %v3122_v8  ;;  %v2938_v27 = vpop.f32.mrf.mxu1  ;;  %3462 = vst.msk [vmem:[#allocation4 + $0x18] sm:$0xff] %vm7972_vm9, %v5124_v33  ;;  %v2810_v30 = vpack.c.bf16 %v2794_v11, %v2793_v24  ;;  %vm7981_vm9 = vmmov %vm7970_vm4 }
 0x326   : > { %v2991_v52 = vadd.f32 %v2938_v27, %v2729_v56  ;;  %3686 = vst.msk [vmem:[#allocation4 + $0x17] sm:$0xff] %vm7974_vm10, %v5120_v14 }
 0x327   : > { %v3222_v31 = vsel %vm7971_vm14, %v3154_v32, 0  ;;  %3687 = vst.msk [vmem:[#allocation4 + $0x1f] sm:$0xff] %vm7975_vm5, %v3594_v4  ;;  %v3510_v61 = vsel %vm5347_vm1, %v3154_v32, 0  ;;  %vm7980_vm14 = vmmov %vm7970_vm4 }
 0x328   : > { %v3254_v49 = vunpack.c.l.bf16 %v3222_v31  ;;  %v3027_v22 = vadd.f32 %v6862_v36, %v2991_v52  ;;  %v3542_v29 = vunpack.c.l.bf16 %v3510_v61 }
 0x329   : > { %v5138_v42 = vpop.permute.xlu2 %5137 }
 0x32a   : > { %3286 = vst.msk [vmem:[#allocation4 + $0x99] sm:$0xff] %vm7973_vm13, %v3254_v49  ;;  %vm3059_vm12 = vcmp.gt.f32.partialorder %v3027_v22, 0.0  ;;  %v3091_v53 = vmul.f32 0.2, %v3027_v22  ;;  %v5140_v55 = vunpack.i.h.bf16 %v5138_v42  ;;  %v5139_v18 = vunpack.i.l.bf16 %v5138_v42  ;;  %v3718_v34 = vld [vmem:[#allocation4 + $0x8] sm:$0xff]  ;;  %vm7982_vm13 = vmmov %vm7962_vm0 }
 0x32b   : > { %v2623_v26 = vpop.f32.mrf.mxu3  ;;  %v3749_v0 = vpack.c.bf16 %v3718_v34, %v3717_v23 }
 0x32c   : > { %v3123_v43 = vsel %vm3059_vm12, %v3027_v22, %v3091_v53  ;;  %3467 = vst.msk [vmem:[#allocation4 + $0x40] sm:$0xff] %vm7977_vm8, %v5140_v55  ;;  %v2734_v27 = vadd.f32 %v2733_v47, %v2623_v26  ;;  %vm7983_vm12 = vmmov %vm7979_vm11 }
 0x32d   : > { %v3155_v9 = vpack.c.bf16 %v3123_v43, %v3123_v43  ;;  %v2940_v12 = vpop.f32.mrf.mxu1  ;;  %3466 = vst.msk [vmem:[#allocation4 + $0x38] sm:$0xff] %vm7978_vm7, %v5139_v18  ;;  %v5196_v60 = vpack.i.bf16 %v3123_v43, %v3122_v8  ;;  %v3719_v4 = vld [vmem:[#allocation4 + $0x10] sm:$0xff]  ;;  %vm7986_vm8 = vmmov %vm7979_vm11 }
 0x32e   : > { %v2992_v48 = vadd.f32 %v2940_v12, %v2731_v35  ;;  %v3720_v32 = vld [vmem:[#allocation4 + $0x18] sm:$0xff] }
 0x32f   : > { %v3223_v7 = vsel %vm5347_vm1, %v3155_v9, 0  ;;  %v3511_v54 = vsel %vm7976_vm6, %v3155_v9, 0  ;;  %5197 = vrot.lane.b32.xlu2 %v5196_v60, %s5284_s30  ;;  %4723 = vmatmul.msk.bf16.vlgmr.msra.gmra.mxu3 %vm7970_vm4, %v3749_v0  ;;  %v3750_v52 = vpack.c.bf16 %v3720_v32, %v3719_v4  ;;  %v2738_v9 = vpop.f32.mrf.mxu0  ;;  %vm7985_vm6 = vnez %v7569_v59 }
 0x330   : > { %v3255_v17 = vunpack.c.l.bf16 %v3223_v7  ;;  %v3028_v16 = vadd.f32 %v6862_v36, %v2992_v48  ;;  %v3543_v21 = vunpack.c.l.bf16 %v3511_v54  ;;  %4676 = vmatmul.msk.bf16.gmra.mxu1 %vm7980_vm14, %v2810_v30  ;;  %v7112_v7 = vld [vmem:[%s7451_s4] ss:$0 sm:$0xff]  ;;  %vm7989_vm14 = vnez %v7625_v2 }
 0x331   : > { %v5128_v33 = vpop.permute.xlu0 %5127  ;;  %4695 = vmatmul.msk.bf16.vlgmr.msra.gmra.mxu2 %vm7981_vm9, %v3750_v52 }
 0x332   : > { %3287 = vst.msk [vmem:[#allocation4 + $0xa1] sm:$0xff] %vm7979_vm11, %v3255_v17  ;;  %vm3060_vm15 = vcmp.gt.f32.partialorder %v3028_v16, 0.0  ;;  %v3092_v57 = vmul.f32 0.2, %v3028_v16  ;;  %v5201_v56 = vpack.i.bf16 %v3543_v21, %v3542_v29  ;;  %v5130_v49 = vunpack.i.h.bf16 %v5128_v33  ;;  %vm7987_vm11 = vmmov %vm7970_vm4 }
 0x333   : > { %v2625_v37 = vpop.f32.mrf.mxu3  ;;  %v5129_v22 = vunpack.i.l.bf16 %v5128_v33 }
 0x334   : > { %v3124_v28 = vsel %vm3060_vm15, %v3028_v16, %v3092_v57  ;;  %5202 = vrot.lane.b32.xlu0 %v5201_v56, %s5285_s8  ;;  %3465 = vst.msk [vmem:[#allocation4 + $0x30] sm:$0xff] %vm7962_vm0, %v5130_v49  ;;  %v2736_v41 = vadd.f32 %v2735_v19, %v2625_v37  ;;  %vm7988_vm15 = vmmov %vm7970_vm4 }
 0x335   : > { %v3156_v8 = vpack.c.bf16 %v3124_v28, %v3124_v28  ;;  %v2943_v62 = vpop.f32.mrf.mxu1  ;;  %3464 = vst.msk [vmem:[#allocation4 + $0x28] sm:$0xff] %vm7982_vm13, %v5129_v22  ;;  %vm7991_vm0 = vmmov %vm7986_vm8 }
 0x336   : > { %v2993_v31 = vadd.f32 %v2943_v62, %v2734_v27  ;;  %v5133_v53 = vpop.permute.xlu1 %5132 }
 0x337   : > { %v3224_v14 = vsel %vm7802_vm2, %v3156_v8, 0  ;;  %v5135_v26 = vunpack.i.h.bf16 %v5133_v53  ;;  %v5134_v43 = vunpack.i.l.bf16 %v5133_v53  ;;  %vm7984_vm2 = vmmov %vm7975_vm5  ;;  %v3512_v18 = vsel %vm5347_vm1, %v3156_v8, 0  ;;  %v2740_v29 = vpop.f32.mrf.mxu0 }
 0x338   : > { %v3256_v35 = vunpack.c.l.bf16 %v3224_v14  ;;  %v3029_v47 = vadd.f32 %v6862_v36, %v2993_v31  ;;  %v3544_v54 = vunpack.c.l.bf16 %v3512_v18  ;;  %vm7990_vm9 = vmmov %vm7984_vm2 }
 0x339   : > { %3689 = vst.msk [vmem:[#allocation4 + $0x2f] sm:$0xff] %vm7975_vm5, %v5135_v26  ;;  %vm7994_vm5 = vmmov %vm7991_vm0 }
 0x33a   : > { %3288 = vst.msk [vmem:[#allocation4 + $0xa9] sm:$0xff] %vm7983_vm12, %v3256_v35  ;;  %vm3061_vm10 = vcmp.gt.f32.partialorder %v3029_v47, 0.0  ;;  %v3093_v12 = vmul.f32 0.2, %v3029_v47  ;;  %vm7992_vm12 = vmmov %vm7984_vm2 }
 0x33b   : > { %v2628_v42 = vpop.f32.mrf.mxu3  ;;  %3688 = vst.msk [vmem:[#allocation4 + $0x27] sm:$0xff] %vm7984_vm2, %v5134_v43 }
 0x33c   : > { %v3125_v61 = vsel %vm3061_vm10, %v3029_v47, %v3093_v12  ;;  %v2739_v30 = vadd.f32 %v2738_v9, %v2628_v42  ;;  %vm7993_vm10 = vnez %v7818_v45 }
 0x33d   : > { %v3157_v48 = vpack.c.bf16 %v3125_v61, %v3125_v61  ;;  %v2945_v36 = vpop.f32.mrf.mxu1  ;;  %v5206_v11 = vpack.i.bf16 %v3125_v61, %v3124_v28 }
 0x33e   : > { %v2994_v55 = vadd.f32 %v2945_v36, %v2736_v41  ;;  %v5153_v45 = vpop.permute.xlu2 %5152 }
 0x33f   : > { %v3225_v23 = vsel %vm5347_vm1, %v3157_v48, 0  ;;  %v3513_v24 = vsel %vm7985_vm6, %v3157_v48, 0  ;;  %5207 = vrot.lane.b32.xlu1 %v5206_v11, %s5284_s30  ;;  %4724 = vmatmul.msk.bf16.gmra.mxu3 %vm7987_vm11, %v3750_v52  ;;  %v2743_v53 = vpop.f32.mrf.mxu0  ;;  %vm7995_vm6 = vmmov %vm7970_vm4  ;;  %vm7998_vm11 = vnez %v7824_v46 }
 0x340   : > { %v3257_v34 = vunpack.c.l.bf16 %v3225_v23  ;;  %v3030_v19 = vadd.f32 %v7112_v7, %v2994_v55  ;;  %v3545_v17 = vunpack.c.l.bf16 %v3513_v24 }
 0x342   : > { %3289 = vst.msk [vmem:[#allocation4 + $0xb1] sm:$0xff] %vm7986_vm8, %v3257_v34  ;;  %vm3062_vm7 = vcmp.gt.f32.partialorder %v3030_v19, 0.0  ;;  %v3094_v16 = vmul.f32 0.2, %v3030_v19  ;;  %v3721_v60 = vld [vmem:[#allocation4 + $0x20] sm:$0xff]  ;;  %v3722_v0 = vld [vmem:[#allocation4 + $0x28] sm:$0xff]  ;;  %v5211_v57 = vpack.i.bf16 %v3545_v17, %v3544_v54  ;;  %vm7996_vm8 = vmmov %vm7970_vm4 }
 0x343   : > { %v2630_v21 = vpop.f32.mrf.mxu3  ;;  %v3751_v59 = vpack.c.bf16 %v3722_v0, %v3721_v60 }
 0x344   : > { %v3126_v4 = vsel %vm3062_vm7, %v3030_v19, %v3094_v16  ;;  %5212 = vrot.lane.b32.xlu2 %v5211_v57, %s5285_s8  ;;  %v2741_v22 = vadd.f32 %v2740_v29, %v2630_v21  ;;  %vm7997_vm7 = vmmov %vm7970_vm4 }
 0x345   : > { %v3158_v56 = vpack.c.bf16 %v3126_v4, %v3126_v4  ;;  %v2948_v37 = vpop.f32.mrf.mxu1  ;;  %4696 = vmatmul.msk.bf16.gmra.mxu2 %vm7988_vm15, %v3751_v59  ;;  %4757 = vmatmul.msk.bf16.vlgmr.msra.gmra.mxu0 %vm7970_vm4, %v3751_v59  ;;  %vm7999_vm15 = vcmask 261248  }
 0x346   : > { %v2995_v32 = vadd.f32 %v2948_v37, %v2739_v30  ;;  %v5143_v27 = vpop.permute.xlu0 %5142  ;;  %vm8000_vm4 = vmmov %vm7999_vm15 }
 0x347   : > { %v3226_v28 = vsel %vm7989_vm14, %v3158_v56, 0  ;;  %v5145_v8 = vunpack.i.h.bf16 %v5143_v27  ;;  %v5144_v62 = vunpack.i.l.bf16 %v5143_v27  ;;  %v3514_v47 = vsel %vm5347_vm1, %v3158_v56, 0  ;;  %v2745_v0 = vpop.f32.mrf.mxu0  ;;  %vm8001_vm14 = vmmov %vm7991_vm0 }
 0x348   : > { %v3258_v52 = vunpack.c.l.bf16 %v3226_v28  ;;  %v3031_v33 = vadd.f32 %v7112_v7, %v2995_v32  ;;  %v3546_v41 = vunpack.c.l.bf16 %v3514_v47  ;;  %v5155_v56 = vunpack.i.h.bf16 %v5153_v45 }
 0x349   : > { %3691 = vst.msk [vmem:[#allocation4 + $0x3f] sm:$0xff] %vm7990_vm9, %v5145_v8 }
 0x34a   : > { %3290 = vst.msk [vmem:[#allocation4 + $0xb9] sm:$0xff] %vm7991_vm0, %v3258_v52  ;;  %vm3063_vm13 = vcmp.gt.f32.partialorder %v3031_v33, 0.0  ;;  %v3095_v31 = vmul.f32 0.2, %v3031_v33  ;;  %vm8002_vm0 = vmmov %vm7992_vm12 }
 0x34b   : > { %3690 = vst.msk [vmem:[#allocation4 + $0x37] sm:$0xff] %vm7992_vm12, %v5144_v62  ;;  %v2633_v49 = vpop.f32.mrf.mxu3  ;;  %vm8004_vm12 = vnez %v7833_v44 }
 0x34c   : > { %v3127_v14 = vsel %vm3063_vm13, %v3031_v33, %v3095_v31  ;;  %v2744_v19 = vadd.f32 %v2743_v53, %v2633_v49  ;;  %vm8003_vm13 = vmmov %vm8002_vm0 }
 0x34d   : > { %v3159_v35 = vpack.c.bf16 %v3127_v14, %v3127_v14  ;;  %v2950_v2 = vpop.f32.mrf.mxu1  ;;  %v5216_v48 = vpack.i.bf16 %v3127_v14, %v3126_v4 }
 0x34e   : > { %v2996_v26 = vadd.f32 %v2950_v2, %v2741_v22 }
 0x34f   : > { %v3227_v43 = vsel %vm5347_vm1, %v3159_v35, 0  ;;  %v3515_v9 = vsel %vm7993_vm10, %v3159_v35, 0  ;;  %5217 = vrot.lane.b32.xlu0 %v5216_v48, %s5284_s30  ;;  %4725 = vmatmul.msk.bf16.gmra.mxu3 %vm7995_vm6, %v3751_v59  ;;  %v5154_v59 = vunpack.i.l.bf16 %v5153_v45  ;;  %vm8005_vm10 = vmmov %vm8000_vm4 }
 0x350   : > { %v3259_v12 = vunpack.c.l.bf16 %v3227_v43  ;;  %v3032_v42 = vadd.f32 %v7112_v7, %v2996_v26  ;;  %v3547_v61 = vunpack.c.l.bf16 %v3515_v9  ;;  %v2748_v26 = vpop.f32.mrf.mxu0 }
 0x351   : > { %v5148_v16 = vpop.permute.xlu1 %5147 }
 0x352   : > { %3291 = vst.msk [vmem:[#allocation4 + $0xc1] sm:$0xff] %vm7994_vm5, %v3259_v12  ;;  %vm3064_vm2 = vcmp.gt.f32.partialorder %v3032_v42, 0.0  ;;  %v3096_v36 = vmul.f32 0.2, %v3032_v42  ;;  %v3723_v55 = vld [vmem:[#allocation4 + $0x30] sm:$0xff]  ;;  %v3724_v18 = vld [vmem:[#allocation4 + $0x38] sm:$0xff]  ;;  %v5221_v23 = vpack.i.bf16 %v3547_v61, %v3546_v41  ;;  %v5150_v21 = vunpack.i.h.bf16 %v5148_v16  ;;  %vm8006_vm5 = vmmov %vm8000_vm4 }
 0x353   : > { %v3752_v34 = vpack.c.bf16 %v3724_v18, %v3723_v55  ;;  %v2635_v11 = vpop.f32.mrf.mxu3  ;;  %v5149_v60 = vunpack.i.l.bf16 %v5148_v16 }
 0x354   : > { %v3128_v24 = vsel %vm3064_vm2, %v3032_v42, %v3096_v36  ;;  %5222 = vrot.lane.b32.xlu1 %v5221_v23, %s5285_s8  ;;  %3469 = vst.msk [vmem:[#allocation4 + $0x50] sm:$0xff] %vm7999_vm15, %v5150_v21  ;;  %v2746_v32 = vadd.f32 %v2745_v0, %v2635_v11  ;;  %vm8007_vm2 = vmmov %vm8001_vm14 }
 0x355   : > { %v3160_v54 = vpack.c.bf16 %v3128_v24, %v3128_v24  ;;  %v2953_v17 = vpop.f32.mrf.mxu1  ;;  %4697 = vmatmul.msk.bf16.gmra.mxu2 %vm7996_vm8, %v3752_v34  ;;  %4758 = vmatmul.msk.bf16.gmra.mxu0 %vm7997_vm7, %v3752_v34  ;;  %3468 = vst.msk [vmem:[#allocation4 + $0x48] sm:$0xff] %vm8000_vm4, %v5149_v60  ;;  %vm8008_vm8 = vmmov %vm7997_vm7 }
 0x356   : > { %v2997_v29 = vadd.f32 %v2953_v17, %v2744_v19  ;;  %3692 = vst.msk [vmem:[#allocation4 + $0x47] sm:$0xff] %vm8002_vm0, %v5154_v59  ;;  %vm8010_vm15 = vmmov %vm8000_vm4 }
 0x357   : > { %v3228_v57 = vsel %vm7998_vm11, %v3160_v54, 0  ;;  %3693 = vst.msk [vmem:[#allocation4 + $0x4f] sm:$0xff] %vm8003_vm13, %v5155_v56  ;;  %v3516_v62 = vsel %vm5347_vm1, %v3160_v54, 0  ;;  %vm8009_vm11 = vmmov %vm7997_vm7  ;;  %vm8013_vm13 = vnez %v7848_v39 }
 0x358   : > { %v3260_v30 = vunpack.c.l.bf16 %v3228_v57  ;;  %v3033_v4 = vadd.f32 %v7112_v7, %v2997_v29  ;;  %v3548_v2 = vunpack.c.l.bf16 %v3516_v62  ;;  %v2750_v60 = vpop.f32.mrf.mxu0 }
 0x359   : > { %v5168_v8 = vpop.permute.xlu2 %5167 }
 0x35a   : > { %3292 = vst.msk [vmem:[#allocation4 + $0xc9] sm:$0xff] %vm8001_vm14, %v3260_v30  ;;  %vm3065_vm9 = vcmp.gt.f32.partialorder %v3033_v4, 0.0  ;;  %v3097_v37 = vmul.f32 0.2, %v3033_v4  ;;  %v5170_v33 = vunpack.i.h.bf16 %v5168_v8  ;;  %v5169_v31 = vunpack.i.l.bf16 %v5168_v8  ;;  %vm8011_vm14 = vmmov %vm8007_vm2 }
 0x35b   : > { %v2638_v22 = vpop.f32.mrf.mxu3 }
 0x35c   : > { %v3129_v27 = vsel %vm3065_vm9, %v3033_v4, %v3097_v37  ;;  %3473 = vst.msk [vmem:[#allocation4 + $0x70] sm:$0xff] %vm8005_vm10, %v5170_v33  ;;  %v2749_v41 = vadd.f32 %v2748_v26, %v2638_v22 }
 0x35d   : > { %v3161_v46 = vpack.c.bf16 %v3129_v27, %v3129_v27  ;;  %v2955_v28 = vpop.f32.mrf.mxu1  ;;  %3472 = vst.msk [vmem:[#allocation4 + $0x68] sm:$0xff] %vm8006_vm5, %v5169_v31  ;;  %v5226_v43 = vpack.i.bf16 %v3129_v27, %v3128_v24  ;;  %v3725_v12 = vld [vmem:[#allocation4 + $0x40] sm:$0xff]  ;;  %vm8015_vm5 = vmmov %vm7997_vm7 }
 0x35e   : > { %v2998_v52 = vadd.f32 %v2955_v28, %v2746_v32  ;;  %v3726_v44 = vld [vmem:[#allocation4 + $0x48] sm:$0xff] }
 0x35f   : > { %v3229_v49 = vsel %vm5347_vm1, %v3161_v46, 0  ;;  %v3517_v14 = vsel %vm8004_vm12, %v3161_v46, 0  ;;  %5227 = vrot.lane.b32.xlu2 %v5226_v43, %s5284_s30  ;;  %4726 = vmatmul.msk.bf16.gmra.mxu3 %vm8008_vm8, %v3752_v34  ;;  %v3753_v48 = vpack.c.bf16 %v3726_v44, %v3725_v12  ;;  %vm8014_vm12 = vmmov %vm8007_vm2  ;;  %vm8018_vm8 = vnez %v7853_v38 }
 0x360   : > { %v3261_v53 = vunpack.c.l.bf16 %v3229_v49  ;;  %v3034_v35 = vadd.f32 %v7112_v7, %v2998_v52  ;;  %v3549_v47 = vunpack.c.l.bf16 %v3517_v14 }
 0x361   : > { %v5158_v18 = vpop.permute.xlu0 %5157 }
 0x362   : > { %3293 = vst.msk [vmem:[#allocation4 + $0xd1] sm:$0xff] %vm8007_vm2, %v3261_v53  ;;  %vm3066_vm6 = vcmp.gt.f32.partialorder %v3034_v35, 0.0  ;;  %v3098_v9 = vmul.f32 0.2, %v3034_v35  ;;  %v5231_v42 = vpack.i.bf16 %v3549_v47, %v3548_v2  ;;  %v5160_v45 = vunpack.i.h.bf16 %v5158_v18  ;;  %vm8016_vm2 = vmmov %vm8015_vm5 }
 0x363   : > { %v5159_v19 = vunpack.i.l.bf16 %v5158_v18  ;;  %v2640_v29 = vpop.f32.mrf.mxu3 }
 0x364   : > { %v3130_v61 = vsel %vm3066_vm6, %v3034_v35, %v3098_v9  ;;  %5232 = vrot.lane.b32.xlu0 %v5231_v42, %s5285_s8  ;;  %3471 = vst.msk [vmem:[#allocation4 + $0x60] sm:$0xff] %vm8010_vm15, %v5160_v45  ;;  %v2751_v0 = vadd.f32 %v2750_v60, %v2640_v29  ;;  %vm8017_vm6 = vmmov %vm8016_vm2  ;;  %v2753_v29 = vpop.f32.mrf.mxu0 }
 0x365   : > { %v3162_v36 = vpack.c.bf16 %v3130_v61, %v3130_v61  ;;  %v2958_v55 = vpop.f32.mrf.mxu1  ;;  %4698 = vmatmul.msk.bf16.gmra.mxu2 %vm7997_vm7, %v3753_v48  ;;  %4759 = vmatmul.msk.bf16.gmra.mxu0 %vm8009_vm11, %v3753_v48  ;;  %3470 = vst.msk [vmem:[#allocation4 + $0x58] sm:$0xff] %vm8000_vm4, %v5159_v19  ;;  %vm8019_vm7 = vmmov %vm8002_vm0 }
 0x366   : > { %v2999_v23 = vadd.f32 %v2958_v55, %v2749_v41  ;;  %v5163_v24 = vpop.permute.xlu1 %5162  ;;  %vm8020_vm11 = vmmov %vm8014_vm12 }
 0x367   : > { %v3230_v11 = vsel %vm7841_vm3, %v3162_v36, 0  ;;  %v5165_v34 = vunpack.i.h.bf16 %v5163_v24  ;;  %v5164_v16 = vunpack.i.l.bf16 %v5163_v24  ;;  %vm8012_vm3 = vmmov %vm8002_vm0  ;;  %v3518_v59 = vsel %vm5347_vm1, %v3162_v36, 0 }
 0x368   : > { %v3262_v54 = vunpack.c.l.bf16 %v3230_v11  ;;  %v3035_v17 = vadd.f32 %v7112_v7, %v2999_v23  ;;  %v3550_v28 = vunpack.c.l.bf16 %v3518_v59  ;;  %vm8021_vm15 = vmmov %vm8002_vm0 }
 0x369   : > { %3695 = vst.msk [vmem:[#allocation4 + $0x5f] sm:$0xff] %vm8002_vm0, %v5165_v34  ;;  %vm8022_vm4 = vmmov %vm8016_vm2  ;;  %vm8025_vm0 = vcmask 261248  }
 0x36a   : > { %3294 = vst.msk [vmem:[#allocation4 + $0xd9] sm:$0xff] %vm8011_vm14, %v3262_v54  ;;  %vm3067_vm9 = vcmp.gt.f32.partialorder %v3035_v17, 0.0  ;;  %v3099_v21 = vmul.f32 0.2, %v3035_v17  ;;  %vm8023_vm14 = vmmov %vm8016_vm2 }
 0x36b   : > { %3694 = vst.msk [vmem:[#allocation4 + $0x57] sm:$0xff] %vm8012_vm3, %v5164_v16  ;;  %vm8026_vm3 = vmmov %vm8025_vm0  ;;  %v2643_v19 = vpop.f32.mrf.mxu3 }
 0x36c   : > { %v3131_v63 = vsel %vm3067_vm9, %v3035_v17, %v3099_v21  ;;  %vm8024_vm9 = vmmov %vm8016_vm2  ;;  %v2754_v60 = vadd.f32 %v2753_v29, %v2643_v19 }
 0x36d   : > { %v3163_v57 = vpack.c.bf16 %v3131_v63, %v3131_v63  ;;  %v2960_v30 = vpop.f32.mrf.mxu1  ;;  %v5236_v46 = vpack.i.bf16 %v3131_v63, %v3130_v61 }
 0x36e   : > { %v3000_v4 = vadd.f32 %v2960_v30, %v2751_v0  ;;  %v5183_v12 = vpop.permute.xlu2 %5182 }
 0x36f   : > { %v3231_v56 = vsel %vm5347_vm1, %v3163_v57, 0  ;;  %v3519_v27 = vsel %vm8013_vm13, %v3163_v57, 0  ;;  %5237 = vrot.lane.b32.xlu1 %v5236_v46, %s5284_s30  ;;  %4727 = vmatmul.msk.bf16.gmra.mxu3 %vm8015_vm5, %v3753_v48  ;;  %v5184_v41 = vunpack.i.l.bf16 %v5183_v12  ;;  %v5185_v61 = vunpack.i.h.bf16 %v5183_v12  ;;  %vm8027_vm13 = vmmov %vm8019_vm7 }
 0x370   : > { %v3263_v37 = vunpack.c.l.bf16 %v3231_v56  ;;  %v3036_v32 = vadd.f32 %v7112_v7, %v3000_v4  ;;  %v3551_v8 = vunpack.c.l.bf16 %v3519_v27  ;;  %vm8030_vm5 = vmmov %vm8025_vm0  ;;  %v2755_v4 = vpop.f32.mrf.mxu0 }
 0x372   : > { %3295 = vst.msk [vmem:[#allocation4 + $0xe1] sm:$0xff] %vm8014_vm12, %v3263_v37  ;;  %vm3068_vm10 = vcmp.gt.f32.partialorder %v3036_v32, 0.0  ;;  %v3100_v62 = vmul.f32 0.2, %v3036_v32  ;;  %v3727_v52 = vld [vmem:[#allocation4 + $0x50] sm:$0xff]  ;;  %v3728_v33 = vld [vmem:[#allocation4 + $0x58] sm:$0xff]  ;;  %v5241_v31 = vpack.i.bf16 %v3551_v8, %v3550_v28  ;;  %vm8028_vm12 = vmmov %vm8019_vm7 }
 0x373   : > { %v3754_v22 = vpack.c.bf16 %v3728_v33, %v3727_v52  ;;  %v2645_v21 = vpop.f32.mrf.mxu3 }
 0x374   : > { %v7183_v49 = vsel %vm3068_vm10, %v3036_v32, %v3100_v62  ;;  %5242 = vrot.lane.b32.xlu2 %v5241_v31, %s5285_s8  ;;  %vm8029_vm10 = vmmov %vm8025_vm0  ;;  %v2756_v8 = vadd.f32 %v2755_v4, %v2645_v21 }
 0x375   : > { %v7187_v39 = vpack.c.bf16 %v7183_v49, %v7183_v49  ;;  %4699 = vmatmul.msk.bf16.gmra.mxu2 %vm8016_vm2, %v3754_v22  ;;  %4760 = vmatmul.msk.bf16.gmra.mxu0 %vm8017_vm6, %v3754_v22  ;;  %vm8031_vm6 = vmmov %vm8016_vm2 }
 0x376   : > { %v5173_v14 = vpop.permute.xlu0 %5172 }
 0x377   : > { %v3232_v53 = vsel %vm8018_vm8, %v7187_v39, 0  ;;  %v5175_v35 = vunpack.i.h.bf16 %v5173_v14  ;;  %v5174_v2 = vunpack.i.l.bf16 %v5173_v14  ;;  %vm8032_vm8 = vmmov %vm8016_vm2  ;;  %v3520_v31 = vsel %vm5347_vm1, %v7187_v39, 0 }
 0x378   : > { %v3264_v47 = vunpack.c.l.bf16 %v3232_v53 }
 0x379   : > { %3697 = vst.msk [vmem:[#allocation4 + $0x6f] sm:$0xff] %vm8019_vm7, %v5175_v35  ;;  %vm8033_vm7 = vmmov %vm8025_vm0 }
 0x37a   : > { %3296 = vst.msk [vmem:[#allocation4 + $0xe9] sm:$0xff] %vm8020_vm11, %v3264_v47  ;;  %vm8034_vm11 = vmmov %vm8025_vm0  ;;  %v3552_v47 = vunpack.c.l.bf16 %v3520_v31 }
 0x37b   : > { %3696 = vst.msk [vmem:[#allocation4 + $0x67] sm:$0xff] %vm8021_vm15, %v5174_v2  ;;  %vm8035_vm15 = vmmov %vm8028_vm12 }
 0x37f   : > { %4728 = vmatmul.msk.bf16.gmra.mxu3 %vm8022_vm4, %v3754_v22  ;;  %vm8036_vm4 = vmmov %vm8028_vm12 }
 0x381   : > { %v5178_v42 = vpop.permute.xlu1 %5177 }
 0x382   : > { %v3729_v26 = vld [vmem:[#allocation4 + $0x60] sm:$0xff]  ;;  %v3730_v43 = vld [vmem:[#allocation4 + $0x68] sm:$0xff]  ;;  %v5180_v38 = vunpack.i.h.bf16 %v5178_v42  ;;  %v5179_v44 = vunpack.i.l.bf16 %v5178_v42 }
 0x383   : > { %v3755_v9 = vpack.c.bf16 %v3730_v43, %v3729_v26  ;;  %v2758_v43 = vpop.f32.mrf.mxu0 }
 0x384   : > { %3475 = vst.msk [vmem:[#allocation4 + $0x80] sm:$0xff] %vm8025_vm0, %v5180_v38  ;;  %vm8038_vm0 = vmmov %vm8016_vm2 }
 0x385   : > { %4700 = vmatmul.msk.bf16.gmra.mxu2 %vm8023_vm14, %v3755_v9  ;;  %4761 = vmatmul.msk.bf16.gmra.mxu0 %vm8024_vm9, %v3755_v9  ;;  %3474 = vst.msk [vmem:[#allocation4 + $0x78] sm:$0xff] %vm8026_vm3, %v5179_v44  ;;  %vm8037_vm14 = vmmov %vm8016_vm2 }
 0x386   : > { %3698 = vst.msk [vmem:[#allocation4 + $0x77] sm:$0xff] %vm8027_vm13, %v5184_v41  ;;  %vm8039_vm3 = vmmov %vm8038_vm0 }
 0x387   : > { %3699 = vst.msk [vmem:[#allocation4 + $0x7f] sm:$0xff] %vm8028_vm12, %v5185_v61  ;;  %vm8040_vm13 = vmmov %vm8036_vm4 }
 0x388   : > { %vm8041_vm12 = vmmov %vm8036_vm4 }
 0x389   : > { %v5198_v48 = vpop.permute.xlu2 %5197 }
 0x38a   : > { %v5200_v36 = vunpack.i.h.bf16 %v5198_v48  ;;  %v5199_v55 = vunpack.i.l.bf16 %v5198_v48 }
 0x38c   : > { %3479 = vst.msk [vmem:[#allocation4 + $0xa0] sm:$0xff] %vm8029_vm10, %v5200_v36  ;;  %vm8042_vm10 = vnez %v7859_v25 }
 0x38d   : > { %3478 = vst.msk [vmem:[#allocation4 + $0x98] sm:$0xff] %vm8030_vm5, %v5199_v55  ;;  %v3731_v18 = vld [vmem:[#allocation4 + $0x70] sm:$0xff]  ;;  %vm8043_vm5 = vcmask 130048  }
 0x38e   : > { %v3732_v23 = vld [vmem:[#allocation4 + $0x78] sm:$0xff] }
 0x38f   : > { %v3756_v45 = vpack.c.bf16 %v3732_v23, %v3731_v18  ;;  %4729 = vmatmul.msk.bf16.gmra.mxu3 %vm8016_vm2, %v3755_v9 }
 0x391   : > { %v5188_v24 = vpop.permute.xlu0 %5187 }
 0x392   : > { %v5190_v11 = vunpack.i.h.bf16 %v5188_v24  ;;  %v5189_v34 = vunpack.i.l.bf16 %v5188_v24 }
 0x394   : > { %3477 = vst.msk [vmem:[#allocation4 + $0x90] sm:$0xff] %vm8033_vm7, %v5190_v11  ;;  %vm8046_vm7 = vmmov %vm8043_vm5 }
 0x395   : > { %4701 = vmatmul.msk.bf16.gmra.mxu2 %vm8031_vm6, %v3756_v45  ;;  %4762 = vmatmul.msk.bf16.gmra.mxu0 %vm8032_vm8, %v3756_v45  ;;  %3476 = vst.msk [vmem:[#allocation4 + $0x88] sm:$0xff] %vm8034_vm11, %v5189_v34  ;;  %vm8044_vm6 = vnez %v7864_v1  ;;  %vm8045_vm8 = vmmov %vm8038_vm0  ;;  %v2760_v1 = vpop.f32.mrf.mxu0 }
 0x396   : > { %v5193_v54 = vpop.permute.xlu1 %5192 }
 0x397   : > { %v5195_v17 = vunpack.i.h.bf16 %v5193_v54  ;;  %v5194_v16 = vunpack.i.l.bf16 %v5193_v54 }
 0x399   : > { %3701 = vst.msk [vmem:[#allocation4 + $0x8f] sm:$0xff] %vm8035_vm15, %v5195_v17  ;;  %vm8047_vm15 = vmmov %vm8038_vm0 }
 0x39a   : > { %3700 = vst.msk [vmem:[#allocation4 + $0x87] sm:$0xff] %vm8036_vm4, %v5194_v16  ;;  %vm8048_vm4 = vmmov %vm8038_vm0 }
 0x39d   : > { %v2963_v0 = vpop.f32.mrf.mxu1 }
 0x39e   : > { %v3001_v63 = vadd.f32 %v2963_v0, %v2754_v60 }
 0x39f   : > { %4730 = vmatmul.msk.bf16.gmra.mxu3 %vm8037_vm14, %v3756_v45  ;;  %v5213_v45 = vpop.permute.xlu2 %5212  ;;  %vm8049_vm14 = vcmask 261248  }
 0x3a0   : > { %v3037_v56 = vadd.f32 %v7112_v7, %v3001_v63  ;;  %v5214_v17 = vunpack.i.l.bf16 %v5213_v45  ;;  %v5215_v21 = vunpack.i.h.bf16 %v5213_v45 }
 0x3a1   : > { %v3733_v57 = vld [vmem:[#allocation4 + $0x80] sm:$0xff]  ;;  %v3734_v30 = vld [vmem:[#allocation4 + $0x88] sm:$0xff] }
 0x3a2   : > { %v3757_v59 = vpack.c.bf16 %v3734_v30, %v3733_v57  ;;  %vm3069_vm9 = vcmp.gt.f32.partialorder %v3037_v56, 0.0  ;;  %v3101_v37 = vmul.f32 0.2, %v3037_v56  ;;  %v2648_v27 = vpop.f32.mrf.mxu3 }
 0x3a3   : > { %v2759_v38 = vadd.f32 %v2758_v43, %v2648_v27 }
 0x3a4   : > { %v3133_v62 = vsel %vm3069_vm9, %v3037_v56, %v3101_v37  ;;  %vm8050_vm9 = vmmov %vm8049_vm14 }
 0x3a5   : > { %4702 = vmatmul.msk.bf16.gmra.mxu2 %vm8038_vm0, %v3757_v59  ;;  %4763 = vmatmul.msk.bf16.gmra.mxu0 %vm8039_vm3, %v3757_v59  ;;  %v3165_v52 = vpack.c.bf16 %v3133_v62, %v3133_v62  ;;  %v2965_v33 = vpop.f32.mrf.mxu1  ;;  %v5246_v9 = vpack.i.bf16 %v3133_v62, %v7183_v49  ;;  %vm8051_vm0 = vmmov %vm8041_vm12 }
 0x3a6   : > { %v5203_v32 = vpop.permute.xlu0 %5202  ;;  %v3002_v22 = vadd.f32 %v2965_v33, %v2756_v8  ;;  %vm8052_vm3 = vmmov %vm8051_vm0 }
 0x3a7   : > { %v5205_v46 = vunpack.i.h.bf16 %v5203_v32  ;;  %v5204_v28 = vunpack.i.l.bf16 %v5203_v32  ;;  %v3233_v14 = vsel %vm5347_vm1, %v3165_v52, 0  ;;  %v3521_v53 = vsel %vm8042_vm10, %v3165_v52, 0  ;;  %5247 = vrot.lane.b32.xlu0 %v5246_v9, %s5284_s30 }
 0x3a8   : > { %v3265_v35 = vunpack.c.l.bf16 %v3233_v14  ;;  %v3038_v2 = vadd.f32 %v7112_v7, %v3002_v22  ;;  %v3553_v26 = vunpack.c.l.bf16 %v3521_v53 }
 0x3a9   : > { %3703 = vst.msk [vmem:[#allocation4 + $0x9f] sm:$0xff] %vm8040_vm13, %v5205_v46  ;;  %vm8053_vm13 = vnez %v7873_v13 }
 0x3aa   : > { %3702 = vst.msk [vmem:[#allocation4 + $0x97] sm:$0xff] %vm8041_vm12, %v5204_v28  ;;  %vm3070_vm2 = vcmp.gt.f32.partialorder %v3038_v2, 0.0  ;;  %v3102_v39 = vmul.f32 0.2, %v3038_v2  ;;  %v2650_v12 = vpop.f32.mrf.mxu3  ;;  %v5251_v42 = vpack.i.bf16 %v3553_v26, %v3552_v47  ;;  %vm8054_vm12 = vmmov %vm8043_vm5 }
 0x3ab   : > { %3297 = vst.msk [vmem:[#allocation4 + $0xf1] sm:$0xff] %vm8043_vm5, %v3265_v35  ;;  %v2761_v16 = vadd.f32 %v2760_v1, %v2650_v12  ;;  %vm8055_vm5 = vmmov %vm8050_vm9  ;;  %v7258_v35 = vld [vmem:[%s7453_s6] ss:$0 sm:$0xff] }
 0x3ac   : > { %v3134_v44 = vsel %vm3070_vm2, %v3038_v2, %v3102_v39  ;;  %5252 = vrot.lane.b32.xlu1 %v5251_v42, %s5285_s8  ;;  %vm8056_vm2 = vmmov %vm8055_vm5 }
 0x3ad   : > { %v3166_v25 = vpack.c.bf16 %v3134_v44, %v3134_v44  ;;  %v2968_v41 = vpop.f32.mrf.mxu1 }
 0x3ae   : > { %v3003_v36 = vadd.f32 %v2968_v41, %v2759_v38 }
 0x3af   : > { %v3234_v49 = vsel %vm8044_vm6, %v3166_v25, 0  ;;  %4731 = vmatmul.msk.bf16.gmra.mxu3 %vm8045_vm8, %v3757_v59  ;;  %v3522_v30 = vsel %vm5347_vm1, %v3166_v25, 0  ;;  %vm8057_vm6 = vnez %v7881_v5  ;;  %vm8058_vm8 = vmmov %vm8048_vm4 }
 0x3b0   : > { %v3266_v18 = vunpack.c.l.bf16 %v3234_v49  ;;  %v3039_v23 = vadd.f32 %v7112_v7, %v3003_v36  ;;  %v3554_v28 = vunpack.c.l.bf16 %v3522_v30 }
 0x3b1   : > { %v3735_v61 = vld [vmem:[#allocation4 + $0x90] sm:$0xff]  ;;  %v3736_v48 = vld [vmem:[#allocation4 + $0x98] sm:$0xff]  ;;  %v5208_v19 = vpop.permute.xlu1 %5207 }
 0x3b2   : > { %v3758_v55 = vpack.c.bf16 %v3736_v48, %v3735_v61  ;;  %3298 = vst.msk [vmem:[#allocation4 + $0xf9] sm:$0xff] %vm8046_vm7, %v3266_v18  ;;  %vm3071_vm11 = vcmp.gt.f32.partialorder %v3039_v23, 0.0  ;;  %v3103_v24 = vmul.f32 0.2, %v3039_v23  ;;  %v5210_v11 = vunpack.i.h.bf16 %v5208_v19  ;;  %v3966_v54 = vpop.f32.mrf.mxu3 }
 0x3b3   : > { %v5209_v34 = vunpack.i.l.bf16 %v5208_v19 }
 0x3b4   : > { %v3135_v29 = vsel %vm3071_vm11, %v3039_v23, %v3103_v24  ;;  %3481 = vst.msk [vmem:[#allocation4 + $0xb0] sm:$0xff] %vm8049_vm14, %v5210_v11  ;;  %v3856_v0 = vpop.f32.mrf.mxu2  ;;  %vm8059_vm11 = vmmov %vm8048_vm4  ;;  %v8063_v23 = vld [vmem:[#allocation17_spill] sm:$0xff] }
 0x3b5   : > { %4703 = vmatmul.msk.bf16.gmra.mxu2 %vm8047_vm15, %v3758_v55  ;;  %4764 = vmatmul.msk.bf16.gmra.mxu0 %vm8048_vm4, %v3758_v55  ;;  %v3167_v60 = vpack.c.bf16 %v3135_v29, %v3135_v29  ;;  %3480 = vst.msk [vmem:[#allocation4 + $0xa8] sm:$0xff] %vm8050_vm9, %v5209_v34  ;;  %v2970_v63 = vpop.f32.mrf.mxu1  ;;  %v5256_v46 = vpack.i.bf16 %v3135_v29, %v3134_v44  ;;  %vm8060_vm15 = vmmov %vm8048_vm4  ;;  %vm4420_vm9 = vcmask 125952   ;;  %v8065_v29 = vld [vmem:[#allocation18_spill] sm:$0xff] }
 0x3b6   : > { %3704 = vst.msk [vmem:[#allocation4 + $0xa7] sm:$0xff] %vm8051_vm0, %v5214_v17  ;;  %v3004_v57 = vadd.f32 %v2970_v63, %v2761_v16  ;;  %v3967_v53 = vadd.f32 %v3966_v54, %v3856_v0  ;;  %vm8064_vm14 = vmmov %vm8051_vm0 }
 0x3b7   : > { %v3235_v4 = vsel %vm5347_vm1, %v3167_v60, 0  ;;  %3705 = vst.msk [vmem:[#allocation4 + $0xaf] sm:$0xff] %vm8052_vm3, %v5215_v21  ;;  %v3523_v59 = vsel %vm8053_vm13, %v3167_v60, 0  ;;  %5257 = vrot.lane.b32.xlu2 %v5256_v46, %s5284_s30  ;;  %vm8066_vm3 = vmmov %vm8058_vm8 }
 0x3b8   : > { %v3267_v56 = vunpack.c.l.bf16 %v3235_v4  ;;  %v3040_v37 = vadd.f32 %v7112_v7, %v3004_v57  ;;  %v3555_v32 = vunpack.c.l.bf16 %v3523_v59  ;;  %vm8067_vm13 = vmmov %vm8066_vm3 }
 0x3b9   : > { %v5228_v27 = vpop.permute.xlu2 %5227 }
 0x3ba   : > { %3299 = vst.msk [vmem:[#allocation4 + $0x101] sm:$0xff] %vm8054_vm12, %v3267_v56  ;;  %vm3072_vm10 = vcmp.gt.f32.partialorder %v3040_v37, 0.0  ;;  %v3104_v8 = vmul.f32 0.2, %v3040_v37  ;;  %v5230_v62 = vunpack.i.h.bf16 %v5228_v27  ;;  %v5229_v52 = vunpack.i.l.bf16 %v5228_v27  ;;  %v3968_v33 = vpop.f32.mrf.mxu3  ;;  %vm8068_vm12 = vmmov %vm8066_vm3 }
 0x3bb   : > { %v5261_v31 = vpack.i.bf16 %v3555_v32, %v3554_v28 }
 0x3bc   : > { %v3136_v22 = vsel %vm3072_vm10, %v3040_v37, %v3104_v8  ;;  %3485 = vst.msk [vmem:[#allocation4 + $0xd0] sm:$0xff] %vm8055_vm5, %v5230_v62  ;;  %v3858_v7 = vpop.f32.mrf.mxu2  ;;  %vm8069_vm10 = vmmov %vm8051_vm0  ;;  %v8070_v62 = vld [vmem:[#allocation19_spill] sm:$0xff] }
 0x3bd   : > { %v3168_v13 = vpack.c.bf16 %v3136_v22, %v3136_v22  ;;  %3484 = vst.msk [vmem:[#allocation4 + $0xc8] sm:$0xff] %vm8056_vm2, %v5229_v52  ;;  %5262 = vrot.lane.b32.xlu0 %v5261_v31, %s5285_s8  ;;  %v3737_v14 = vld [vmem:[#allocation4 + $0xa0] sm:$0xff]  ;;  %v3969_v18 = vadd.f32 %v3968_v33, %v3858_v7  ;;  %vm8071_vm5 = vmmov %vm8051_vm0 }
 0x3be   : > { %v3738_v2 = vld [vmem:[#allocation4 + $0xa8] sm:$0xff] }
 0x3bf   : > { %v3236_v47 = vsel %vm8057_vm6, %v3168_v13, 0  ;;  %v3759_v43 = vpack.c.bf16 %v3738_v2, %v3737_v14  ;;  %4732 = vmatmul.msk.bf16.gmra.mxu3 %vm8058_vm8, %v3758_v55  ;;  %v3332_v9 = vunpack.c.l.bf16 %v3168_v13  ;;  %v3524_v39 = vsel %vm5347_vm1, %v3168_v13, 0  ;;  %vm8061_vm1 = vmmov %vm8056_vm2 }
 0x3c0   : > { %v3268_v12 = vunpack.c.l.bf16 %v3236_v47  ;;  %v3556_v38 = vunpack.c.l.bf16 %v3524_v39  ;;  %vm8062_vm4 = vmmov %vm8061_vm1 }
 0x3c1   : > { %3427 = vrot.lane.b32.xlu1 %v3332_v9, %s5284_s30  ;;  %v5218_v44 = vpop.permute.xlu0 %5217  ;;  %vm8073_vm2 = vmmov %vm8066_vm3 }
 0x3c2   : > { %v4176_v26 = vpop.f32.mrf.mxu0  ;;  %3300 = vst.msk [vmem:[#allocation4 + $0x109] sm:$0xff] %vm8046_vm7, %v3268_v12  ;;  %v5220_v5 = vunpack.i.h.bf16 %v5218_v44  ;;  %v5219_v41 = vunpack.i.l.bf16 %v5218_v44  ;;  %v3971_v3 = vpop.f32.mrf.mxu3  ;;  %3651 = vrot.lane.b32.xlu2 %v3556_v38, %s5285_s8  ;;  %vm8074_vm6 = vmmov %vm8073_vm2 }
 0x3c3   : > { %v4256_v42 = vadd.f32 %v4176_v26, %v3967_v53  ;;  %vm8075_vm8 = vmmov %vm8073_vm2 }
 0x3c4   : > { %3483 = vst.msk [vmem:[#allocation4 + $0xc0] sm:$0xff] %vm8061_vm1, %v5220_v5  ;;  %vm8076_vm7 = vmmov %vm8061_vm1 }
 0x3c5   : > { %v4292_v25 = vadd.f32 %v7258_v35, %v4256_v42  ;;  %4704 = vmatmul.msk.bf16.gmra.mxu2 %vm8059_vm11, %v3759_v43  ;;  %4765 = vmatmul.msk.bf16.gmra.mxu0 %vm8060_vm15, %v3759_v43  ;;  %3482 = vst.msk [vmem:[#allocation4 + $0xb8] sm:$0xff] %vm8062_vm4, %v5219_v41  ;;  %vm8077_vm11 = vmmov %vm8061_vm1 }
 0x3c6   : > { %v5223_v61 = vpop.permute.xlu1 %5222  ;;  %vm8079_vm15 = vmmov %vm8051_vm0 }
 0x3c7   : > { %v5225_v48 = vunpack.i.h.bf16 %v5223_v61  ;;  %v5224_v36 = vunpack.i.l.bf16 %v5223_v61  ;;  %v4324_v55 = vmul.f32 0.1, %v4292_v25  ;;  %vm8080_vm1 = vmmov %vm8051_vm0 }
 0x3c8   : > { %v3861_v49 = vpop.f32.mrf.mxu2  ;;  %vm8082_vm4 = vmmov %vm8073_vm2 }
 0x3c9   : > { %v4356_v45 = vadd.f32 %v4324_v55, %v8063_v23  ;;  %3707 = vst.msk [vmem:[#allocation4 + $0xbf] sm:$0xff] %vm8064_vm14, %v5225_v48  ;;  %v3972_v16 = vadd.f32 %v3971_v3, %v3861_v49  ;;  %v8078_v23 = vld [vmem:[#allocation21_spill] sm:$0xff]  ;;  %vm8083_vm14 = vmmov %vm8073_vm2 }
 0x3ca   : > { %3706 = vst.msk [vmem:[#allocation4 + $0xb7] sm:$0xff] %vm8051_vm0, %v5224_v36  ;;  %v4178_v19 = vpop.f32.mrf.mxu0  ;;  %v3973_v54 = vpop.f32.mrf.mxu3  ;;  %vm8084_vm0 = vmmov %vm8073_vm2 }
 0x3cb   : > { %v4388_v24 = vpack.c.bf16 %v4356_v45, %v4356_v45  ;;  %v4257_v11 = vadd.f32 %v4178_v19, %v3969_v18 }
 0x3cd   : > { %4421 = vst.msk [vmem:[%s7280_s14] sm:$0xf] %vm4420_vm9, %v4388_v24  ;;  %v4293_v34 = vadd.f32 %v7258_v35, %v4257_v11 }
 0x3ce   : > { %v5243_v44 = vpop.permute.xlu2 %5242 }
 0x3cf   : > { %v4325_v1 = vmul.f32 0.1, %v4293_v34  ;;  %4733 = vmatmul.msk.bf16.gmra.mxu3 %vm8066_vm3, %v3759_v43  ;;  %v8072_v43 = vld [vmem:[#allocation20_spill] sm:$0xff]  ;;  %v5244_v48 = vunpack.i.l.bf16 %v5243_v44  ;;  %v5245_v55 = vunpack.i.h.bf16 %v5243_v44  ;;  %vm8086_vm3 = vmmov %vm8084_vm0 }
 0x3d0   : > { %v3863_v17 = vpop.f32.mrf.mxu2 }
 0x3d1   : > { %v4357_v21 = vadd.f32 %v4325_v1, %v8065_v29  ;;  %v3739_v60 = vld [vmem:[#allocation4 + $0xb0] sm:$0xff]  ;;  %v3740_v0 = vld [vmem:[#allocation4 + $0xb8] sm:$0xff]  ;;  %v3974_v8 = vadd.f32 %v3973_v54, %v3863_v17 }
 0x3d2   : > { %v4181_v63 = vpop.f32.mrf.mxu0  ;;  %v3760_v57 = vpack.c.bf16 %v3740_v0, %v3739_v60  ;;  %v3976_v37 = vpop.f32.mrf.mxu3 }
 0x3d3   : > { %v4389_v30 = vpack.c.bf16 %v4357_v21, %v4357_v21  ;;  %v4258_v4 = vadd.f32 %v4181_v63, %v3972_v16  ;;  %v8081_v21 = vld [vmem:[#allocation22_spill] sm:$0xff] }
 0x3d5   : > { %4422 = vst.msk [vmem:[%s7280_s14 + $0x4] sm:$0xf] %vm4420_vm9, %v4389_v30  ;;  %v4294_v59 = vadd.f32 %v7258_v35, %v4258_v4  ;;  %4705 = vmatmul.msk.bf16.gmra.mxu2 %vm8067_vm13, %v3760_v57  ;;  %4766 = vmatmul.msk.bf16.gmra.mxu0 %vm8068_vm12, %v3760_v57  ;;  %vm8087_vm13 = vmmov %vm8076_vm7 }
 0x3d6   : > { %v5233_v56 = vpop.permute.xlu0 %5232  ;;  %vm8088_vm12 = vmmov %vm8076_vm7 }
 0x3d7   : > { %v5235_v32 = vunpack.i.h.bf16 %v5233_v56  ;;  %v5234_v27 = vunpack.i.l.bf16 %v5233_v56  ;;  %v4326_v46 = vmul.f32 0.1, %v4294_v59 }
 0x3d8   : > { %v3866_v28 = vpop.f32.mrf.mxu2 }
 0x3d9   : > { %3709 = vst.msk [vmem:[#allocation4 + $0xcf] sm:$0xff] %vm8069_vm10, %v5235_v32  ;;  %v4358_v52 = vadd.f32 %v4326_v46, %v8070_v62  ;;  %v3977_v26 = vadd.f32 %v3976_v37, %v3866_v28  ;;  %v8085_v46 = vld [vmem:[#allocation23_spill] sm:$0xff]  ;;  %vm8089_vm10 = vmmov %vm8076_vm7 }
 0x3da   : > { %3708 = vst.msk [vmem:[#allocation4 + $0xc7] sm:$0xff] %vm8071_vm5, %v5234_v27  ;;  %v4183_v33 = vpop.f32.mrf.mxu0  ;;  %v3978_v7 = vpop.f32.mrf.mxu3  ;;  %vm8090_vm5 = vmmov %vm8076_vm7 }
 0x3db   : > { %v4390_v31 = vpack.c.bf16 %v4358_v52, %v4358_v52  ;;  %v4259_v22 = vadd.f32 %v4183_v33, %v3974_v8 }
 0x3dd   : > { %4423 = vst.msk [vmem:[%s7280_s14 + $0x8] sm:$0xf] %vm4420_vm9, %v4390_v31  ;;  %v4295_v13 = vadd.f32 %v7258_v35, %v4259_v22 }
 0x3df   : > { %v4327_v14 = vmul.f32 0.1, %v4295_v13  ;;  %4734 = vmatmul.msk.bf16.gmra.mxu3 %vm8073_vm2, %v3760_v57  ;;  %vm8091_vm2 = vmmov %vm8080_vm1 }
 0x3e0   : > { %v3868_v53 = vpop.f32.mrf.mxu2 }
 0x3e1   : > { %v3741_v2 = vld [vmem:[#allocation4 + $0xc0] sm:$0xff]  ;;  %v3742_v47 = vld [vmem:[#allocation4 + $0xc8] sm:$0xff]  ;;  %v4359_v9 = vadd.f32 %v4327_v14, %v8072_v43  ;;  %v5238_v25 = vpop.permute.xlu1 %5237  ;;  %v3979_v18 = vadd.f32 %v3978_v7, %v3868_v53 }
 0x3e2   : > { %v3761_v39 = vpack.c.bf16 %v3742_v47, %v3741_v2  ;;  %v4186_v12 = vpop.f32.mrf.mxu0  ;;  %v5240_v41 = vunpack.i.h.bf16 %v5238_v25  ;;  %v5239_v61 = vunpack.i.l.bf16 %v5238_v25  ;;  %v3981_v3 = vpop.f32.mrf.mxu3 }
 0x3e3   : > { %v4391_v42 = vpack.c.bf16 %v4359_v9, %v4359_v9  ;;  %v4260_v38 = vadd.f32 %v4186_v12, %v3977_v26 }
 0x3e4   : > { %3487 = vst.msk [vmem:[#allocation4 + $0xe0] sm:$0xff] %vm8076_vm7, %v5240_v41  ;;  %vm8094_vm7 = vmmov %vm8084_vm0 }
 0x3e5   : > { %4424 = vst.msk [vmem:[%s7280_s14 + $0xc] sm:$0xf] %vm4420_vm9, %v4391_v42  ;;  %v4296_v5 = vadd.f32 %v7258_v35, %v4260_v38  ;;  %4706 = vmatmul.msk.bf16.gmra.mxu2 %vm8074_vm6, %v3761_v39  ;;  %4767 = vmatmul.msk.bf16.gmra.mxu0 %vm8075_vm8, %v3761_v39  ;;  %vm8092_vm6 = vmmov %vm8080_vm1 }
 0x3e6   : > { %3486 = vst.msk [vmem:[#allocation4 + $0xd8] sm:$0xff] %vm8077_vm11, %v5239_v61  ;;  %vm8093_vm8 = vmmov %vm8084_vm0 }
 0x3e7   : > { %v4328_v36 = vmul.f32 0.1, %v4296_v5  ;;  %3710 = vst.msk [vmem:[#allocation4 + $0xd7] sm:$0xff] %vm8079_vm15, %v5244_v48  ;;  %vm8095_vm11 = vmmov %vm8084_vm0 }
 0x3e8   : > { %v3871_v49 = vpop.f32.mrf.mxu2  ;;  %3711 = vst.msk [vmem:[#allocation4 + $0xdf] sm:$0xff] %vm8080_vm1, %v5245_v55  ;;  %vm8096_vm15 = vmmov %vm8080_vm1 }
 0x3e9   : > { %v4360_v45 = vadd.f32 %v4328_v36, %v8078_v23  ;;  %v3982_v29 = vadd.f32 %v3981_v3, %v3871_v49 }
 0x3ea   : > { %v4188_v19 = vpop.f32.mrf.mxu0  ;;  %v3983_v54 = vpop.f32.mrf.mxu3 }
 0x3eb   : > { %v4392_v24 = vpack.c.bf16 %v4360_v45, %v4360_v45  ;;  %v4261_v11 = vadd.f32 %v4188_v19, %v3979_v18 }
 0x3ed   : > { %4425 = vst.msk [vmem:[%s7280_s14 + $0x10] sm:$0xf] %vm4420_vm9, %v4392_v24  ;;  %v4297_v34 = vadd.f32 %v7258_v35, %v4261_v11 }
 0x3ee   : > { %v3743_v16 = vld [vmem:[#allocation4 + $0xd0] sm:$0xff] }
 0x3ef   : > { %v4329_v1 = vmul.f32 0.1, %v4297_v34  ;;  %v3744_v0 = vld [vmem:[#allocation4 + $0xd8] sm:$0xff]  ;;  %4735 = vmatmul.msk.bf16.gmra.mxu3 %vm8082_vm4, %v3761_v39  ;;  %vm8097_vm4 = vmmov %vm8090_vm5 }
 0x3f0   : > { %v3873_v17 = vpop.f32.mrf.mxu2  ;;  %v3762_v57 = vpack.c.bf16 %v3744_v0, %v3743_v16 }
 0x3f1   : > { %v4361_v60 = vadd.f32 %v4329_v1, %v8081_v21  ;;  %v3984_v27 = vadd.f32 %v3983_v54, %v3873_v17 }
 0x3f2   : > { %v4191_v63 = vpop.f32.mrf.mxu0  ;;  %v3986_v56 = vpop.f32.mrf.mxu3 }
 0x3f3   : > { %v4393_v30 = vpack.c.bf16 %v4361_v60, %v4361_v60  ;;  %v4262_v4 = vadd.f32 %v4191_v63, %v3982_v29 }
 0x3f5   : > { %4426 = vst.msk [vmem:[%s7280_s14 + $0x14] sm:$0xf] %vm4420_vm9, %v4393_v30  ;;  %v4298_v59 = vadd.f32 %v7258_v35, %v4262_v4  ;;  %4707 = vmatmul.msk.bf16.gmra.mxu2 %vm8083_vm14, %v3762_v57  ;;  %4768 = vmatmul.msk.bf16.gmra.mxu0 %vm8084_vm0, %v3762_v57  ;;  %vm8098_vm14 = vmmov %vm8080_vm1 }
 0x3f7   : > { %v4330_v37 = vmul.f32 0.1, %v4298_v59 }
 0x3f8   : > { %v3876_v32 = vpop.f32.mrf.mxu2 }
 0x3f9   : > { %v4362_v28 = vadd.f32 %v4330_v37, %v8085_v46  ;;  %v3987_v7 = vadd.f32 %v3986_v56, %v3876_v32 }
 0x3fa   : > { %v4193_v8 = vpop.f32.mrf.mxu0  ;;  %v3988_v31 = vpop.f32.mrf.mxu3 }
 0x3fb   : > { %v4394_v62 = vpack.c.bf16 %v4362_v28, %v4362_v28  ;;  %v4263_v52 = vadd.f32 %v4193_v8, %v3984_v27 }
 0x3fd   : > { %4427 = vst.msk [vmem:[%s7280_s14 + $0x18] sm:$0xf] %vm4420_vm9, %v4394_v62  ;;  %v4299_v33 = vadd.f32 %v7258_v35, %v4263_v52 }
 0x3ff   : > { %v4331_v22 = vmul.f32 0.1, %v4299_v33  ;;  %4736 = vmatmul.msk.bf16.gmra.mxu3 %vm8086_vm3, %v3762_v57  ;;  %vm8100_vm3 = vmmov %vm8084_vm0 }
 0x400   : > { %v3878_v13 = vpop.f32.mrf.mxu2 }
 0x401   : > { %v4363_v14 = vadd.f32 %v4331_v22, %v6375_v58  ;;  %v3989_v12 = vadd.f32 %v3988_v31, %v3878_v13 }
 0x402   : > { %v4196_v53 = vpop.f32.mrf.mxu0  ;;  %v3991_v43 = vpop.f32.mrf.mxu3 }
 0x403   : > { %v4395_v2 = vpack.c.bf16 %v4363_v14, %v4363_v14  ;;  %v4264_v47 = vadd.f32 %v4196_v53, %v3987_v7 }
 0x405   : > { %4428 = vst.msk [vmem:[%s7280_s14 + $0x1c] sm:$0xf] %vm4420_vm9, %v4395_v2  ;;  %v4300_v26 = vadd.f32 %v7258_v35, %v4264_v47 }
 0x407   : > { %v4332_v9 = vmul.f32 0.1, %v4300_v26 }
 0x408   : > { %v3881_v39 = vpop.f32.mrf.mxu2 }
 0x409   : > { %v4364_v42 = vadd.f32 %v4332_v9, %v6427_v10  ;;  %v3992_v3 = vadd.f32 %v3991_v43, %v3881_v39 }
 0x40a   : > { %v4198_v38 = vpop.f32.mrf.mxu0  ;;  %v3993_v5 = vpop.f32.mrf.mxu3 }
 0x40b   : > { %v4396_v44 = vpack.c.bf16 %v4364_v42, %v4364_v42  ;;  %v4265_v25 = vadd.f32 %v4198_v38, %v3989_v12 }
 0x40d   : > { %4429 = vst.msk [vmem:[%s7280_s14 + $0x20] sm:$0xf] %vm4420_vm9, %v4396_v44  ;;  %v4301_v58 = vadd.f32 %v7258_v35, %v4265_v25 }
 0x40f   : > { %v4333_v41 = vmul.f32 0.1, %v4301_v58 }
 0x410   : > { %v3883_v61 = vpop.f32.mrf.mxu2 }
 0x411   : > { %v4365_v48 = vadd.f32 %v4333_v41, %v6450_v20  ;;  %v5258_v19 = vpop.permute.xlu2 %5257  ;;  %v3994_v24 = vadd.f32 %v3993_v5, %v3883_v61 }
 0x412   : > { %v4201_v36 = vpop.f32.mrf.mxu0  ;;  %v3996_v18 = vpop.f32.mrf.mxu3  ;;  %v5260_v34 = vunpack.i.h.bf16 %v5258_v19  ;;  %v5259_v54 = vunpack.i.l.bf16 %v5258_v19 }
 0x413   : > { %v4397_v55 = vpack.c.bf16 %v4365_v48, %v4365_v48  ;;  %v4266_v49 = vadd.f32 %v4201_v36, %v3992_v3 }
 0x414   : > { %3490 = vst.msk [vmem:[#allocation4 + $0xf8] sm:$0xff] %vm8087_vm13, %v5259_v54  ;;  %v8099_v54 = vld [vmem:[#allocation24_spill] sm:$0xff]  ;;  %vm8101_vm13 = vmmov %vm8084_vm0 }
 0x415   : > { %4430 = vst.msk [vmem:[%s7280_s14 + $0x24] sm:$0xf] %vm4420_vm9, %v4397_v55  ;;  %v4302_v10 = vadd.f32 %v7258_v35, %v4266_v49 }
 0x416   : > { %3491 = vst.msk [vmem:[#allocation4 + $0x100] sm:$0xff] %vm8088_vm12, %v5260_v34  ;;  %vm8104_vm12 = vmmov %vm8084_vm0 }
 0x417   : > { %v4334_v23 = vmul.f32 0.1, %v4302_v10 }
 0x418   : > { %v3886_v45 = vpop.f32.mrf.mxu2 }
 0x419   : > { %v4366_v11 = vadd.f32 %v4334_v23, %v6469_v50  ;;  %v5248_v0 = vpop.permute.xlu0 %5247  ;;  %v3997_v63 = vadd.f32 %v3996_v18, %v3886_v45 }
 0x41a   : > { %v4203_v1 = vpop.f32.mrf.mxu0  ;;  %v3998_v29 = vpop.f32.mrf.mxu3  ;;  %v5250_v57 = vunpack.i.h.bf16 %v5248_v0  ;;  %v5249_v30 = vunpack.i.l.bf16 %v5248_v0 }
 0x41b   : > { %v4398_v17 = vpack.c.bf16 %v4366_v11, %v4366_v11  ;;  %v4267_v20 = vadd.f32 %v4203_v1, %v3994_v24 }
 0x41c   : > { %3488 = vst.msk [vmem:[#allocation4 + $0xe8] sm:$0xff] %vm8089_vm10, %v5249_v30  ;;  %v3652_v41 = vpop.permute.xlu2 %3651  ;;  %vm8105_vm10 = vmmov %vm8084_vm0 }
 0x41d   : > { %4431 = vst.msk [vmem:[%s7280_s14 + $0x28] sm:$0xf] %vm4420_vm9, %v4398_v17  ;;  %v4303_v16 = vadd.f32 %v7258_v35, %v4267_v20 }
 0x41e   : > { %v5253_v4 = vpop.permute.xlu1 %5252  ;;  %3489 = vst.msk [vmem:[#allocation4 + $0xf0] sm:$0xff] %vm8090_vm5, %v5250_v57  ;;  %vm8108_vm5 = vmmov %vm8084_vm0 }
 0x41f   : > { %v4335_v21 = vmul.f32 0.1, %v4303_v16  ;;  %v5254_v56 = vunpack.i.l.bf16 %v5253_v4  ;;  %v5255_v27 = vunpack.i.h.bf16 %v5253_v4 }
 0x420   : > { %v3888_v60 = vpop.f32.mrf.mxu2 }
 0x421   : > { %v4367_v50 = vadd.f32 %v4335_v21, %v6483_v51  ;;  %3712 = vst.msk [vmem:[#allocation4 + $0xe7] sm:$0xff] %vm8091_vm2, %v5254_v56  ;;  %v3999_v62 = vadd.f32 %v3998_v29, %v3888_v60 }
 0x422   : > { %v4206_v59 = vpop.f32.mrf.mxu0  ;;  %v4001_v28 = vpop.f32.mrf.mxu3  ;;  %3713 = vst.msk [vmem:[#allocation4 + $0xef] sm:$0xff] %vm8092_vm6, %v5255_v27 }
 0x423   : > { %v4399_v37 = vpack.c.bf16 %v4367_v50, %v4367_v50  ;;  %v4268_v32 = vadd.f32 %v4206_v59, %v3997_v63  ;;  %v8102_v63 = vld [vmem:[#allocation25_spill] sm:$0xff] }
 0x425   : > { %4432 = vst.msk [vmem:[%s7280_s14 + $0x2c] sm:$0xf] %vm4420_vm9, %v4399_v37  ;;  %v4304_v46 = vadd.f32 %v7258_v35, %v4268_v32 }
 0x427   : > { %v4336_v51 = vmul.f32 0.1, %v4304_v46 }
 0x428   : > { %v3891_v8 = vpop.f32.mrf.mxu2  ;;  %v3745_v7 = vld [vmem:[#allocation4 + $0xe0] sm:$0xff] }
 0x429   : > { %v4368_v52 = vadd.f32 %v4336_v51, %v6502_v15  ;;  %v3746_v53 = vld [vmem:[#allocation4 + $0xe8] sm:$0xff]  ;;  %v4002_v43 = vadd.f32 %v4001_v28, %v3891_v8 }
 0x42a   : > { %v4208_v33 = vpop.f32.mrf.mxu0  ;;  %v4003_v14 = vpop.f32.mrf.mxu3  ;;  %v3763_v47 = vpack.c.bf16 %v3746_v53, %v3745_v7  ;;  %v8103_v8 = vld [vmem:[#allocation26_spill] sm:$0xff] }
 0x42b   : > { %v4400_v31 = vpack.c.bf16 %v4368_v52, %v4368_v52  ;;  %v4269_v22 = vadd.f32 %v4208_v33, %v3999_v62 }
 0x42c   : > { %4708 = vmatmul.msk.bf16.gmra.mxu2 %vm8093_vm8, %v3763_v47  ;;  %4737 = vmatmul.msk.bf16.gmra.mxu3 %vm8094_vm7, %v3763_v47 }
 0x42d   : > { %4433 = vst.msk [vmem:[%s7280_s14 + $0x30] sm:$0xf] %vm4420_vm9, %v4400_v31  ;;  %v4305_v13 = vadd.f32 %v7258_v35, %v4269_v22  ;;  %4769 = vmatmul.msk.bf16.gmra.mxu0 %vm8095_vm11, %v3763_v47 }
 0x42f   : > { %v4337_v2 = vmul.f32 0.1, %v4305_v13  ;;  %v5263_v39 = vpop.permute.xlu0 %5262 }
 0x430   : > { %v3893_v26 = vpop.f32.mrf.mxu2  ;;  %v5265_v38 = vunpack.i.h.bf16 %v5263_v39  ;;  %v5264_v44 = vunpack.i.l.bf16 %v5263_v39  ;;  %v4076_v39 = vld [vmem:[#allocation4 + $0x110] sm:$0xff] }
 0x431   : > { %v4369_v9 = vadd.f32 %v4337_v2, %v6519_v40  ;;  %v4004_v3 = vadd.f32 %v4003_v14, %v3893_v26  ;;  %v8106_v2 = vld [vmem:[#allocation27_spill] sm:$0xff] }
 0x432   : > { %v4211_v15 = vpop.f32.mrf.mxu0  ;;  %v4006_v58 = vpop.f32.mrf.mxu3  ;;  %3714 = vst.msk [vmem:[#allocation4 + $0xf7] sm:$0xff] %vm8096_vm15, %v5264_v44 }
 0x433   : > { %v4401_v12 = vpack.c.bf16 %v4369_v9, %v4369_v9  ;;  %v4270_v42 = vadd.f32 %v4211_v15, %v4002_v43  ;;  %v3428_v40 = vpop.permute.xlu1 %3427  ;;  %3715 = vst.msk [vmem:[#allocation4 + $0xff] sm:$0xff] %vm8080_vm1, %v5265_v38 }
 0x434   : > { %3492 = vst.msk [vmem:[#allocation4 + $0x108] sm:$0xff] %vm8097_vm4, %v3428_v40 }
 0x435   : > { %4434 = vst.msk [vmem:[%s7280_s14 + $0x34] sm:$0xf] %vm4420_vm9, %v4401_v12  ;;  %v4306_v25 = vadd.f32 %v7258_v35, %v4270_v42  ;;  %v4077_v12 = vld [vmem:[#allocation4 + $0x118] sm:$0xff] }
 0x436   : > { %3716 = vst.msk [vmem:[#allocation4 + $0x107] sm:$0xff] %vm8098_vm14, %v3652_v41  ;;  %v4093_v38 = vpack.c.bf16 %v4077_v12, %v4076_v39 }
 0x437   : > { %v4338_v5 = vmul.f32 0.1, %v4306_v25  ;;  %v8107_v25 = vld [vmem:[#allocation28_spill] sm:$0xff] }
 0x438   : > { %v3896_v61 = vpop.f32.mrf.mxu2 }
 0x439   : > { %v4370_v48 = vadd.f32 %v4338_v5, %v6534_v6  ;;  %v3747_v18 = vld [vmem:[#allocation4 + $0xf0] sm:$0xff]  ;;  %v4007_v34 = vadd.f32 %v4006_v58, %v3896_v61 }
 0x43a   : > { %v4213_v36 = vpop.f32.mrf.mxu0  ;;  %v4008_v23 = vpop.f32.mrf.mxu3  ;;  %v3748_v45 = vld [vmem:[#allocation4 + $0xf8] sm:$0xff] }
 0x43b   : > { %v4402_v55 = vpack.c.bf16 %v4370_v48, %v4370_v48  ;;  %v4271_v49 = vadd.f32 %v4213_v36, %v4004_v3  ;;  %v3764_v24 = vpack.c.bf16 %v3748_v45, %v3747_v18 }
 0x43d   : > { %4435 = vst.msk [vmem:[%s7280_s14 + $0x38] sm:$0xf] %vm4420_vm9, %v4402_v55  ;;  %v4307_v10 = vadd.f32 %v7258_v35, %v4271_v49  ;;  %4709 = vmatmul.msk.bf16.gmra.mxu2 %vm8084_vm0, %v3764_v24  ;;  %4738 = vmatmul.msk.bf16.gmra.mxu3 %vm8100_vm3, %v3764_v24  ;;  %v3771_v59 = vld [vmem:[#allocation4 + $0x100] sm:$0xff]  ;;  %v3772_v56 = vld [vmem:[#allocation4 + $0x108] sm:$0xff] }
 0x43e   : > { %4770 = vmatmul.msk.bf16.gmra.mxu0 %vm8101_vm13, %v3764_v24  ;;  %v3773_v46 = vpack.c.bf16 %v3772_v56, %v3771_v59  ;;  %v8109_v49 = vld [vmem:[#allocation29_spill] sm:$0xff] }
 0x43f   : > { %v4339_v19 = vmul.f32 0.1, %v4307_v10 }
 0x440   : > { %v3898_v11 = vpop.f32.mrf.mxu2 }
 0x441   : > { %v4371_v1 = vadd.f32 %v4339_v19, %v8099_v54  ;;  %v4009_v0 = vadd.f32 %v4008_v23, %v3898_v11 }
 0x442   : > { %v4216_v6 = vpop.f32.mrf.mxu0  ;;  %v4011_v29 = vpop.f32.mrf.mxu3 }
 0x443   : > { %v4403_v17 = vpack.c.bf16 %v4371_v1, %v4371_v1  ;;  %v4272_v20 = vadd.f32 %v4216_v6, %v4007_v34  ;;  %v8110_v1 = vld [vmem:[#allocation30_spill] sm:$0xff] }
 0x445   : > { %4436 = vst.msk [vmem:[%s7280_s14 + $0x3c] sm:$0xf] %vm4420_vm9, %v4403_v17  ;;  %v4308_v16 = vadd.f32 %v7258_v35, %v4272_v20 }
 0x447   : > { %v4340_v21 = vmul.f32 0.1, %v4308_v16 }
 0x448   : > { %v3901_v60 = vpop.f32.mrf.mxu2 }
 0x449   : > { %v4372_v50 = vadd.f32 %v4340_v21, %v8102_v63  ;;  %v4012_v51 = vadd.f32 %v4011_v29, %v3901_v60 }
 0x44a   : > { %v4218_v57 = vpop.f32.mrf.mxu0  ;;  %v4013_v32 = vpop.f32.mrf.mxu3 }
 0x44b   : > { %v4404_v30 = vpack.c.bf16 %v4372_v50, %v4372_v50  ;;  %v4273_v4 = vadd.f32 %v4218_v57, %v4009_v0  ;;  %v8111_v50 = vld [vmem:[#allocation31_spill] sm:$0xff] }
 0x44d   : > { %4437 = vst.msk [vmem:[%s7280_s14 + $0x40] sm:$0xf] %vm4420_vm9, %v4404_v30  ;;  %v4309_v37 = vadd.f32 %v7258_v35, %v4273_v4  ;;  %4710 = vmatmul.msk.bf16.gmra.mxu2 %vm8104_vm12, %v3773_v46 }
 0x44e   : > { %4771 = vmatmul.msk.bf16.gmra.mxu0 %vm8105_vm10, %v3773_v46 }
 0x44f   : > { %v4341_v27 = vmul.f32 0.1, %v4309_v37 }
 0x450   : > { %v3903_v28 = vpop.f32.mrf.mxu2 }
 0x451   : > { %v4373_v62 = vadd.f32 %v4341_v27, %v8103_v8  ;;  %v4014_v53 = vadd.f32 %v4013_v32, %v3903_v28  ;;  %v8112_v32 = vld [vmem:[#allocation5_spill] sm:$0xff] }
 0x452   : > { %v4221_v52 = vpop.f32.mrf.mxu0  ;;  %v4016_v7 = vpop.f32.mrf.mxu3 }
 0x453   : > { %v4405_v33 = vpack.c.bf16 %v4373_v62, %v4373_v62  ;;  %v4274_v31 = vadd.f32 %v4221_v52, %v4012_v51 }
 0x455   : > { %4438 = vst.msk [vmem:[%s7280_s14 + $0x44] sm:$0xf] %vm4420_vm9, %v4405_v33  ;;  %v4310_v22 = vadd.f32 %v7258_v35, %v4274_v31 }
 0x457   : > { %v4342_v13 = vmul.f32 0.1, %v4310_v22 }
 0x458   : > { %v3906_v14 = vpop.f32.mrf.mxu2 }
 0x459   : > { %v4374_v47 = vadd.f32 %v4342_v13, %v8106_v2  ;;  %v4017_v44 = vadd.f32 %v4016_v7, %v3906_v14  ;;  %v8113_v2 = vld [vmem:[#allocation10_spill] sm:$0xff] }
 0x45a   : > { %v4223_v26 = vpop.f32.mrf.mxu0  ;;  %v4018_v40 = vpop.f32.mrf.mxu3 }
 0x45b   : > { %v4406_v43 = vpack.c.bf16 %v4374_v47, %v4374_v47  ;;  %v4275_v9 = vadd.f32 %v4223_v26, %v4014_v53 }
 0x45d   : > { %4439 = vst.msk [vmem:[%s7280_s14 + $0x48] sm:$0xf] %vm4420_vm9, %v4406_v43  ;;  %v4311_v15 = vadd.f32 %v7258_v35, %v4275_v9 }
 0x45e   : > { %4772 = vmatmul.msk.bf16.gmra.mxu0 %vm8108_vm5, %v4093_v38  ;;  %v8114_v38 = vld [vmem:[#allocation32_spill] sm:$0xff] }
 0x45f   : > { %v4343_v42 = vmul.f32 0.1, %v4311_v15 }
 0x460   : > { %v3908_v5 = vpop.f32.mrf.mxu2 }
 0x461   : > { %v4375_v58 = vadd.f32 %v4343_v42, %v8107_v25  ;;  %v4019_v55 = vadd.f32 %v4018_v40, %v3908_v5 }
 0x462   : > { %v4226_v41 = vpop.f32.mrf.mxu0  ;;  %v4021_v24 = vpop.f32.mrf.mxu3 }
 0x463   : > { %v4407_v61 = vpack.c.bf16 %v4375_v58, %v4375_v58  ;;  %v4276_v3 = vadd.f32 %v4226_v41, %v4017_v44 }
 0x465   : > { %4440 = vst.msk [vmem:[%s7280_s14 + $0x4c] sm:$0xf] %vm4420_vm9, %v4407_v61  ;;  %v4312_v48 = vadd.f32 %v7258_v35, %v4276_v3 }
 0x467   : > { %v4344_v36 = vmul.f32 0.1, %v4312_v48 }
 0x468   : > { %v3911_v19 = vpop.f32.mrf.mxu2 }
 0x469   : > { %v4376_v10 = vadd.f32 %v4344_v36, %v8109_v49  ;;  %v4022_v54 = vadd.f32 %v4021_v24, %v3911_v19  ;;  %v8115_v36 = vld [vmem:[#allocation7_spill] sm:$0xff] }
 0x46a   : > { %v4228_v18 = vpop.f32.mrf.mxu0  ;;  %v4023_v60 = vpop.f32.mrf.mxu3 }
 0x46b   : > { %v4408_v23 = vpack.c.bf16 %v4376_v10, %v4376_v10  ;;  %v4277_v45 = vadd.f32 %v4228_v18, %v4019_v55 }
 0x46d   : > { %4441 = vst.msk [vmem:[%s7280_s14 + $0x50] sm:$0xf] %vm4420_vm9, %v4408_v23  ;;  %v4313_v11 = vadd.f32 %v7258_v35, %v4277_v45 }
 0x46f   : > { %v4345_v34 = vmul.f32 0.1, %v4313_v11  ;;  %v8116_v11 = vld [vmem:[#allocation11_spill] sm:$0xff] }
 0x470   : > { %v3913_v21 = vpop.f32.mrf.mxu2 }
 0x471   : > { %v4377_v6 = vadd.f32 %v4345_v34, %v8110_v1  ;;  %v4024_v63 = vadd.f32 %v4023_v60, %v3913_v21  ;;  %v8117_v60 = vld [vmem:[#allocation9_spill] sm:$0xff] }
 0x472   : > { %v4231_v17 = vpop.f32.mrf.mxu0  ;;  %v4026_v28 = vpop.f32.mrf.mxu3 }
 0x473   : > { %v4409_v20 = vpack.c.bf16 %v4377_v6, %v4377_v6  ;;  %v4278_v16 = vadd.f32 %v4231_v17, %v4022_v54 }
 0x475   : > { %4442 = vst.msk [vmem:[%s7280_s14 + $0x54] sm:$0xf] %vm4420_vm9, %v4409_v20  ;;  %v4314_v29 = vadd.f32 %v7258_v35, %v4278_v16 }
 0x477   : > { %v4346_v0 = vmul.f32 0.1, %v4314_v29 }
 0x478   : > { %v3916_v51 = vpop.f32.mrf.mxu2 }
 0x479   : > { %v4378_v57 = vadd.f32 %v4346_v0, %v8111_v50  ;;  %v4027_v52 = vadd.f32 %v4026_v28, %v3916_v51 }
 0x47a   : > { %v4233_v30 = vpop.f32.mrf.mxu0  ;;  %v4028_v8 = vpop.f32.mrf.mxu3 }
 0x47b   : > { %v4410_v4 = vpack.c.bf16 %v4378_v57, %v4378_v57  ;;  %v4279_v59 = vadd.f32 %v4233_v30, %v4024_v63 }
 0x47d   : > { %4443 = vst.msk [vmem:[%s7280_s14 + $0x58] sm:$0xf] %vm4420_vm9, %v4410_v4  ;;  %v4315_v56 = vadd.f32 %v7258_v35, %v4279_v59 }
 0x47f   : > { %v4347_v37 = vmul.f32 0.1, %v4315_v56 }
 0x480   : > { %v3918_v62 = vpop.f32.mrf.mxu2 }
 0x481   : > { %v4379_v27 = vadd.f32 %v4347_v37, %v8112_v32  ;;  %v4029_v53 = vadd.f32 %v4028_v8, %v3918_v62  ;;  %v8118_v32 = vld [vmem:[#allocation13_spill] sm:$0xff] }
 0x482   : > { %v4031_v14 = vpop.f32.mrf.mxu3 }
 0x483   : > { %v4411_v46 = vpack.c.bf16 %v4379_v27, %v4379_v27 }
 0x485   : > { %4444 = vst.msk [vmem:[%s7280_s14 + $0x5c] sm:$0xf] %vm4420_vm9, %v4411_v46 }
 0x48a   : > { %v4033_v25 = vpop.f32.mrf.mxu3 }
 0x4aa   : > { %v4236_v33 = vpop.f32.mrf.mxu0 }
 0x4ab   : > { %v4280_v31 = vadd.f32 %v4236_v33, %v4027_v52 }
 0x4ad   : > { %v4316_v22 = vadd.f32 %v7258_v35, %v4280_v31 }
 0x4af   : > { %v4348_v13 = vmul.f32 0.1, %v4316_v22  ;;  %v3921_v7 = vpop.f32.mrf.mxu2  ;;  %v4036_v49 = vpop.f32.mrf.mxu3  ;;  %v8119_v22 = vld [vmem:[#allocation12_spill] sm:$0xff] }
 0x4b0   : > { %v4032_v42 = vadd.f32 %v4031_v14, %v3921_v7 }
 0x4b1   : > { %v4380_v47 = vadd.f32 %v4348_v13, %v8113_v2 }
 0x4b2   : > { %v4238_v26 = vpop.f32.mrf.mxu0 }
 0x4b3   : > { %v4412_v43 = vpack.c.bf16 %v4380_v47, %v4380_v47  ;;  %v4281_v9 = vadd.f32 %v4238_v26, %v4029_v53  ;;  %v8120_v26 = vld [vmem:[#allocation14_spill] sm:$0xff] }
 0x4b5   : > { %4445 = vst.msk [vmem:[%s7280_s14 + $0x60] sm:$0xf] %vm4420_vm9, %v4412_v43  ;;  %v4317_v15 = vadd.f32 %v7258_v35, %v4281_v9 }
 0x4b7   : > { %v4349_v39 = vmul.f32 0.1, %v4317_v15  ;;  %v3923_v12 = vpop.f32.mrf.mxu2  ;;  %v4038_v20 = vpop.f32.mrf.mxu3 }
 0x4b8   : > { %v4034_v48 = vadd.f32 %v4033_v25, %v3923_v12 }
 0x4b9   : > { %v4381_v44 = vadd.f32 %v4349_v39, %v8114_v38 }
 0x4bb   : > { %v4241_v58 = vpop.f32.mrf.mxu0  ;;  %v4413_v40 = vpack.c.bf16 %v4381_v44, %v4381_v44 }
 0x4bc   : > { %v4282_v5 = vadd.f32 %v4241_v58, %v4032_v42 }
 0x4bd   : > { %4446 = vst.msk [vmem:[%s7280_s14 + $0x64] sm:$0xf] %vm4420_vm9, %v4413_v40 }
 0x4be   : > { %v4318_v41 = vadd.f32 %v7258_v35, %v4282_v5 }
 0x4c0   : > { %v4350_v61 = vmul.f32 0.1, %v4318_v41  ;;  %v3926_v3 = vpop.f32.mrf.mxu2  ;;  %v4041_v59 = vpop.f32.mrf.mxu3 }
 0x4c1   : > { %v4037_v24 = vadd.f32 %v4036_v49, %v3926_v3 }
 0x4c2   : > { %v4382_v55 = vadd.f32 %v4350_v61, %v8115_v36 }
 0x4c3   : > { %v4243_v10 = vpop.f32.mrf.mxu0 }
 0x4c4   : > { %v4414_v18 = vpack.c.bf16 %v4382_v55, %v4382_v55  ;;  %v4283_v23 = vadd.f32 %v4243_v10, %v4034_v48 }
 0x4c6   : > { %4447 = vst.msk [vmem:[%s7280_s14 + $0x68] sm:$0xf] %vm4420_vm9, %v4414_v18  ;;  %v4319_v45 = vadd.f32 %v7258_v35, %v4283_v23 }
 0x4c8   : > { %v4351_v19 = vmul.f32 0.1, %v4319_v45  ;;  %v3928_v54 = vpop.f32.mrf.mxu2  ;;  %v4043_v33 = vpop.f32.mrf.mxu3 }
 0x4c9   : > { %v4039_v21 = vadd.f32 %v4038_v20, %v3928_v54 }
 0x4ca   : > { %v4383_v34 = vadd.f32 %v4351_v19, %v8116_v11 }
 0x4cb   : > { %v4246_v1 = vpop.f32.mrf.mxu0 }
 0x4cc   : > { %v4415_v6 = vpack.c.bf16 %v4383_v34, %v4383_v34  ;;  %v4284_v17 = vadd.f32 %v4246_v1, %v4037_v24 }
 0x4ce   : > { %4448 = vst.msk [vmem:[%s7280_s14 + $0x6c] sm:$0xf] %vm4420_vm9, %v4415_v6  ;;  %v4320_v16 = vadd.f32 %v7258_v35, %v4284_v17 }
 0x4d0   : > { %v4352_v29 = vmul.f32 0.1, %v4320_v16  ;;  %v3931_v30 = vpop.f32.mrf.mxu2 }
 0x4d1   : > { %v4042_v37 = vadd.f32 %v4041_v59, %v3931_v30 }
 0x4d2   : > { %v4384_v0 = vadd.f32 %v4352_v29, %v8117_v60 }
 0x4d3   : > { %v4248_v63 = vpop.f32.mrf.mxu0 }
 0x4d4   : > { %v4416_v50 = vpack.c.bf16 %v4384_v0, %v4384_v0  ;;  %v4285_v57 = vadd.f32 %v4248_v63, %v4039_v21 }
 0x4d6   : > { %4449 = vst.msk [vmem:[%s7280_s14 + $0x70] sm:$0xf] %vm4420_vm9, %v4416_v50  ;;  %v4321_v4 = vadd.f32 %v7258_v35, %v4285_v57 }
 0x4d8   : > { %v4353_v56 = vmul.f32 0.1, %v4321_v4  ;;  %v3933_v62 = vpop.f32.mrf.mxu2 }
 0x4d9   : > { %v4044_v31 = vadd.f32 %v4043_v33, %v3933_v62 }
 0x4da   : > { %v4385_v27 = vadd.f32 %v4353_v56, %v8118_v32 }
 0x4db   : > { %v4251_v46 = vpop.f32.mrf.mxu0 }
 0x4dc   : > { %v4417_v28 = vpack.c.bf16 %v4385_v27, %v4385_v27  ;;  %v4286_v51 = vadd.f32 %v4251_v46, %v4042_v37 }
 0x4de   : > { %4450 = vst.msk [vmem:[%s7280_s14 + $0x74] sm:$0xf] %vm4420_vm9, %v4417_v28  ;;  %v4322_v8 = vadd.f32 %v7258_v35, %v4286_v51 }
 0x4e0   : > { %v4354_v52 = vmul.f32 0.1, %v4322_v8 }
 0x4e2   : > { %v4386_v13 = vadd.f32 %v4354_v52, %v8119_v22 }
 0x4e3   : > { %v4253_v7 = vpop.f32.mrf.mxu0 }
 0x4e4   : > { %v4418_v14 = vpack.c.bf16 %v4386_v13, %v4386_v13  ;;  %v4287_v53 = vadd.f32 %v4253_v7, %v4044_v31 }
 0x4e6   : > { %4451 = vst.msk [vmem:[%s7280_s14 + $0x78] sm:$0xf] %vm4420_vm9, %v4418_v14  ;;  %v4323_v2 = vadd.f32 %v7258_v35, %v4287_v53 }
 0x4e8   : > { %v4355_v47 = vmul.f32 0.1, %v4323_v2 }
 0x4ea   : > { %v4387_v43 = vadd.f32 %v4355_v47, %v8120_v26 }
 0x4ec   : > { %v4419_v9 = vpack.c.bf16 %v4387_v43, %v4387_v43 }
 0x4ee   : > { %4452 = vst.msk [vmem:[%s7280_s14 + $0x7c] sm:$0xf] %vm4420_vm9, %v4419_v9 }
 0x4ef PF: > { %s17_s24 = sadd.s32 1, %s5277_s24  }
 0x4f0   : > { %p14_p4 = scmp.ge.s32.totalorder %s17_s24, 4  }
 0x4f2   :  { %16 = sbr.rel (!%p14_p4) target bundleno = 1 (0x1), region = 84 }

</bundles_post_ra>
